<compile_context>
chip_gen: v7x
topology: tpu7x:2x2x1
jax: 0.10.0
libtpu: 0.0.40
codegen_flags: <defaults>
</compile_context>

<pallas_src>
import functools

import jax
import jax.numpy as jnp
from jax.experimental import pallas as pl
from jax.experimental.pallas import tpu as pltpu

K = 7      # conv kernel size
PAD = 3    # conv padding


def spatial_attention_kernel(w_ref, b_ref, x_ref, o_ref, *, C, H, W):
    """One grid step: (nb, C, HWp) slab of x -> attention-weighted slab.

    w_ref: SMEM (2*K*K,) f32 -- flattened Conv2d(2, 1, 7, 7) weight
    b_ref: SMEM (1,)      f32 -- conv bias
    x_ref, o_ref: VMEM (nb, C, HWp) in x's dtype (lane-dense flat layout,
                  HWp = H*W rounded up to a multiple of 128).
    """
    nb, _, HWp = x_ref.shape
    stream_c = (C >= 32) and (C % 8 == 0)   # stream big channel counts

    # --- channel mean / max (f32 accumulation) ---------------------------
    if stream_c:
        def red_body(i, carry):
            s, m = carry
            c0 = pl.multiple_of(i * 8, 8)
            xc = x_ref[:, pl.ds(c0, 8), :]
            return (s + jnp.sum(xc, axis=1, dtype=jnp.float32),
                    jnp.maximum(m, jnp.max(xc, axis=1).astype(jnp.float32)))
        ssum, mx = jax.lax.fori_loop(
            0, C // 8, red_body,
            (jnp.zeros((nb, HWp), jnp.float32),
             jnp.full((nb, HWp), -jnp.inf, jnp.float32)),
            unroll=True)
        avg = ssum * jnp.float32(1.0 / C)
    else:
        x = x_ref[...]                                        # (nb, C, HWp)
        avg = jnp.sum(x, axis=1, dtype=jnp.float32) * jnp.float32(1.0 / C)
        mx = jnp.max(x, axis=1).astype(jnp.float32)

    # --- 7x7 "same" conv over the 2-channel [avg, max] stack -------------
    flat = jax.lax.broadcasted_iota(jnp.int32, (nb, HWp), 1)
    if (W & (W - 1)) == 0:                  # power-of-two width: cheap bit op
        col = jnp.bitwise_and(flat, W - 1)
    else:
        col = jax.lax.rem(flat, W)
    # Only the 6 column masks stay live across the fully-unrolled tap loop.
    col_ok = {dj: (col >= max(0, -dj)) & (col < min(W, W - dj))
              for dj in range(-PAD, PAD + 1) if dj != 0}

    zeros = jnp.zeros((nb, HWp), jnp.float32)    # hoisted; reused by every select
    accs = [zeros, zeros, zeros, zeros]          # 4 independent chains -> VALU ILP

    for c, m in enumerate((avg, mx)):
        for ki in range(K):
            di = ki - PAD
            if di == 0:
                mrow = m
            else:
                # Row mask recomputed from `flat` (only 12x total, cheaper
                # than keeping 12+ masks resident across the 98-tap unroll).
                row_ok = ((flat >= max(0, -di) * W) &
                          (flat < min(H, H - di) * W))
                mrow = jnp.where(
                    row_ok, pltpu.roll(m, shift=(-di * W) % HWp, axis=1), zeros)
            for kj in range(K):
                dj = kj - PAD
                if dj == 0:
                    tap = mrow
                else:
                    tap = jnp.where(
                        col_ok[dj],
                        pltpu.roll(mrow, shift=(-dj) % HWp, axis=1), zeros)
                a = 2 * c + (ki & 1)             # spread taps over 4 chains
                accs[a] = accs[a] + w_ref[c * K * K + ki * K + kj] * tap

    acc = (accs[0] + accs[1]) + (accs[2] + accs[3]) + b_ref[0]
    attn = jax.nn.sigmoid(acc).astype(o_ref.dtype)            # EUP sigmoid

    # --- gate: out = attn * x  (lane-dense unmasked stores) --------------
    if stream_c:
        @pl.loop(0, C // 8)
        def _(i):
            c0 = pl.multiple_of(i * 8, 8)
            o_ref[:, pl.ds(c0, 8), :] = x_ref[:, pl.ds(c0, 8), :] * attn[:, None, :]
    else:
        o_ref[...] = x_ref[...] * attn[:, None, :]


def _round_up(a, b):
    return (a + b - 1) // b * b


def _tpu_generation():
    try:
        kind = jax.devices()[0].device_kind.lower()
    except Exception:
        return "unknown"
    if "v5 lite" in kind or "v5lite" in kind or "v5e" in kind:
        return "v5e"
    if "v6" in kind:
        return "v6e"
    if "v7" in kind:
        return "v7x"
    return "unknown"


# Per-generation VMEM sizing: (block-picker budget, compiler vmem limit).
_VMEM_PLAN = {
    "v5e": (40 << 20, 64 << 20),       # 1 TC, 128 MiB physical VMEM
    "v6e": (48 << 20, 64 << 20),       # 1 TC, 128 MiB physical VMEM
    "v7x": (20 << 20, 32 << 20),       # 2 TCs, 64 MiB physical / 32 MiB scoped
    "unknown": (20 << 20, 32 << 20),   # conservative default
}


def _pick_blocking(N, C, HWp, itemsize, gen):
    """Batch block nb (multiple of 8), grid steps, padded batch size."""
    budget, _ = _VMEM_PLAN[gen]
    # Double-buffered in+out slabs billed in x's dtype (NOT as-if f32),
    # plus ~24 flat f32/i32 (nb, HWp) temporaries (maps, masks, accumulators).
    per_item = 4 * C * HWp * int(itemsize) + 24 * HWp * 4
    nb_cap = max(8, (budget // per_item) // 8 * 8)           # multiple of 8
    if gen == "v7x" and N > 8:
        # Two TensorCores: even number of "parallel" steps for a balanced split.
        steps = 2 * ((N + 2 * nb_cap - 1) // (2 * nb_cap))
    else:
        # v5e / v6e: single TC -- no reason to cap the block to make >=2 steps.
        steps = (N + nb_cap - 1) // nb_cap
    steps = max(1, steps)
    nb = _round_up(-(-N // steps), 8)                        # ceil(N/steps) -> x8
    return nb, steps, steps * nb


@jax.jit
def spatial_attention(x, weight, bias):
    """x: (N, C, H, W); weight: (1, 2, 7, 7); bias: (1,). Returns (N, C, H, W)."""
    N, C, H, W = x.shape
    HW = H * W
    HWp = _round_up(HW, 128)             # keep stores unmasked, lane-dense
    gen = _tpu_generation()
    nb, steps, N_pad = _pick_blocking(N, C, HWp, jnp.dtype(x.dtype).itemsize, gen)

    x_flat = x.reshape(N, C, HW)
    if N_pad != N or HWp != HW:
        x_flat = jnp.pad(x_flat, ((0, N_pad - N), (0, 0), (0, HWp - HW)))

    wflat = weight.reshape(-1).astype(jnp.float32)           # (2*7*7,) = (98,)
    b = bias.astype(jnp.float32)                             # (1,)

    kernel = functools.partial(spatial_attention_kernel, C=C, H=H, W=W)

    out_flat = pl.pallas_call(
        kernel,
        out_shape=jax.ShapeDtypeStruct((N_pad, C, HWp), x.dtype),
        grid_spec=pltpu.PrefetchScalarGridSpec(
            num_scalar_prefetch=2,
            grid=(steps,),
            in_specs=[pl.BlockSpec((nb, C, HWp), lambda n, wr, br: (n, 0, 0))],
            out_specs=pl.BlockSpec((nb, C, HWp), lambda n, wr, br: (n, 0, 0)),
        ),
        compiler_params=pltpu.CompilerParams(
            dimension_semantics=("parallel",),
            vmem_limit_bytes=_VMEM_PLAN[gen][1],
        ),
    )(wflat, b, x_flat)
    return out_flat[:N, :, :HW].reshape(N, C, H, W)


def spatial_attention_ref(x, weight, bias):
    """Pure-JAX reference mirroring the PyTorch forward."""
    avg_out = jnp.mean(x, axis=1, keepdims=True)
    max_out = jnp.max(x, axis=1, keepdims=True)
    combined = jnp.concatenate([avg_out, max_out], axis=1)   # (N, 2, H, W)
    conv = jax.lax.conv_general_dilated(
        combined, weight, window_strides=(1, 1),
        padding=((PAD, PAD), (PAD, PAD)),
        dimension_numbers=("NCHW", "OIHW", "NCHW"))
    attn = jax.nn.sigmoid(conv + bias.reshape(1, -1, 1, 1))
    return attn * x


if __name__ == "__main__":
    key = jax.random.PRNGKey(0)
    kx, kw, kb = jax.random.split(key, 3)

    N, C, H, W = 2, 4, 16, 16
    x = jax.random.normal(kx, (N, C, H, W), dtype=jnp.float32)

    # Conv2d(2, 1, kernel_size=7): weight (1, 2, 7, 7), bias (1,); deterministic
    # uniform init in +-1/sqrt(fan_in), fan_in = 2*7*7 (PyTorch-style default).
    bound = 1.0 / (2 * K * K) ** 0.5
    weight = jax.random.uniform(kw, (1, 2, K, K), minval=-bound, maxval=bound,
                                dtype=jnp.float32)
    bias = jax.random.uniform(kb, (1,), minval=-bound, maxval=bound,
                              dtype=jnp.float32)

    out = spatial_attention(x, weight, bias)
    jax.block_until_ready(out)

    ref = spatial_attention_ref(x, weight, bias)
    assert out.shape == (N, C, H, W)
    assert jnp.allclose(out, ref, atol=1e-4, rtol=1e-4), "mismatch vs reference"

    print("KERNEL_OK")
</pallas_src>

<mosaic_0001>
module attributes {stable_mosaic.version = 11 : i64} {
  func.func @spatial_attention_kernel(%arg0: i32, %arg1: memref<98xf32, #tpu.memory_space<smem>>, %arg2: memref<1xf32, #tpu.memory_space<smem>>, %arg3: memref<8x4x256xf32, #tpu.memory_space<vmem>>, %arg4: memref<8x4x256xf32, #tpu.memory_space<vmem>>) attributes {dimension_semantics = [#tpu.dimension_semantics<parallel>], iteration_bounds = array<i64: 1>, scalar_prefetch = 2 : i64, scratch_operands = 0 : i64, tpu.core_type = #tpu.core_type<tc>, window_params = [{transform_indices = @transform_0, window_bounds = array<i64: 8, 4, 256>}, {transform_indices = @transform_1, window_bounds = array<i64: 8, 4, 256>}]} {
    %c0 = arith.constant 0 : index
    %c0_0 = arith.constant 0 : index
    %c0_1 = arith.constant 0 : index
    %0 = vector.load %arg3[%c0, %c0_0, %c0_1] : memref<8x4x256xf32, #tpu.memory_space<vmem>>, vector<8x4x256xf32>
    %cst = arith.constant dense<0.000000e+00> : vector<8x256xf32>
    %1 = vector.multi_reduction <add>, %0, %cst [1] : vector<8x4x256xf32> to vector<8x256xf32>
    %cst_2 = arith.constant 2.500000e-01 : f32
    %2 = vector.broadcast %cst_2 : f32 to vector<8x256xf32>
    %3 = arith.mulf %1, %2 : vector<8x256xf32>
    %cst_3 = arith.constant dense<0xFF800000> : vector<8x256xf32>
    %4 = vector.multi_reduction <maximumf>, %0, %cst_3 [1] : vector<8x4x256xf32> to vector<8x256xf32>
    %5 = tpu.iota {dimensions = array<i32: 1>} : vector<8x256xi32>
    %c15_i32 = arith.constant 15 : i32
    %6 = vector.broadcast %c15_i32 : i32 to vector<8x256xi32>
    %7 = arith.andi %5, %6 : vector<8x256xi32>
    %c3_i32 = arith.constant 3 : i32
    %8 = vector.broadcast %c3_i32 : i32 to vector<8x256xi32>
    %9 = arith.cmpi sge, %7, %8 : vector<8x256xi32>
    %c16_i32 = arith.constant 16 : i32
    %10 = vector.broadcast %c16_i32 : i32 to vector<8x256xi32>
    %11 = arith.cmpi slt, %7, %10 : vector<8x256xi32>
    %12 = arith.andi %9, %11 : vector<8x256xi1>
    %c2_i32 = arith.constant 2 : i32
    %13 = vector.broadcast %c2_i32 : i32 to vector<8x256xi32>
    %14 = arith.cmpi sge, %7, %13 : vector<8x256xi32>
    %c16_i32_4 = arith.constant 16 : i32
    %15 = vector.broadcast %c16_i32_4 : i32 to vector<8x256xi32>
    %16 = arith.cmpi slt, %7, %15 : vector<8x256xi32>
    %17 = arith.andi %14, %16 : vector<8x256xi1>
    %c1_i32 = arith.constant 1 : i32
    %18 = vector.broadcast %c1_i32 : i32 to vector<8x256xi32>
    %19 = arith.cmpi sge, %7, %18 : vector<8x256xi32>
    %c16_i32_5 = arith.constant 16 : i32
    %20 = vector.broadcast %c16_i32_5 : i32 to vector<8x256xi32>
    %21 = arith.cmpi slt, %7, %20 : vector<8x256xi32>
    %22 = arith.andi %19, %21 : vector<8x256xi1>
    %c0_i32 = arith.constant 0 : i32
    %23 = vector.broadcast %c0_i32 : i32 to vector<8x256xi32>
    %24 = arith.cmpi sge, %7, %23 : vector<8x256xi32>
    %c15_i32_6 = arith.constant 15 : i32
    %25 = vector.broadcast %c15_i32_6 : i32 to vector<8x256xi32>
    %26 = arith.cmpi slt, %7, %25 : vector<8x256xi32>
    %27 = arith.andi %24, %26 : vector<8x256xi1>
    %c0_i32_7 = arith.constant 0 : i32
    %28 = vector.broadcast %c0_i32_7 : i32 to vector<8x256xi32>
    %29 = arith.cmpi sge, %7, %28 : vector<8x256xi32>
    %c14_i32 = arith.constant 14 : i32
    %30 = vector.broadcast %c14_i32 : i32 to vector<8x256xi32>
    %31 = arith.cmpi slt, %7, %30 : vector<8x256xi32>
    %32 = arith.andi %29, %31 : vector<8x256xi1>
    %c0_i32_8 = arith.constant 0 : i32
    %33 = vector.broadcast %c0_i32_8 : i32 to vector<8x256xi32>
    %34 = arith.cmpi sge, %7, %33 : vector<8x256xi32>
    %c13_i32 = arith.constant 13 : i32
    %35 = vector.broadcast %c13_i32 : i32 to vector<8x256xi32>
    %36 = arith.cmpi slt, %7, %35 : vector<8x256xi32>
    %37 = arith.andi %34, %36 : vector<8x256xi1>
    %cst_9 = arith.constant 0.000000e+00 : f32
    %38 = vector.broadcast %cst_9 : f32 to vector<8x256xf32>
    %c48_i32 = arith.constant 48 : i32
    %39 = vector.broadcast %c48_i32 : i32 to vector<8x256xi32>
    %40 = arith.cmpi sge, %5, %39 : vector<8x256xi32>
    %c256_i32 = arith.constant 256 : i32
    %41 = vector.broadcast %c256_i32 : i32 to vector<8x256xi32>
    %42 = arith.cmpi slt, %5, %41 : vector<8x256xi32>
    %43 = arith.andi %40, %42 : vector<8x256xi1>
    %c48_i32_10 = arith.constant 48 : i32
    %44 = tpu.dynamic_rotate %3 by %c48_i32_10 dim 1 : vector<8x256xf32>, i32 -> vector<8x256xf32>
    %45 = arith.select %43, %44, %38 : vector<8x256xi1>, vector<8x256xf32>
    %c3_i32_11 = arith.constant 3 : i32
    %46 = tpu.dynamic_rotate %45 by %c3_i32_11 dim 1 : vector<8x256xf32>, i32 -> vector<8x256xf32>
    %47 = arith.select %12, %46, %38 : vector<8x256xi1>, vector<8x256xf32>
    %c0_12 = arith.constant 0 : index
    %48 = memref.load %arg1[%c0_12] : memref<98xf32, #tpu.memory_space<smem>>
    %49 = vector.broadcast %48 : f32 to vector<8x256xf32>
    %50 = arith.mulf %49, %47 : vector<8x256xf32>
    %51 = arith.addf %38, %50 : vector<8x256xf32>
    %c2_i32_13 = arith.constant 2 : i32
    %52 = tpu.dynamic_rotate %45 by %c2_i32_13 dim 1 : vector<8x256xf32>, i32 -> vector<8x256xf32>
    %53 = arith.select %17, %52, %38 : vector<8x256xi1>, vector<8x256xf32>
    %c1 = arith.constant 1 : index
    %54 = memref.load %arg1[%c1] : memref<98xf32, #tpu.memory_space<smem>>
    %55 = vector.broadcast %54 : f32 to vector<8x256xf32>
    %56 = arith.mulf %55, %53 : vector<8x256xf32>
    %57 = arith.addf %51, %56 : vector<8x256xf32>
    %c1_i32_14 = arith.constant 1 : i32
    %58 = tpu.dynamic_rotate %45 by %c1_i32_14 dim 1 : vector<8x256xf32>, i32 -> vector<8x256xf32>
    %59 = arith.select %22, %58, %38 : vector<8x256xi1>, vector<8x256xf32>
    %c2 = arith.constant 2 : index
    %60 = memref.load %arg1[%c2] : memref<98xf32, #tpu.memory_space<smem>>
    %61 = vector.broadcast %60 : f32 to vector<8x256xf32>
    %62 = arith.mulf %61, %59 : vector<8x256xf32>
    %63 = arith.addf %57, %62 : vector<8x256xf32>
    %c3 = arith.constant 3 : index
    %64 = memref.load %arg1[%c3] : memref<98xf32, #tpu.memory_space<smem>>
    %65 = vector.broadcast %64 : f32 to vector<8x256xf32>
    %66 = arith.mulf %65, %45 : vector<8x256xf32>
    %67 = arith.addf %63, %66 : vector<8x256xf32>
    %c255_i32 = arith.constant 255 : i32
    %68 = tpu.dynamic_rotate %45 by %c255_i32 dim 1 : vector<8x256xf32>, i32 -> vector<8x256xf32>
    %69 = arith.select %27, %68, %38 : vector<8x256xi1>, vector<8x256xf32>
    %c4 = arith.constant 4 : index
    %70 = memref.load %arg1[%c4] : memref<98xf32, #tpu.memory_space<smem>>
    %71 = vector.broadcast %70 : f32 to vector<8x256xf32>
    %72 = arith.mulf %71, %69 : vector<8x256xf32>
    %73 = arith.addf %67, %72 : vector<8x256xf32>
    %c254_i32 = arith.constant 254 : i32
    %74 = tpu.dynamic_rotate %45 by %c254_i32 dim 1 : vector<8x256xf32>, i32 -> vector<8x256xf32>
    %75 = arith.select %32, %74, %38 : vector<8x256xi1>, vector<8x256xf32>
    %c5 = arith.constant 5 : index
    %76 = memref.load %arg1[%c5] : memref<98xf32, #tpu.memory_space<smem>>
    %77 = vector.broadcast %76 : f32 to vector<8x256xf32>
    %78 = arith.mulf %77, %75 : vector<8x256xf32>
    %79 = arith.addf %73, %78 : vector<8x256xf32>
    %c253_i32 = arith.constant 253 : i32
    %80 = tpu.dynamic_rotate %45 by %c253_i32 dim 1 : vector<8x256xf32>, i32 -> vector<8x256xf32>
    %81 = arith.select %37, %80, %38 : vector<8x256xi1>, vector<8x256xf32>
    %c6 = arith.constant 6 : index
    %82 = memref.load %arg1[%c6] : memref<98xf32, #tpu.memory_space<smem>>
    %83 = vector.broadcast %82 : f32 to vector<8x256xf32>
    %84 = arith.mulf %83, %81 : vector<8x256xf32>
    %85 = arith.addf %79, %84 : vector<8x256xf32>
    %c32_i32 = arith.constant 32 : i32
    %86 = vector.broadcast %c32_i32 : i32 to vector<8x256xi32>
    %87 = arith.cmpi sge, %5, %86 : vector<8x256xi32>
    %c256_i32_15 = arith.constant 256 : i32
    %88 = vector.broadcast %c256_i32_15 : i32 to vector<8x256xi32>
    %89 = arith.cmpi slt, %5, %88 : vector<8x256xi32>
    %90 = arith.andi %87, %89 : vector<8x256xi1>
    %c32_i32_16 = arith.constant 32 : i32
    %91 = tpu.dynamic_rotate %3 by %c32_i32_16 dim 1 : vector<8x256xf32>, i32 -> vector<8x256xf32>
    %92 = arith.select %90, %91, %38 : vector<8x256xi1>, vector<8x256xf32>
    %c3_i32_17 = arith.constant 3 : i32
    %93 = tpu.dynamic_rotate %92 by %c3_i32_17 dim 1 : vector<8x256xf32>, i32 -> vector<8x256xf32>
    %94 = arith.select %12, %93, %38 : vector<8x256xi1>, vector<8x256xf32>
    %c7 = arith.constant 7 : index
    %95 = memref.load %arg1[%c7] : memref<98xf32, #tpu.memory_space<smem>>
    %96 = vector.broadcast %95 : f32 to vector<8x256xf32>
    %97 = arith.mulf %96, %94 : vector<8x256xf32>
    %98 = arith.addf %38, %97 : vector<8x256xf32>
    %c2_i32_18 = arith.constant 2 : i32
    %99 = tpu.dynamic_rotate %92 by %c2_i32_18 dim 1 : vector<8x256xf32>, i32 -> vector<8x256xf32>
    %100 = arith.select %17, %99, %38 : vector<8x256xi1>, vector<8x256xf32>
    %c8 = arith.constant 8 : index
    %101 = memref.load %arg1[%c8] : memref<98xf32, #tpu.memory_space<smem>>
    %102 = vector.broadcast %101 : f32 to vector<8x256xf32>
    %103 = arith.mulf %102, %100 : vector<8x256xf32>
    %104 = arith.addf %98, %103 : vector<8x256xf32>
    %c1_i32_19 = arith.constant 1 : i32
    %105 = tpu.dynamic_rotate %92 by %c1_i32_19 dim 1 : vector<8x256xf32>, i32 -> vector<8x256xf32>
    %106 = arith.select %22, %105, %38 : vector<8x256xi1>, vector<8x256xf32>
    %c9 = arith.constant 9 : index
    %107 = memref.load %arg1[%c9] : memref<98xf32, #tpu.memory_space<smem>>
    %108 = vector.broadcast %107 : f32 to vector<8x256xf32>
    %109 = arith.mulf %108, %106 : vector<8x256xf32>
    %110 = arith.addf %104, %109 : vector<8x256xf32>
    %c10 = arith.constant 10 : index
    %111 = memref.load %arg1[%c10] : memref<98xf32, #tpu.memory_space<smem>>
    %112 = vector.broadcast %111 : f32 to vector<8x256xf32>
    %113 = arith.mulf %112, %92 : vector<8x256xf32>
    %114 = arith.addf %110, %113 : vector<8x256xf32>
    %c255_i32_20 = arith.constant 255 : i32
    %115 = tpu.dynamic_rotate %92 by %c255_i32_20 dim 1 : vector<8x256xf32>, i32 -> vector<8x256xf32>
    %116 = arith.select %27, %115, %38 : vector<8x256xi1>, vector<8x256xf32>
    %c11 = arith.constant 11 : index
    %117 = memref.load %arg1[%c11] : memref<98xf32, #tpu.memory_space<smem>>
    %118 = vector.broadcast %117 : f32 to vector<8x256xf32>
    %119 = arith.mulf %118, %116 : vector<8x256xf32>
    %120 = arith.addf %114, %119 : vector<8x256xf32>
    %c254_i32_21 = arith.constant 254 : i32
    %121 = tpu.dynamic_rotate %92 by %c254_i32_21 dim 1 : vector<8x256xf32>, i32 -> vector<8x256xf32>
    %122 = arith.select %32, %121, %38 : vector<8x256xi1>, vector<8x256xf32>
    %c12 = arith.constant 12 : index
    %123 = memref.load %arg1[%c12] : memref<98xf32, #tpu.memory_space<smem>>
    %124 = vector.broadcast %123 : f32 to vector<8x256xf32>
    %125 = arith.mulf %124, %122 : vector<8x256xf32>
    %126 = arith.addf %120, %125 : vector<8x256xf32>
    %c253_i32_22 = arith.constant 253 : i32
    %127 = tpu.dynamic_rotate %92 by %c253_i32_22 dim 1 : vector<8x256xf32>, i32 -> vector<8x256xf32>
    %128 = arith.select %37, %127, %38 : vector<8x256xi1>, vector<8x256xf32>
    %c13 = arith.constant 13 : index
    %129 = memref.load %arg1[%c13] : memref<98xf32, #tpu.memory_space<smem>>
    %130 = vector.broadcast %129 : f32 to vector<8x256xf32>
    %131 = arith.mulf %130, %128 : vector<8x256xf32>
    %132 = arith.addf %126, %131 : vector<8x256xf32>
    %c16_i32_23 = arith.constant 16 : i32
    %133 = vector.broadcast %c16_i32_23 : i32 to vector<8x256xi32>
    %134 = arith.cmpi sge, %5, %133 : vector<8x256xi32>
    %c256_i32_24 = arith.constant 256 : i32
    %135 = vector.broadcast %c256_i32_24 : i32 to vector<8x256xi32>
    %136 = arith.cmpi slt, %5, %135 : vector<8x256xi32>
    %137 = arith.andi %134, %136 : vector<8x256xi1>
    %c16_i32_25 = arith.constant 16 : i32
    %138 = tpu.dynamic_rotate %3 by %c16_i32_25 dim 1 : vector<8x256xf32>, i32 -> vector<8x256xf32>
    %139 = arith.select %137, %138, %38 : vector<8x256xi1>, vector<8x256xf32>
    %c3_i32_26 = arith.constant 3 : i32
    %140 = tpu.dynamic_rotate %139 by %c3_i32_26 dim 1 : vector<8x256xf32>, i32 -> vector<8x256xf32>
    %141 = arith.select %12, %140, %38 : vector<8x256xi1>, vector<8x256xf32>
    %c14 = arith.constant 14 : index
    %142 = memref.load %arg1[%c14] : memref<98xf32, #tpu.memory_space<smem>>
    %143 = vector.broadcast %142 : f32 to vector<8x256xf32>
    %144 = arith.mulf %143, %141 : vector<8x256xf32>
    %145 = arith.addf %85, %144 : vector<8x256xf32>
    %c2_i32_27 = arith.constant 2 : i32
    %146 = tpu.dynamic_rotate %139 by %c2_i32_27 dim 1 : vector<8x256xf32>, i32 -> vector<8x256xf32>
    %147 = arith.select %17, %146, %38 : vector<8x256xi1>, vector<8x256xf32>
    %c15 = arith.constant 15 : index
    %148 = memref.load %arg1[%c15] : memref<98xf32, #tpu.memory_space<smem>>
    %149 = vector.broadcast %148 : f32 to vector<8x256xf32>
    %150 = arith.mulf %149, %147 : vector<8x256xf32>
    %151 = arith.addf %145, %150 : vector<8x256xf32>
    %c1_i32_28 = arith.constant 1 : i32
    %152 = tpu.dynamic_rotate %139 by %c1_i32_28 dim 1 : vector<8x256xf32>, i32 -> vector<8x256xf32>
    %153 = arith.select %22, %152, %38 : vector<8x256xi1>, vector<8x256xf32>
    %c16 = arith.constant 16 : index
    %154 = memref.load %arg1[%c16] : memref<98xf32, #tpu.memory_space<smem>>
    %155 = vector.broadcast %154 : f32 to vector<8x256xf32>
    %156 = arith.mulf %155, %153 : vector<8x256xf32>
    %157 = arith.addf %151, %156 : vector<8x256xf32>
    %c17 = arith.constant 17 : index
    %158 = memref.load %arg1[%c17] : memref<98xf32, #tpu.memory_space<smem>>
    %159 = vector.broadcast %158 : f32 to vector<8x256xf32>
    %160 = arith.mulf %159, %139 : vector<8x256xf32>
    %161 = arith.addf %157, %160 : vector<8x256xf32>
    %c255_i32_29 = arith.constant 255 : i32
    %162 = tpu.dynamic_rotate %139 by %c255_i32_29 dim 1 : vector<8x256xf32>, i32 -> vector<8x256xf32>
    %163 = arith.select %27, %162, %38 : vector<8x256xi1>, vector<8x256xf32>
    %c18 = arith.constant 18 : index
    %164 = memref.load %arg1[%c18] : memref<98xf32, #tpu.memory_space<smem>>
    %165 = vector.broadcast %164 : f32 to vector<8x256xf32>
    %166 = arith.mulf %165, %163 : vector<8x256xf32>
    %167 = arith.addf %161, %166 : vector<8x256xf32>
    %c254_i32_30 = arith.constant 254 : i32
    %168 = tpu.dynamic_rotate %139 by %c254_i32_30 dim 1 : vector<8x256xf32>, i32 -> vector<8x256xf32>
    %169 = arith.select %32, %168, %38 : vector<8x256xi1>, vector<8x256xf32>
    %c19 = arith.constant 19 : index
    %170 = memref.load %arg1[%c19] : memref<98xf32, #tpu.memory_space<smem>>
    %171 = vector.broadcast %170 : f32 to vector<8x256xf32>
    %172 = arith.mulf %171, %169 : vector<8x256xf32>
    %173 = arith.addf %167, %172 : vector<8x256xf32>
    %c253_i32_31 = arith.constant 253 : i32
    %174 = tpu.dynamic_rotate %139 by %c253_i32_31 dim 1 : vector<8x256xf32>, i32 -> vector<8x256xf32>
    %175 = arith.select %37, %174, %38 : vector<8x256xi1>, vector<8x256xf32>
    %c20 = arith.constant 20 : index
    %176 = memref.load %arg1[%c20] : memref<98xf32, #tpu.memory_space<smem>>
    %177 = vector.broadcast %176 : f32 to vector<8x256xf32>
    %178 = arith.mulf %177, %175 : vector<8x256xf32>
    %179 = arith.addf %173, %178 : vector<8x256xf32>
    %c3_i32_32 = arith.constant 3 : i32
    %180 = tpu.dynamic_rotate %3 by %c3_i32_32 dim 1 : vector<8x256xf32>, i32 -> vector<8x256xf32>
    %181 = arith.select %12, %180, %38 : vector<8x256xi1>, vector<8x256xf32>
    %c21 = arith.constant 21 : index
    %182 = memref.load %arg1[%c21] : memref<98xf32, #tpu.memory_space<smem>>
    %183 = vector.broadcast %182 : f32 to vector<8x256xf32>
    %184 = arith.mulf %183, %181 : vector<8x256xf32>
    %185 = arith.addf %132, %184 : vector<8x256xf32>
    %c2_i32_33 = arith.constant 2 : i32
    %186 = tpu.dynamic_rotate %3 by %c2_i32_33 dim 1 : vector<8x256xf32>, i32 -> vector<8x256xf32>
    %187 = arith.select %17, %186, %38 : vector<8x256xi1>, vector<8x256xf32>
    %c22 = arith.constant 22 : index
    %188 = memref.load %arg1[%c22] : memref<98xf32, #tpu.memory_space<smem>>
    %189 = vector.broadcast %188 : f32 to vector<8x256xf32>
    %190 = arith.mulf %189, %187 : vector<8x256xf32>
    %191 = arith.addf %185, %190 : vector<8x256xf32>
    %c1_i32_34 = arith.constant 1 : i32
    %192 = tpu.dynamic_rotate %3 by %c1_i32_34 dim 1 : vector<8x256xf32>, i32 -> vector<8x256xf32>
    %193 = arith.select %22, %192, %38 : vector<8x256xi1>, vector<8x256xf32>
    %c23 = arith.constant 23 : index
    %194 = memref.load %arg1[%c23] : memref<98xf32, #tpu.memory_space<smem>>
    %195 = vector.broadcast %194 : f32 to vector<8x256xf32>
    %196 = arith.mulf %195, %193 : vector<8x256xf32>
    %197 = arith.addf %191, %196 : vector<8x256xf32>
    %c24 = arith.constant 24 : index
    %198 = memref.load %arg1[%c24] : memref<98xf32, #tpu.memory_space<smem>>
    %199 = vector.broadcast %198 : f32 to vector<8x256xf32>
    %200 = arith.mulf %199, %3 : vector<8x256xf32>
    %201 = arith.addf %197, %200 : vector<8x256xf32>
    %c255_i32_35 = arith.constant 255 : i32
    %202 = tpu.dynamic_rotate %3 by %c255_i32_35 dim 1 : vector<8x256xf32>, i32 -> vector<8x256xf32>
    %203 = arith.select %27, %202, %38 : vector<8x256xi1>, vector<8x256xf32>
    %c25 = arith.constant 25 : index
    %204 = memref.load %arg1[%c25] : memref<98xf32, #tpu.memory_space<smem>>
    %205 = vector.broadcast %204 : f32 to vector<8x256xf32>
    %206 = arith.mulf %205, %203 : vector<8x256xf32>
    %207 = arith.addf %201, %206 : vector<8x256xf32>
    %c254_i32_36 = arith.constant 254 : i32
    %208 = tpu.dynamic_rotate %3 by %c254_i32_36 dim 1 : vector<8x256xf32>, i32 -> vector<8x256xf32>
    %209 = arith.select %32, %208, %38 : vector<8x256xi1>, vector<8x256xf32>
    %c26 = arith.constant 26 : index
    %210 = memref.load %arg1[%c26] : memref<98xf32, #tpu.memory_space<smem>>
    %211 = vector.broadcast %210 : f32 to vector<8x256xf32>
    %212 = arith.mulf %211, %209 : vector<8x256xf32>
    %213 = arith.addf %207, %212 : vector<8x256xf32>
    %c253_i32_37 = arith.constant 253 : i32
    %214 = tpu.dynamic_rotate %3 by %c253_i32_37 dim 1 : vector<8x256xf32>, i32 -> vector<8x256xf32>
    %215 = arith.select %37, %214, %38 : vector<8x256xi1>, vector<8x256xf32>
    %c27 = arith.constant 27 : index
    %216 = memref.load %arg1[%c27] : memref<98xf32, #tpu.memory_space<smem>>
    %217 = vector.broadcast %216 : f32 to vector<8x256xf32>
    %218 = arith.mulf %217, %215 : vector<8x256xf32>
    %219 = arith.addf %213, %218 : vector<8x256xf32>
    %c0_i32_38 = arith.constant 0 : i32
    %220 = vector.broadcast %c0_i32_38 : i32 to vector<8x256xi32>
    %221 = arith.cmpi sge, %5, %220 : vector<8x256xi32>
    %c240_i32 = arith.constant 240 : i32
    %222 = vector.broadcast %c240_i32 : i32 to vector<8x256xi32>
    %223 = arith.cmpi slt, %5, %222 : vector<8x256xi32>
    %224 = arith.andi %221, %223 : vector<8x256xi1>
    %c240_i32_39 = arith.constant 240 : i32
    %225 = tpu.dynamic_rotate %3 by %c240_i32_39 dim 1 : vector<8x256xf32>, i32 -> vector<8x256xf32>
    %226 = arith.select %224, %225, %38 : vector<8x256xi1>, vector<8x256xf32>
    %c3_i32_40 = arith.constant 3 : i32
    %227 = tpu.dynamic_rotate %226 by %c3_i32_40 dim 1 : vector<8x256xf32>, i32 -> vector<8x256xf32>
    %228 = arith.select %12, %227, %38 : vector<8x256xi1>, vector<8x256xf32>
    %c28 = arith.constant 28 : index
    %229 = memref.load %arg1[%c28] : memref<98xf32, #tpu.memory_space<smem>>
    %230 = vector.broadcast %229 : f32 to vector<8x256xf32>
    %231 = arith.mulf %230, %228 : vector<8x256xf32>
    %232 = arith.addf %179, %231 : vector<8x256xf32>
    %c2_i32_41 = arith.constant 2 : i32
    %233 = tpu.dynamic_rotate %226 by %c2_i32_41 dim 1 : vector<8x256xf32>, i32 -> vector<8x256xf32>
    %234 = arith.select %17, %233, %38 : vector<8x256xi1>, vector<8x256xf32>
    %c29 = arith.constant 29 : index
    %235 = memref.load %arg1[%c29] : memref<98xf32, #tpu.memory_space<smem>>
    %236 = vector.broadcast %235 : f32 to vector<8x256xf32>
    %237 = arith.mulf %236, %234 : vector<8x256xf32>
    %238 = arith.addf %232, %237 : vector<8x256xf32>
    %c1_i32_42 = arith.constant 1 : i32
    %239 = tpu.dynamic_rotate %226 by %c1_i32_42 dim 1 : vector<8x256xf32>, i32 -> vector<8x256xf32>
    %240 = arith.select %22, %239, %38 : vector<8x256xi1>, vector<8x256xf32>
    %c30 = arith.constant 30 : index
    %241 = memref.load %arg1[%c30] : memref<98xf32, #tpu.memory_space<smem>>
    %242 = vector.broadcast %241 : f32 to vector<8x256xf32>
    %243 = arith.mulf %242, %240 : vector<8x256xf32>
    %244 = arith.addf %238, %243 : vector<8x256xf32>
    %c31 = arith.constant 31 : index
    %245 = memref.load %arg1[%c31] : memref<98xf32, #tpu.memory_space<smem>>
    %246 = vector.broadcast %245 : f32 to vector<8x256xf32>
    %247 = arith.mulf %246, %226 : vector<8x256xf32>
    %248 = arith.addf %244, %247 : vector<8x256xf32>
    %c255_i32_43 = arith.constant 255 : i32
    %249 = tpu.dynamic_rotate %226 by %c255_i32_43 dim 1 : vector<8x256xf32>, i32 -> vector<8x256xf32>
    %250 = arith.select %27, %249, %38 : vector<8x256xi1>, vector<8x256xf32>
    %c32 = arith.constant 32 : index
    %251 = memref.load %arg1[%c32] : memref<98xf32, #tpu.memory_space<smem>>
    %252 = vector.broadcast %251 : f32 to vector<8x256xf32>
    %253 = arith.mulf %252, %250 : vector<8x256xf32>
    %254 = arith.addf %248, %253 : vector<8x256xf32>
    %c254_i32_44 = arith.constant 254 : i32
    %255 = tpu.dynamic_rotate %226 by %c254_i32_44 dim 1 : vector<8x256xf32>, i32 -> vector<8x256xf32>
    %256 = arith.select %32, %255, %38 : vector<8x256xi1>, vector<8x256xf32>
    %c33 = arith.constant 33 : index
    %257 = memref.load %arg1[%c33] : memref<98xf32, #tpu.memory_space<smem>>
    %258 = vector.broadcast %257 : f32 to vector<8x256xf32>
    %259 = arith.mulf %258, %256 : vector<8x256xf32>
    %260 = arith.addf %254, %259 : vector<8x256xf32>
    %c253_i32_45 = arith.constant 253 : i32
    %261 = tpu.dynamic_rotate %226 by %c253_i32_45 dim 1 : vector<8x256xf32>, i32 -> vector<8x256xf32>
    %262 = arith.select %37, %261, %38 : vector<8x256xi1>, vector<8x256xf32>
    %c34 = arith.constant 34 : index
    %263 = memref.load %arg1[%c34] : memref<98xf32, #tpu.memory_space<smem>>
    %264 = vector.broadcast %263 : f32 to vector<8x256xf32>
    %265 = arith.mulf %264, %262 : vector<8x256xf32>
    %266 = arith.addf %260, %265 : vector<8x256xf32>
    %c0_i32_46 = arith.constant 0 : i32
    %267 = vector.broadcast %c0_i32_46 : i32 to vector<8x256xi32>
    %268 = arith.cmpi sge, %5, %267 : vector<8x256xi32>
    %c224_i32 = arith.constant 224 : i32
    %269 = vector.broadcast %c224_i32 : i32 to vector<8x256xi32>
    %270 = arith.cmpi slt, %5, %269 : vector<8x256xi32>
    %271 = arith.andi %268, %270 : vector<8x256xi1>
    %c224_i32_47 = arith.constant 224 : i32
    %272 = tpu.dynamic_rotate %3 by %c224_i32_47 dim 1 : vector<8x256xf32>, i32 -> vector<8x256xf32>
    %273 = arith.select %271, %272, %38 : vector<8x256xi1>, vector<8x256xf32>
    %c3_i32_48 = arith.constant 3 : i32
    %274 = tpu.dynamic_rotate %273 by %c3_i32_48 dim 1 : vector<8x256xf32>, i32 -> vector<8x256xf32>
    %275 = arith.select %12, %274, %38 : vector<8x256xi1>, vector<8x256xf32>
    %c35 = arith.constant 35 : index
    %276 = memref.load %arg1[%c35] : memref<98xf32, #tpu.memory_space<smem>>
    %277 = vector.broadcast %276 : f32 to vector<8x256xf32>
    %278 = arith.mulf %277, %275 : vector<8x256xf32>
    %279 = arith.addf %219, %278 : vector<8x256xf32>
    %c2_i32_49 = arith.constant 2 : i32
    %280 = tpu.dynamic_rotate %273 by %c2_i32_49 dim 1 : vector<8x256xf32>, i32 -> vector<8x256xf32>
    %281 = arith.select %17, %280, %38 : vector<8x256xi1>, vector<8x256xf32>
    %c36 = arith.constant 36 : index
    %282 = memref.load %arg1[%c36] : memref<98xf32, #tpu.memory_space<smem>>
    %283 = vector.broadcast %282 : f32 to vector<8x256xf32>
    %284 = arith.mulf %283, %281 : vector<8x256xf32>
    %285 = arith.addf %279, %284 : vector<8x256xf32>
    %c1_i32_50 = arith.constant 1 : i32
    %286 = tpu.dynamic_rotate %273 by %c1_i32_50 dim 1 : vector<8x256xf32>, i32 -> vector<8x256xf32>
    %287 = arith.select %22, %286, %38 : vector<8x256xi1>, vector<8x256xf32>
    %c37 = arith.constant 37 : index
    %288 = memref.load %arg1[%c37] : memref<98xf32, #tpu.memory_space<smem>>
    %289 = vector.broadcast %288 : f32 to vector<8x256xf32>
    %290 = arith.mulf %289, %287 : vector<8x256xf32>
    %291 = arith.addf %285, %290 : vector<8x256xf32>
    %c38 = arith.constant 38 : index
    %292 = memref.load %arg1[%c38] : memref<98xf32, #tpu.memory_space<smem>>
    %293 = vector.broadcast %292 : f32 to vector<8x256xf32>
    %294 = arith.mulf %293, %273 : vector<8x256xf32>
    %295 = arith.addf %291, %294 : vector<8x256xf32>
    %c255_i32_51 = arith.constant 255 : i32
    %296 = tpu.dynamic_rotate %273 by %c255_i32_51 dim 1 : vector<8x256xf32>, i32 -> vector<8x256xf32>
    %297 = arith.select %27, %296, %38 : vector<8x256xi1>, vector<8x256xf32>
    %c39 = arith.constant 39 : index
    %298 = memref.load %arg1[%c39] : memref<98xf32, #tpu.memory_space<smem>>
    %299 = vector.broadcast %298 : f32 to vector<8x256xf32>
    %300 = arith.mulf %299, %297 : vector<8x256xf32>
    %301 = arith.addf %295, %300 : vector<8x256xf32>
    %c254_i32_52 = arith.constant 254 : i32
    %302 = tpu.dynamic_rotate %273 by %c254_i32_52 dim 1 : vector<8x256xf32>, i32 -> vector<8x256xf32>
    %303 = arith.select %32, %302, %38 : vector<8x256xi1>, vector<8x256xf32>
    %c40 = arith.constant 40 : index
    %304 = memref.load %arg1[%c40] : memref<98xf32, #tpu.memory_space<smem>>
    %305 = vector.broadcast %304 : f32 to vector<8x256xf32>
    %306 = arith.mulf %305, %303 : vector<8x256xf32>
    %307 = arith.addf %301, %306 : vector<8x256xf32>
    %c253_i32_53 = arith.constant 253 : i32
    %308 = tpu.dynamic_rotate %273 by %c253_i32_53 dim 1 : vector<8x256xf32>, i32 -> vector<8x256xf32>
    %309 = arith.select %37, %308, %38 : vector<8x256xi1>, vector<8x256xf32>
    %c41 = arith.constant 41 : index
    %310 = memref.load %arg1[%c41] : memref<98xf32, #tpu.memory_space<smem>>
    %311 = vector.broadcast %310 : f32 to vector<8x256xf32>
    %312 = arith.mulf %311, %309 : vector<8x256xf32>
    %313 = arith.addf %307, %312 : vector<8x256xf32>
    %c0_i32_54 = arith.constant 0 : i32
    %314 = vector.broadcast %c0_i32_54 : i32 to vector<8x256xi32>
    %315 = arith.cmpi sge, %5, %314 : vector<8x256xi32>
    %c208_i32 = arith.constant 208 : i32
    %316 = vector.broadcast %c208_i32 : i32 to vector<8x256xi32>
    %317 = arith.cmpi slt, %5, %316 : vector<8x256xi32>
    %318 = arith.andi %315, %317 : vector<8x256xi1>
    %c208_i32_55 = arith.constant 208 : i32
    %319 = tpu.dynamic_rotate %3 by %c208_i32_55 dim 1 : vector<8x256xf32>, i32 -> vector<8x256xf32>
    %320 = arith.select %318, %319, %38 : vector<8x256xi1>, vector<8x256xf32>
    %c3_i32_56 = arith.constant 3 : i32
    %321 = tpu.dynamic_rotate %320 by %c3_i32_56 dim 1 : vector<8x256xf32>, i32 -> vector<8x256xf32>
    %322 = arith.select %12, %321, %38 : vector<8x256xi1>, vector<8x256xf32>
    %c42 = arith.constant 42 : index
    %323 = memref.load %arg1[%c42] : memref<98xf32, #tpu.memory_space<smem>>
    %324 = vector.broadcast %323 : f32 to vector<8x256xf32>
    %325 = arith.mulf %324, %322 : vector<8x256xf32>
    %326 = arith.addf %266, %325 : vector<8x256xf32>
    %c2_i32_57 = arith.constant 2 : i32
    %327 = tpu.dynamic_rotate %320 by %c2_i32_57 dim 1 : vector<8x256xf32>, i32 -> vector<8x256xf32>
    %328 = arith.select %17, %327, %38 : vector<8x256xi1>, vector<8x256xf32>
    %c43 = arith.constant 43 : index
    %329 = memref.load %arg1[%c43] : memref<98xf32, #tpu.memory_space<smem>>
    %330 = vector.broadcast %329 : f32 to vector<8x256xf32>
    %331 = arith.mulf %330, %328 : vector<8x256xf32>
    %332 = arith.addf %326, %331 : vector<8x256xf32>
    %c1_i32_58 = arith.constant 1 : i32
    %333 = tpu.dynamic_rotate %320 by %c1_i32_58 dim 1 : vector<8x256xf32>, i32 -> vector<8x256xf32>
    %334 = arith.select %22, %333, %38 : vector<8x256xi1>, vector<8x256xf32>
    %c44 = arith.constant 44 : index
    %335 = memref.load %arg1[%c44] : memref<98xf32, #tpu.memory_space<smem>>
    %336 = vector.broadcast %335 : f32 to vector<8x256xf32>
    %337 = arith.mulf %336, %334 : vector<8x256xf32>
    %338 = arith.addf %332, %337 : vector<8x256xf32>
    %c45 = arith.constant 45 : index
    %339 = memref.load %arg1[%c45] : memref<98xf32, #tpu.memory_space<smem>>
    %340 = vector.broadcast %339 : f32 to vector<8x256xf32>
    %341 = arith.mulf %340, %320 : vector<8x256xf32>
    %342 = arith.addf %338, %341 : vector<8x256xf32>
    %c255_i32_59 = arith.constant 255 : i32
    %343 = tpu.dynamic_rotate %320 by %c255_i32_59 dim 1 : vector<8x256xf32>, i32 -> vector<8x256xf32>
    %344 = arith.select %27, %343, %38 : vector<8x256xi1>, vector<8x256xf32>
    %c46 = arith.constant 46 : index
    %345 = memref.load %arg1[%c46] : memref<98xf32, #tpu.memory_space<smem>>
    %346 = vector.broadcast %345 : f32 to vector<8x256xf32>
    %347 = arith.mulf %346, %344 : vector<8x256xf32>
    %348 = arith.addf %342, %347 : vector<8x256xf32>
    %c254_i32_60 = arith.constant 254 : i32
    %349 = tpu.dynamic_rotate %320 by %c254_i32_60 dim 1 : vector<8x256xf32>, i32 -> vector<8x256xf32>
    %350 = arith.select %32, %349, %38 : vector<8x256xi1>, vector<8x256xf32>
    %c47 = arith.constant 47 : index
    %351 = memref.load %arg1[%c47] : memref<98xf32, #tpu.memory_space<smem>>
    %352 = vector.broadcast %351 : f32 to vector<8x256xf32>
    %353 = arith.mulf %352, %350 : vector<8x256xf32>
    %354 = arith.addf %348, %353 : vector<8x256xf32>
    %c253_i32_61 = arith.constant 253 : i32
    %355 = tpu.dynamic_rotate %320 by %c253_i32_61 dim 1 : vector<8x256xf32>, i32 -> vector<8x256xf32>
    %356 = arith.select %37, %355, %38 : vector<8x256xi1>, vector<8x256xf32>
    %c48 = arith.constant 48 : index
    %357 = memref.load %arg1[%c48] : memref<98xf32, #tpu.memory_space<smem>>
    %358 = vector.broadcast %357 : f32 to vector<8x256xf32>
    %359 = arith.mulf %358, %356 : vector<8x256xf32>
    %360 = arith.addf %354, %359 : vector<8x256xf32>
    %c48_i32_62 = arith.constant 48 : i32
    %361 = vector.broadcast %c48_i32_62 : i32 to vector<8x256xi32>
    %362 = arith.cmpi sge, %5, %361 : vector<8x256xi32>
    %c256_i32_63 = arith.constant 256 : i32
    %363 = vector.broadcast %c256_i32_63 : i32 to vector<8x256xi32>
    %364 = arith.cmpi slt, %5, %363 : vector<8x256xi32>
    %365 = arith.andi %362, %364 : vector<8x256xi1>
    %c48_i32_64 = arith.constant 48 : i32
    %366 = tpu.dynamic_rotate %4 by %c48_i32_64 dim 1 : vector<8x256xf32>, i32 -> vector<8x256xf32>
    %367 = arith.select %365, %366, %38 : vector<8x256xi1>, vector<8x256xf32>
    %c3_i32_65 = arith.constant 3 : i32
    %368 = tpu.dynamic_rotate %367 by %c3_i32_65 dim 1 : vector<8x256xf32>, i32 -> vector<8x256xf32>
    %369 = arith.select %12, %368, %38 : vector<8x256xi1>, vector<8x256xf32>
    %c49 = arith.constant 49 : index
    %370 = memref.load %arg1[%c49] : memref<98xf32, #tpu.memory_space<smem>>
    %371 = vector.broadcast %370 : f32 to vector<8x256xf32>
    %372 = arith.mulf %371, %369 : vector<8x256xf32>
    %373 = arith.addf %38, %372 : vector<8x256xf32>
    %c2_i32_66 = arith.constant 2 : i32
    %374 = tpu.dynamic_rotate %367 by %c2_i32_66 dim 1 : vector<8x256xf32>, i32 -> vector<8x256xf32>
    %375 = arith.select %17, %374, %38 : vector<8x256xi1>, vector<8x256xf32>
    %c50 = arith.constant 50 : index
    %376 = memref.load %arg1[%c50] : memref<98xf32, #tpu.memory_space<smem>>
    %377 = vector.broadcast %376 : f32 to vector<8x256xf32>
    %378 = arith.mulf %377, %375 : vector<8x256xf32>
    %379 = arith.addf %373, %378 : vector<8x256xf32>
    %c1_i32_67 = arith.constant 1 : i32
    %380 = tpu.dynamic_rotate %367 by %c1_i32_67 dim 1 : vector<8x256xf32>, i32 -> vector<8x256xf32>
    %381 = arith.select %22, %380, %38 : vector<8x256xi1>, vector<8x256xf32>
    %c51 = arith.constant 51 : index
    %382 = memref.load %arg1[%c51] : memref<98xf32, #tpu.memory_space<smem>>
    %383 = vector.broadcast %382 : f32 to vector<8x256xf32>
    %384 = arith.mulf %383, %381 : vector<8x256xf32>
    %385 = arith.addf %379, %384 : vector<8x256xf32>
    %c52 = arith.constant 52 : index
    %386 = memref.load %arg1[%c52] : memref<98xf32, #tpu.memory_space<smem>>
    %387 = vector.broadcast %386 : f32 to vector<8x256xf32>
    %388 = arith.mulf %387, %367 : vector<8x256xf32>
    %389 = arith.addf %385, %388 : vector<8x256xf32>
    %c255_i32_68 = arith.constant 255 : i32
    %390 = tpu.dynamic_rotate %367 by %c255_i32_68 dim 1 : vector<8x256xf32>, i32 -> vector<8x256xf32>
    %391 = arith.select %27, %390, %38 : vector<8x256xi1>, vector<8x256xf32>
    %c53 = arith.constant 53 : index
    %392 = memref.load %arg1[%c53] : memref<98xf32, #tpu.memory_space<smem>>
    %393 = vector.broadcast %392 : f32 to vector<8x256xf32>
    %394 = arith.mulf %393, %391 : vector<8x256xf32>
    %395 = arith.addf %389, %394 : vector<8x256xf32>
    %c254_i32_69 = arith.constant 254 : i32
    %396 = tpu.dynamic_rotate %367 by %c254_i32_69 dim 1 : vector<8x256xf32>, i32 -> vector<8x256xf32>
    %397 = arith.select %32, %396, %38 : vector<8x256xi1>, vector<8x256xf32>
    %c54 = arith.constant 54 : index
    %398 = memref.load %arg1[%c54] : memref<98xf32, #tpu.memory_space<smem>>
    %399 = vector.broadcast %398 : f32 to vector<8x256xf32>
    %400 = arith.mulf %399, %397 : vector<8x256xf32>
    %401 = arith.addf %395, %400 : vector<8x256xf32>
    %c253_i32_70 = arith.constant 253 : i32
    %402 = tpu.dynamic_rotate %367 by %c253_i32_70 dim 1 : vector<8x256xf32>, i32 -> vector<8x256xf32>
    %403 = arith.select %37, %402, %38 : vector<8x256xi1>, vector<8x256xf32>
    %c55 = arith.constant 55 : index
    %404 = memref.load %arg1[%c55] : memref<98xf32, #tpu.memory_space<smem>>
    %405 = vector.broadcast %404 : f32 to vector<8x256xf32>
    %406 = arith.mulf %405, %403 : vector<8x256xf32>
    %407 = arith.addf %401, %406 : vector<8x256xf32>
    %c32_i32_71 = arith.constant 32 : i32
    %408 = vector.broadcast %c32_i32_71 : i32 to vector<8x256xi32>
    %409 = arith.cmpi sge, %5, %408 : vector<8x256xi32>
    %c256_i32_72 = arith.constant 256 : i32
    %410 = vector.broadcast %c256_i32_72 : i32 to vector<8x256xi32>
    %411 = arith.cmpi slt, %5, %410 : vector<8x256xi32>
    %412 = arith.andi %409, %411 : vector<8x256xi1>
    %c32_i32_73 = arith.constant 32 : i32
    %413 = tpu.dynamic_rotate %4 by %c32_i32_73 dim 1 : vector<8x256xf32>, i32 -> vector<8x256xf32>
    %414 = arith.select %412, %413, %38 : vector<8x256xi1>, vector<8x256xf32>
    %c3_i32_74 = arith.constant 3 : i32
    %415 = tpu.dynamic_rotate %414 by %c3_i32_74 dim 1 : vector<8x256xf32>, i32 -> vector<8x256xf32>
    %416 = arith.select %12, %415, %38 : vector<8x256xi1>, vector<8x256xf32>
    %c56 = arith.constant 56 : index
    %417 = memref.load %arg1[%c56] : memref<98xf32, #tpu.memory_space<smem>>
    %418 = vector.broadcast %417 : f32 to vector<8x256xf32>
    %419 = arith.mulf %418, %416 : vector<8x256xf32>
    %420 = arith.addf %38, %419 : vector<8x256xf32>
    %c2_i32_75 = arith.constant 2 : i32
    %421 = tpu.dynamic_rotate %414 by %c2_i32_75 dim 1 : vector<8x256xf32>, i32 -> vector<8x256xf32>
    %422 = arith.select %17, %421, %38 : vector<8x256xi1>, vector<8x256xf32>
    %c57 = arith.constant 57 : index
    %423 = memref.load %arg1[%c57] : memref<98xf32, #tpu.memory_space<smem>>
    %424 = vector.broadcast %423 : f32 to vector<8x256xf32>
    %425 = arith.mulf %424, %422 : vector<8x256xf32>
    %426 = arith.addf %420, %425 : vector<8x256xf32>
    %c1_i32_76 = arith.constant 1 : i32
    %427 = tpu.dynamic_rotate %414 by %c1_i32_76 dim 1 : vector<8x256xf32>, i32 -> vector<8x256xf32>
    %428 = arith.select %22, %427, %38 : vector<8x256xi1>, vector<8x256xf32>
    %c58 = arith.constant 58 : index
    %429 = memref.load %arg1[%c58] : memref<98xf32, #tpu.memory_space<smem>>
    %430 = vector.broadcast %429 : f32 to vector<8x256xf32>
    %431 = arith.mulf %430, %428 : vector<8x256xf32>
    %432 = arith.addf %426, %431 : vector<8x256xf32>
    %c59 = arith.constant 59 : index
    %433 = memref.load %arg1[%c59] : memref<98xf32, #tpu.memory_space<smem>>
    %434 = vector.broadcast %433 : f32 to vector<8x256xf32>
    %435 = arith.mulf %434, %414 : vector<8x256xf32>
    %436 = arith.addf %432, %435 : vector<8x256xf32>
    %c255_i32_77 = arith.constant 255 : i32
    %437 = tpu.dynamic_rotate %414 by %c255_i32_77 dim 1 : vector<8x256xf32>, i32 -> vector<8x256xf32>
    %438 = arith.select %27, %437, %38 : vector<8x256xi1>, vector<8x256xf32>
    %c60 = arith.constant 60 : index
    %439 = memref.load %arg1[%c60] : memref<98xf32, #tpu.memory_space<smem>>
    %440 = vector.broadcast %439 : f32 to vector<8x256xf32>
    %441 = arith.mulf %440, %438 : vector<8x256xf32>
    %442 = arith.addf %436, %441 : vector<8x256xf32>
    %c254_i32_78 = arith.constant 254 : i32
    %443 = tpu.dynamic_rotate %414 by %c254_i32_78 dim 1 : vector<8x256xf32>, i32 -> vector<8x256xf32>
    %444 = arith.select %32, %443, %38 : vector<8x256xi1>, vector<8x256xf32>
    %c61 = arith.constant 61 : index
    %445 = memref.load %arg1[%c61] : memref<98xf32, #tpu.memory_space<smem>>
    %446 = vector.broadcast %445 : f32 to vector<8x256xf32>
    %447 = arith.mulf %446, %444 : vector<8x256xf32>
    %448 = arith.addf %442, %447 : vector<8x256xf32>
    %c253_i32_79 = arith.constant 253 : i32
    %449 = tpu.dynamic_rotate %414 by %c253_i32_79 dim 1 : vector<8x256xf32>, i32 -> vector<8x256xf32>
    %450 = arith.select %37, %449, %38 : vector<8x256xi1>, vector<8x256xf32>
    %c62 = arith.constant 62 : index
    %451 = memref.load %arg1[%c62] : memref<98xf32, #tpu.memory_space<smem>>
    %452 = vector.broadcast %451 : f32 to vector<8x256xf32>
    %453 = arith.mulf %452, %450 : vector<8x256xf32>
    %454 = arith.addf %448, %453 : vector<8x256xf32>
    %c16_i32_80 = arith.constant 16 : i32
    %455 = vector.broadcast %c16_i32_80 : i32 to vector<8x256xi32>
    %456 = arith.cmpi sge, %5, %455 : vector<8x256xi32>
    %c256_i32_81 = arith.constant 256 : i32
    %457 = vector.broadcast %c256_i32_81 : i32 to vector<8x256xi32>
    %458 = arith.cmpi slt, %5, %457 : vector<8x256xi32>
    %459 = arith.andi %456, %458 : vector<8x256xi1>
    %c16_i32_82 = arith.constant 16 : i32
    %460 = tpu.dynamic_rotate %4 by %c16_i32_82 dim 1 : vector<8x256xf32>, i32 -> vector<8x256xf32>
    %461 = arith.select %459, %460, %38 : vector<8x256xi1>, vector<8x256xf32>
    %c3_i32_83 = arith.constant 3 : i32
    %462 = tpu.dynamic_rotate %461 by %c3_i32_83 dim 1 : vector<8x256xf32>, i32 -> vector<8x256xf32>
    %463 = arith.select %12, %462, %38 : vector<8x256xi1>, vector<8x256xf32>
    %c63 = arith.constant 63 : index
    %464 = memref.load %arg1[%c63] : memref<98xf32, #tpu.memory_space<smem>>
    %465 = vector.broadcast %464 : f32 to vector<8x256xf32>
    %466 = arith.mulf %465, %463 : vector<8x256xf32>
    %467 = arith.addf %407, %466 : vector<8x256xf32>
    %c2_i32_84 = arith.constant 2 : i32
    %468 = tpu.dynamic_rotate %461 by %c2_i32_84 dim 1 : vector<8x256xf32>, i32 -> vector<8x256xf32>
    %469 = arith.select %17, %468, %38 : vector<8x256xi1>, vector<8x256xf32>
    %c64 = arith.constant 64 : index
    %470 = memref.load %arg1[%c64] : memref<98xf32, #tpu.memory_space<smem>>
    %471 = vector.broadcast %470 : f32 to vector<8x256xf32>
    %472 = arith.mulf %471, %469 : vector<8x256xf32>
    %473 = arith.addf %467, %472 : vector<8x256xf32>
    %c1_i32_85 = arith.constant 1 : i32
    %474 = tpu.dynamic_rotate %461 by %c1_i32_85 dim 1 : vector<8x256xf32>, i32 -> vector<8x256xf32>
    %475 = arith.select %22, %474, %38 : vector<8x256xi1>, vector<8x256xf32>
    %c65 = arith.constant 65 : index
    %476 = memref.load %arg1[%c65] : memref<98xf32, #tpu.memory_space<smem>>
    %477 = vector.broadcast %476 : f32 to vector<8x256xf32>
    %478 = arith.mulf %477, %475 : vector<8x256xf32>
    %479 = arith.addf %473, %478 : vector<8x256xf32>
    %c66 = arith.constant 66 : index
    %480 = memref.load %arg1[%c66] : memref<98xf32, #tpu.memory_space<smem>>
    %481 = vector.broadcast %480 : f32 to vector<8x256xf32>
    %482 = arith.mulf %481, %461 : vector<8x256xf32>
    %483 = arith.addf %479, %482 : vector<8x256xf32>
    %c255_i32_86 = arith.constant 255 : i32
    %484 = tpu.dynamic_rotate %461 by %c255_i32_86 dim 1 : vector<8x256xf32>, i32 -> vector<8x256xf32>
    %485 = arith.select %27, %484, %38 : vector<8x256xi1>, vector<8x256xf32>
    %c67 = arith.constant 67 : index
    %486 = memref.load %arg1[%c67] : memref<98xf32, #tpu.memory_space<smem>>
    %487 = vector.broadcast %486 : f32 to vector<8x256xf32>
    %488 = arith.mulf %487, %485 : vector<8x256xf32>
    %489 = arith.addf %483, %488 : vector<8x256xf32>
    %c254_i32_87 = arith.constant 254 : i32
    %490 = tpu.dynamic_rotate %461 by %c254_i32_87 dim 1 : vector<8x256xf32>, i32 -> vector<8x256xf32>
    %491 = arith.select %32, %490, %38 : vector<8x256xi1>, vector<8x256xf32>
    %c68 = arith.constant 68 : index
    %492 = memref.load %arg1[%c68] : memref<98xf32, #tpu.memory_space<smem>>
    %493 = vector.broadcast %492 : f32 to vector<8x256xf32>
    %494 = arith.mulf %493, %491 : vector<8x256xf32>
    %495 = arith.addf %489, %494 : vector<8x256xf32>
    %c253_i32_88 = arith.constant 253 : i32
    %496 = tpu.dynamic_rotate %461 by %c253_i32_88 dim 1 : vector<8x256xf32>, i32 -> vector<8x256xf32>
    %497 = arith.select %37, %496, %38 : vector<8x256xi1>, vector<8x256xf32>
    %c69 = arith.constant 69 : index
    %498 = memref.load %arg1[%c69] : memref<98xf32, #tpu.memory_space<smem>>
    %499 = vector.broadcast %498 : f32 to vector<8x256xf32>
    %500 = arith.mulf %499, %497 : vector<8x256xf32>
    %501 = arith.addf %495, %500 : vector<8x256xf32>
    %c3_i32_89 = arith.constant 3 : i32
    %502 = tpu.dynamic_rotate %4 by %c3_i32_89 dim 1 : vector<8x256xf32>, i32 -> vector<8x256xf32>
    %503 = arith.select %12, %502, %38 : vector<8x256xi1>, vector<8x256xf32>
    %c70 = arith.constant 70 : index
    %504 = memref.load %arg1[%c70] : memref<98xf32, #tpu.memory_space<smem>>
    %505 = vector.broadcast %504 : f32 to vector<8x256xf32>
    %506 = arith.mulf %505, %503 : vector<8x256xf32>
    %507 = arith.addf %454, %506 : vector<8x256xf32>
    %c2_i32_90 = arith.constant 2 : i32
    %508 = tpu.dynamic_rotate %4 by %c2_i32_90 dim 1 : vector<8x256xf32>, i32 -> vector<8x256xf32>
    %509 = arith.select %17, %508, %38 : vector<8x256xi1>, vector<8x256xf32>
    %c71 = arith.constant 71 : index
    %510 = memref.load %arg1[%c71] : memref<98xf32, #tpu.memory_space<smem>>
    %511 = vector.broadcast %510 : f32 to vector<8x256xf32>
    %512 = arith.mulf %511, %509 : vector<8x256xf32>
    %513 = arith.addf %507, %512 : vector<8x256xf32>
    %c1_i32_91 = arith.constant 1 : i32
    %514 = tpu.dynamic_rotate %4 by %c1_i32_91 dim 1 : vector<8x256xf32>, i32 -> vector<8x256xf32>
    %515 = arith.select %22, %514, %38 : vector<8x256xi1>, vector<8x256xf32>
    %c72 = arith.constant 72 : index
    %516 = memref.load %arg1[%c72] : memref<98xf32, #tpu.memory_space<smem>>
    %517 = vector.broadcast %516 : f32 to vector<8x256xf32>
    %518 = arith.mulf %517, %515 : vector<8x256xf32>
    %519 = arith.addf %513, %518 : vector<8x256xf32>
    %c73 = arith.constant 73 : index
    %520 = memref.load %arg1[%c73] : memref<98xf32, #tpu.memory_space<smem>>
    %521 = vector.broadcast %520 : f32 to vector<8x256xf32>
    %522 = arith.mulf %521, %4 : vector<8x256xf32>
    %523 = arith.addf %519, %522 : vector<8x256xf32>
    %c255_i32_92 = arith.constant 255 : i32
    %524 = tpu.dynamic_rotate %4 by %c255_i32_92 dim 1 : vector<8x256xf32>, i32 -> vector<8x256xf32>
    %525 = arith.select %27, %524, %38 : vector<8x256xi1>, vector<8x256xf32>
    %c74 = arith.constant 74 : index
    %526 = memref.load %arg1[%c74] : memref<98xf32, #tpu.memory_space<smem>>
    %527 = vector.broadcast %526 : f32 to vector<8x256xf32>
    %528 = arith.mulf %527, %525 : vector<8x256xf32>
    %529 = arith.addf %523, %528 : vector<8x256xf32>
    %c254_i32_93 = arith.constant 254 : i32
    %530 = tpu.dynamic_rotate %4 by %c254_i32_93 dim 1 : vector<8x256xf32>, i32 -> vector<8x256xf32>
    %531 = arith.select %32, %530, %38 : vector<8x256xi1>, vector<8x256xf32>
    %c75 = arith.constant 75 : index
    %532 = memref.load %arg1[%c75] : memref<98xf32, #tpu.memory_space<smem>>
    %533 = vector.broadcast %532 : f32 to vector<8x256xf32>
    %534 = arith.mulf %533, %531 : vector<8x256xf32>
    %535 = arith.addf %529, %534 : vector<8x256xf32>
    %c253_i32_94 = arith.constant 253 : i32
    %536 = tpu.dynamic_rotate %4 by %c253_i32_94 dim 1 : vector<8x256xf32>, i32 -> vector<8x256xf32>
    %537 = arith.select %37, %536, %38 : vector<8x256xi1>, vector<8x256xf32>
    %c76 = arith.constant 76 : index
    %538 = memref.load %arg1[%c76] : memref<98xf32, #tpu.memory_space<smem>>
    %539 = vector.broadcast %538 : f32 to vector<8x256xf32>
    %540 = arith.mulf %539, %537 : vector<8x256xf32>
    %541 = arith.addf %535, %540 : vector<8x256xf32>
    %c0_i32_95 = arith.constant 0 : i32
    %542 = vector.broadcast %c0_i32_95 : i32 to vector<8x256xi32>
    %543 = arith.cmpi sge, %5, %542 : vector<8x256xi32>
    %c240_i32_96 = arith.constant 240 : i32
    %544 = vector.broadcast %c240_i32_96 : i32 to vector<8x256xi32>
    %545 = arith.cmpi slt, %5, %544 : vector<8x256xi32>
    %546 = arith.andi %543, %545 : vector<8x256xi1>
    %c240_i32_97 = arith.constant 240 : i32
    %547 = tpu.dynamic_rotate %4 by %c240_i32_97 dim 1 : vector<8x256xf32>, i32 -> vector<8x256xf32>
    %548 = arith.select %546, %547, %38 : vector<8x256xi1>, vector<8x256xf32>
    %c3_i32_98 = arith.constant 3 : i32
    %549 = tpu.dynamic_rotate %548 by %c3_i32_98 dim 1 : vector<8x256xf32>, i32 -> vector<8x256xf32>
    %550 = arith.select %12, %549, %38 : vector<8x256xi1>, vector<8x256xf32>
    %c77 = arith.constant 77 : index
    %551 = memref.load %arg1[%c77] : memref<98xf32, #tpu.memory_space<smem>>
    %552 = vector.broadcast %551 : f32 to vector<8x256xf32>
    %553 = arith.mulf %552, %550 : vector<8x256xf32>
    %554 = arith.addf %501, %553 : vector<8x256xf32>
    %c2_i32_99 = arith.constant 2 : i32
    %555 = tpu.dynamic_rotate %548 by %c2_i32_99 dim 1 : vector<8x256xf32>, i32 -> vector<8x256xf32>
    %556 = arith.select %17, %555, %38 : vector<8x256xi1>, vector<8x256xf32>
    %c78 = arith.constant 78 : index
    %557 = memref.load %arg1[%c78] : memref<98xf32, #tpu.memory_space<smem>>
    %558 = vector.broadcast %557 : f32 to vector<8x256xf32>
    %559 = arith.mulf %558, %556 : vector<8x256xf32>
    %560 = arith.addf %554, %559 : vector<8x256xf32>
    %c1_i32_100 = arith.constant 1 : i32
    %561 = tpu.dynamic_rotate %548 by %c1_i32_100 dim 1 : vector<8x256xf32>, i32 -> vector<8x256xf32>
    %562 = arith.select %22, %561, %38 : vector<8x256xi1>, vector<8x256xf32>
    %c79 = arith.constant 79 : index
    %563 = memref.load %arg1[%c79] : memref<98xf32, #tpu.memory_space<smem>>
    %564 = vector.broadcast %563 : f32 to vector<8x256xf32>
    %565 = arith.mulf %564, %562 : vector<8x256xf32>
    %566 = arith.addf %560, %565 : vector<8x256xf32>
    %c80 = arith.constant 80 : index
    %567 = memref.load %arg1[%c80] : memref<98xf32, #tpu.memory_space<smem>>
    %568 = vector.broadcast %567 : f32 to vector<8x256xf32>
    %569 = arith.mulf %568, %548 : vector<8x256xf32>
    %570 = arith.addf %566, %569 : vector<8x256xf32>
    %c255_i32_101 = arith.constant 255 : i32
    %571 = tpu.dynamic_rotate %548 by %c255_i32_101 dim 1 : vector<8x256xf32>, i32 -> vector<8x256xf32>
    %572 = arith.select %27, %571, %38 : vector<8x256xi1>, vector<8x256xf32>
    %c81 = arith.constant 81 : index
    %573 = memref.load %arg1[%c81] : memref<98xf32, #tpu.memory_space<smem>>
    %574 = vector.broadcast %573 : f32 to vector<8x256xf32>
    %575 = arith.mulf %574, %572 : vector<8x256xf32>
    %576 = arith.addf %570, %575 : vector<8x256xf32>
    %c254_i32_102 = arith.constant 254 : i32
    %577 = tpu.dynamic_rotate %548 by %c254_i32_102 dim 1 : vector<8x256xf32>, i32 -> vector<8x256xf32>
    %578 = arith.select %32, %577, %38 : vector<8x256xi1>, vector<8x256xf32>
    %c82 = arith.constant 82 : index
    %579 = memref.load %arg1[%c82] : memref<98xf32, #tpu.memory_space<smem>>
    %580 = vector.broadcast %579 : f32 to vector<8x256xf32>
    %581 = arith.mulf %580, %578 : vector<8x256xf32>
    %582 = arith.addf %576, %581 : vector<8x256xf32>
    %c253_i32_103 = arith.constant 253 : i32
    %583 = tpu.dynamic_rotate %548 by %c253_i32_103 dim 1 : vector<8x256xf32>, i32 -> vector<8x256xf32>
    %584 = arith.select %37, %583, %38 : vector<8x256xi1>, vector<8x256xf32>
    %c83 = arith.constant 83 : index
    %585 = memref.load %arg1[%c83] : memref<98xf32, #tpu.memory_space<smem>>
    %586 = vector.broadcast %585 : f32 to vector<8x256xf32>
    %587 = arith.mulf %586, %584 : vector<8x256xf32>
    %588 = arith.addf %582, %587 : vector<8x256xf32>
    %c0_i32_104 = arith.constant 0 : i32
    %589 = vector.broadcast %c0_i32_104 : i32 to vector<8x256xi32>
    %590 = arith.cmpi sge, %5, %589 : vector<8x256xi32>
    %c224_i32_105 = arith.constant 224 : i32
    %591 = vector.broadcast %c224_i32_105 : i32 to vector<8x256xi32>
    %592 = arith.cmpi slt, %5, %591 : vector<8x256xi32>
    %593 = arith.andi %590, %592 : vector<8x256xi1>
    %c224_i32_106 = arith.constant 224 : i32
    %594 = tpu.dynamic_rotate %4 by %c224_i32_106 dim 1 : vector<8x256xf32>, i32 -> vector<8x256xf32>
    %595 = arith.select %593, %594, %38 : vector<8x256xi1>, vector<8x256xf32>
    %c3_i32_107 = arith.constant 3 : i32
    %596 = tpu.dynamic_rotate %595 by %c3_i32_107 dim 1 : vector<8x256xf32>, i32 -> vector<8x256xf32>
    %597 = arith.select %12, %596, %38 : vector<8x256xi1>, vector<8x256xf32>
    %c84 = arith.constant 84 : index
    %598 = memref.load %arg1[%c84] : memref<98xf32, #tpu.memory_space<smem>>
    %599 = vector.broadcast %598 : f32 to vector<8x256xf32>
    %600 = arith.mulf %599, %597 : vector<8x256xf32>
    %601 = arith.addf %541, %600 : vector<8x256xf32>
    %c2_i32_108 = arith.constant 2 : i32
    %602 = tpu.dynamic_rotate %595 by %c2_i32_108 dim 1 : vector<8x256xf32>, i32 -> vector<8x256xf32>
    %603 = arith.select %17, %602, %38 : vector<8x256xi1>, vector<8x256xf32>
    %c85 = arith.constant 85 : index
    %604 = memref.load %arg1[%c85] : memref<98xf32, #tpu.memory_space<smem>>
    %605 = vector.broadcast %604 : f32 to vector<8x256xf32>
    %606 = arith.mulf %605, %603 : vector<8x256xf32>
    %607 = arith.addf %601, %606 : vector<8x256xf32>
    %c1_i32_109 = arith.constant 1 : i32
    %608 = tpu.dynamic_rotate %595 by %c1_i32_109 dim 1 : vector<8x256xf32>, i32 -> vector<8x256xf32>
    %609 = arith.select %22, %608, %38 : vector<8x256xi1>, vector<8x256xf32>
    %c86 = arith.constant 86 : index
    %610 = memref.load %arg1[%c86] : memref<98xf32, #tpu.memory_space<smem>>
    %611 = vector.broadcast %610 : f32 to vector<8x256xf32>
    %612 = arith.mulf %611, %609 : vector<8x256xf32>
    %613 = arith.addf %607, %612 : vector<8x256xf32>
    %c87 = arith.constant 87 : index
    %614 = memref.load %arg1[%c87] : memref<98xf32, #tpu.memory_space<smem>>
    %615 = vector.broadcast %614 : f32 to vector<8x256xf32>
    %616 = arith.mulf %615, %595 : vector<8x256xf32>
    %617 = arith.addf %613, %616 : vector<8x256xf32>
    %c255_i32_110 = arith.constant 255 : i32
    %618 = tpu.dynamic_rotate %595 by %c255_i32_110 dim 1 : vector<8x256xf32>, i32 -> vector<8x256xf32>
    %619 = arith.select %27, %618, %38 : vector<8x256xi1>, vector<8x256xf32>
    %c88 = arith.constant 88 : index
    %620 = memref.load %arg1[%c88] : memref<98xf32, #tpu.memory_space<smem>>
    %621 = vector.broadcast %620 : f32 to vector<8x256xf32>
    %622 = arith.mulf %621, %619 : vector<8x256xf32>
    %623 = arith.addf %617, %622 : vector<8x256xf32>
    %c254_i32_111 = arith.constant 254 : i32
    %624 = tpu.dynamic_rotate %595 by %c254_i32_111 dim 1 : vector<8x256xf32>, i32 -> vector<8x256xf32>
    %625 = arith.select %32, %624, %38 : vector<8x256xi1>, vector<8x256xf32>
    %c89 = arith.constant 89 : index
    %626 = memref.load %arg1[%c89] : memref<98xf32, #tpu.memory_space<smem>>
    %627 = vector.broadcast %626 : f32 to vector<8x256xf32>
    %628 = arith.mulf %627, %625 : vector<8x256xf32>
    %629 = arith.addf %623, %628 : vector<8x256xf32>
    %c253_i32_112 = arith.constant 253 : i32
    %630 = tpu.dynamic_rotate %595 by %c253_i32_112 dim 1 : vector<8x256xf32>, i32 -> vector<8x256xf32>
    %631 = arith.select %37, %630, %38 : vector<8x256xi1>, vector<8x256xf32>
    %c90 = arith.constant 90 : index
    %632 = memref.load %arg1[%c90] : memref<98xf32, #tpu.memory_space<smem>>
    %633 = vector.broadcast %632 : f32 to vector<8x256xf32>
    %634 = arith.mulf %633, %631 : vector<8x256xf32>
    %635 = arith.addf %629, %634 : vector<8x256xf32>
    %c0_i32_113 = arith.constant 0 : i32
    %636 = vector.broadcast %c0_i32_113 : i32 to vector<8x256xi32>
    %637 = arith.cmpi sge, %5, %636 : vector<8x256xi32>
    %c208_i32_114 = arith.constant 208 : i32
    %638 = vector.broadcast %c208_i32_114 : i32 to vector<8x256xi32>
    %639 = arith.cmpi slt, %5, %638 : vector<8x256xi32>
    %640 = arith.andi %637, %639 : vector<8x256xi1>
    %c208_i32_115 = arith.constant 208 : i32
    %641 = tpu.dynamic_rotate %4 by %c208_i32_115 dim 1 : vector<8x256xf32>, i32 -> vector<8x256xf32>
    %642 = arith.select %640, %641, %38 : vector<8x256xi1>, vector<8x256xf32>
    %c3_i32_116 = arith.constant 3 : i32
    %643 = tpu.dynamic_rotate %642 by %c3_i32_116 dim 1 : vector<8x256xf32>, i32 -> vector<8x256xf32>
    %644 = arith.select %12, %643, %38 : vector<8x256xi1>, vector<8x256xf32>
    %c91 = arith.constant 91 : index
    %645 = memref.load %arg1[%c91] : memref<98xf32, #tpu.memory_space<smem>>
    %646 = vector.broadcast %645 : f32 to vector<8x256xf32>
    %647 = arith.mulf %646, %644 : vector<8x256xf32>
    %648 = arith.addf %588, %647 : vector<8x256xf32>
    %c2_i32_117 = arith.constant 2 : i32
    %649 = tpu.dynamic_rotate %642 by %c2_i32_117 dim 1 : vector<8x256xf32>, i32 -> vector<8x256xf32>
    %650 = arith.select %17, %649, %38 : vector<8x256xi1>, vector<8x256xf32>
    %c92 = arith.constant 92 : index
    %651 = memref.load %arg1[%c92] : memref<98xf32, #tpu.memory_space<smem>>
    %652 = vector.broadcast %651 : f32 to vector<8x256xf32>
    %653 = arith.mulf %652, %650 : vector<8x256xf32>
    %654 = arith.addf %648, %653 : vector<8x256xf32>
    %c1_i32_118 = arith.constant 1 : i32
    %655 = tpu.dynamic_rotate %642 by %c1_i32_118 dim 1 : vector<8x256xf32>, i32 -> vector<8x256xf32>
    %656 = arith.select %22, %655, %38 : vector<8x256xi1>, vector<8x256xf32>
    %c93 = arith.constant 93 : index
    %657 = memref.load %arg1[%c93] : memref<98xf32, #tpu.memory_space<smem>>
    %658 = vector.broadcast %657 : f32 to vector<8x256xf32>
    %659 = arith.mulf %658, %656 : vector<8x256xf32>
    %660 = arith.addf %654, %659 : vector<8x256xf32>
    %c94 = arith.constant 94 : index
    %661 = memref.load %arg1[%c94] : memref<98xf32, #tpu.memory_space<smem>>
    %662 = vector.broadcast %661 : f32 to vector<8x256xf32>
    %663 = arith.mulf %662, %642 : vector<8x256xf32>
    %664 = arith.addf %660, %663 : vector<8x256xf32>
    %c255_i32_119 = arith.constant 255 : i32
    %665 = tpu.dynamic_rotate %642 by %c255_i32_119 dim 1 : vector<8x256xf32>, i32 -> vector<8x256xf32>
    %666 = arith.select %27, %665, %38 : vector<8x256xi1>, vector<8x256xf32>
    %c95 = arith.constant 95 : index
    %667 = memref.load %arg1[%c95] : memref<98xf32, #tpu.memory_space<smem>>
    %668 = vector.broadcast %667 : f32 to vector<8x256xf32>
    %669 = arith.mulf %668, %666 : vector<8x256xf32>
    %670 = arith.addf %664, %669 : vector<8x256xf32>
    %c254_i32_120 = arith.constant 254 : i32
    %671 = tpu.dynamic_rotate %642 by %c254_i32_120 dim 1 : vector<8x256xf32>, i32 -> vector<8x256xf32>
    %672 = arith.select %32, %671, %38 : vector<8x256xi1>, vector<8x256xf32>
    %c96 = arith.constant 96 : index
    %673 = memref.load %arg1[%c96] : memref<98xf32, #tpu.memory_space<smem>>
    %674 = vector.broadcast %673 : f32 to vector<8x256xf32>
    %675 = arith.mulf %674, %672 : vector<8x256xf32>
    %676 = arith.addf %670, %675 : vector<8x256xf32>
    %c253_i32_121 = arith.constant 253 : i32
    %677 = tpu.dynamic_rotate %642 by %c253_i32_121 dim 1 : vector<8x256xf32>, i32 -> vector<8x256xf32>
    %678 = arith.select %37, %677, %38 : vector<8x256xi1>, vector<8x256xf32>
    %c97 = arith.constant 97 : index
    %679 = memref.load %arg1[%c97] : memref<98xf32, #tpu.memory_space<smem>>
    %680 = vector.broadcast %679 : f32 to vector<8x256xf32>
    %681 = arith.mulf %680, %678 : vector<8x256xf32>
    %682 = arith.addf %676, %681 : vector<8x256xf32>
    %683 = arith.addf %360, %313 : vector<8x256xf32>
    %684 = arith.addf %682, %635 : vector<8x256xf32>
    %685 = arith.addf %683, %684 : vector<8x256xf32>
    %c0_122 = arith.constant 0 : index
    %686 = memref.load %arg2[%c0_122] : memref<1xf32, #tpu.memory_space<smem>>
    %687 = vector.broadcast %686 : f32 to vector<8x256xf32>
    %688 = arith.addf %685, %687 : vector<8x256xf32>
    %689 = arith.negf %688 : vector<8x256xf32>
    %690 = math.exp %689 : vector<8x256xf32>
    %cst_123 = arith.constant 1.000000e+00 : f32
    %691 = vector.broadcast %cst_123 : f32 to vector<8x256xf32>
    %692 = arith.addf %691, %690 : vector<8x256xf32>
    %693 = arith.divf %691, %692 : vector<8x256xf32>
    %c0_124 = arith.constant 0 : index
    %c0_125 = arith.constant 0 : index
    %c0_126 = arith.constant 0 : index
    %694 = vector.load %arg3[%c0_124, %c0_125, %c0_126] : memref<8x4x256xf32, #tpu.memory_space<vmem>>, vector<8x4x256xf32>
    %695 = vector.shape_cast %693 : vector<8x256xf32> to vector<8x1x256xf32>
    %696 = vector.broadcast %695 : vector<8x1x256xf32> to vector<8x4x256xf32>
    %697 = arith.mulf %694, %696 : vector<8x4x256xf32>
    %c0_127 = arith.constant 0 : index
    %c0_128 = arith.constant 0 : index
    %c0_129 = arith.constant 0 : index
    %698 = vector.load %arg4[%c0_127, %c0_128, %c0_129] : memref<8x4x256xf32, #tpu.memory_space<vmem>>, vector<8x4x256xf32>
    tpu.vector_store %arg4[%c0_127, %c0_128, %c0_129], %697 {strides = array<i32>} : memref<8x4x256xf32, #tpu.memory_space<vmem>>, vector<8x4x256xf32>,
    return
  }
  func.func @transform_0(%arg0: i32, %arg1: memref<98xf32, #tpu.memory_space<smem>>, %arg2: memref<1xf32, #tpu.memory_space<smem>>) -> (i32, i32, i32) {
    %c0_i32 = arith.constant 0 : i32
    %c0_i32_0 = arith.constant 0 : i32
    %c0_i32_1 = arith.constant 0 : i32
    return %arg0, %c0_i32, %c0_i32_0 : i32, i32, i32
  }
  func.func @transform_1(%arg0: i32, %arg1: memref<98xf32, #tpu.memory_space<smem>>, %arg2: memref<1xf32, #tpu.memory_space<smem>>) -> (i32, i32, i32) {
    %c0_i32 = arith.constant 0 : i32
    %c0_i32_0 = arith.constant 0 : i32
    %c0_i32_1 = arith.constant 0 : i32
    return %arg0, %c0_i32, %c0_i32_0 : i32, i32, i32
  }
}

</mosaic_0001>

<bundles_post_ra>
// kernel: spatial_attention.1
= control target key start
LH: loop header
LB: loop body
LE: loop exit
PB: predicated region body
PF: predicated region fallthrough
CT: control target
= control target key end

     0   :  { %s4662_s0 = inlined_call_operand.vmem [shape: f32[98], index: 0, kind: input, shape index: {}]   ;;  %s4663_s1 = inlined_call_operand.<no memory space> [shape: f32[1], index: 1, kind: input, shape index: {}]   ;;  %s4664_s2 = inlined_call_operand.vmem [shape: f32[8,4,256], index: 2, kind: input, shape index: {}]   ;;  %s4665_s3 = inlined_call_operand.vmem [shape: f32[8,4,256], index: 3, kind: output, shape index: {}]  }
   0x1   :  { %s8_s14 = sshll.u32 %s4662_s0, 4  ;;  %s9_s14 = int_to_ptr.vmem [resolvable:$true] %s8_s14 }
   0x2   :  { %s2193_s15 = scalar_lea.vmem %s9_s14, 16  ;;  %p2198_p1 = scmp.lt.s32.totalorder %s9_s14, %s9_s14 }
   0x3   :  { %p2194_p0 = scmp.ne.s32.totalorder %s9_s14, %s2193_s15  ;;  %p2199_p2 = scmp.lt.s32.totalorder %s2193_s15, %s2193_s15 }
   0x5   :  { %p2200_p3 = por %p2199_p2, %p2198_p1 }
   0x7   :  { %p2201_p4 = pnand %p2200_p3, %p2194_p0 }
   0x9   :  { %2204 = shalt.err (!%p2201_p4)  }
   0xa   :  { %s2207_s16 = smov [#allocation3]  }
   0xb   :  { %11 = dma.vmem_to_smem %s9_s14, 16, %s2207_s16, [#allocation2] }
   0xc   :  { %2205 = dma.done.wait [#allocation2], 16 }
   0xd   :  { %2206 = vsyncadd [#allocation2], 4294967280 }
   0xe   :  { %14 = sfence }
   0xf   :  { %v2247_v0 = vld [vmem:[%s4664_s2] sm:$0xff]  ;;  %v2252_v1 = vld [vmem:[%s4664_s2 + $0x8] sm:$0xff]  ;;  %v2257_v2 = vld [vmem:[%s4664_s2 + $0x10] sm:$0xff]  ;;  %vm49_vm0 = vcmask 1043456   ;;  %vm4722_vm1 = vcmask 1041409   ;;  %vm4717_vm2 = vcmask 1042434  }
  0x10   :  { %v2262_v3 = vld [vmem:[%s4664_s2 + $0x18] sm:$0xff]  ;;  %v2267_v4 = vld [vmem:[%s4664_s2 + $0x20] sm:$0xff]  ;;  %v2272_v5 = vld [vmem:[%s4664_s2 + $0x28] sm:$0xff]  ;;  %v50_v6 = vsel %vm49_vm0, %v2247_v0, 0.0  ;;  %v64_v7 = vsel %vm49_vm0, %v2252_v1, 0.0  ;;  %v78_v8 = vsel %vm49_vm0, %v2257_v2, 0.0  ;;  %v2282_v9 = vcombine.high %v2247_v0, %v2247_v0 }
  0x11   :  { %v2287_v10 = vld [vmem:[%s4664_s2 + $0x30] sm:$0xff]  ;;  %v2292_v11 = vld [vmem:[%s4664_s2 + $0x38] sm:$0xff]  ;;  %v51_v12 = vrot.slane %v50_v6, 4  ;;  %v65_v13 = vrot.slane %v64_v7, 4  ;;  %v79_v14 = vrot.slane %v78_v8, 4  ;;  %v92_v15 = vsel %vm49_vm0, %v2262_v3, 0.0 }
  0x12   :  { %v93_v16 = vrot.slane %v92_v15, 4  ;;  %v106_v17 = vsel %vm49_vm0, %v2267_v4, 0.0  ;;  %v120_v18 = vsel %vm49_vm0, %v2272_v5, 0.0  ;;  %v134_v19 = vsel %vm49_vm0, %v2287_v10, 0.0  ;;  %s2208_s5 = smov 48   ;;  %s2209_s6 = smov 32  }
  0x13   :  { %v52_v20 = vadd.f32 %v51_v12, %v50_v6  ;;  %v66_v21 = vadd.f32 %v65_v13, %v64_v7  ;;  %v80_v22 = vadd.f32 %v79_v14, %v78_v8  ;;  %v107_v23 = vrot.slane %v106_v17, 4  ;;  %s2210_s7 = smov 16   ;;  %s2211_s8 = smov 3  }
  0x14   :  { %v94_v24 = vadd.f32 %v93_v16, %v92_v15  ;;  %v121_v25 = vrot.slane %v120_v18, 4  ;;  %v135_v26 = vrot.slane %v134_v19, 4  ;;  %v148_v27 = vsel %vm49_vm0, %v2292_v11, 0.0  ;;  %s2212_s9 = smov 2   ;;  %s2213_s10 = smov 1  }
  0x15   :  { %v53_v28 = vrot.slane %v52_v20, 2  ;;  %v67_v29 = vrot.slane %v66_v21, 2  ;;  %v81_v30 = vrot.slane %v80_v22, 2  ;;  %v108_v31 = vadd.f32 %v107_v23, %v106_v17  ;;  %s2214_s11 = smov 127   ;;  %s2215_s12 = smov 126  }
  0x16   :  { %v95_v32 = vrot.slane %v94_v24, 2  ;;  %v122_v33 = vadd.f32 %v121_v25, %v120_v18  ;;  %v136_v34 = vadd.f32 %v135_v26, %v134_v19  ;;  %v149_v35 = vrot.slane %v148_v27, 4  ;;  %s2216_s13 = smov 125   ;;  %s2217_s14 = smov 112  }
  0x17   :  { %v54_v36 = vadd.f32 %v53_v28, %v52_v20  ;;  %v68_v37 = vadd.f32 %v67_v29, %v66_v21  ;;  %v82_v38 = vadd.f32 %v81_v30, %v80_v22  ;;  %v109_v39 = vrot.slane %v108_v31, 2  ;;  %s2218_s15 = smov 96   ;;  %s2219_s16 = smov 80  }
  0x18   :  { %v96_v40 = vadd.f32 %v95_v32, %v94_v24  ;;  %v123_v41 = vrot.slane %v122_v33, 2  ;;  %v137_v42 = vrot.slane %v136_v34, 2  ;;  %v150_v43 = vadd.f32 %v149_v35, %v148_v27  ;;  %s386_s17 = sld [smem:[#allocation3]]  ;;  %s2860_s18 = sld [smem:[#allocation3 + $0x1]] }
  0x19   :  { %v55_v44 = vrot.slane %v54_v36, 1  ;;  %v69_v45 = vrot.slane %v68_v37, 1  ;;  %v83_v46 = vrot.slane %v82_v38, 1  ;;  %v110_v47 = vadd.f32 %v109_v39, %v108_v31  ;;  %s2880_s19 = sld [smem:[#allocation3 + $0x2]]  ;;  %s2906_s0 = sld [smem:[#allocation3 + $0x3]] }
  0x1a   :  { %v97_v48 = vrot.slane %v96_v40, 1  ;;  %v124_v49 = vadd.f32 %v123_v41, %v122_v33  ;;  %v138_v50 = vadd.f32 %v137_v42, %v136_v34  ;;  %v151_v51 = vrot.slane %v150_v43, 2  ;;  %s2925_s20 = sld [smem:[#allocation3 + $0x4]]  ;;  %s2932_s21 = sld [smem:[#allocation3 + $0x5]] }
  0x1b   :  { %v56_v52 = vadd.f32 %v55_v44, %v54_v36  ;;  %v70_v53 = vadd.f32 %v69_v45, %v68_v37  ;;  %v84_v54 = vadd.f32 %v83_v46, %v82_v38  ;;  %v111_v55 = vrot.slane %v110_v47, 1  ;;  %s2941_s22 = sld [smem:[#allocation3 + $0x6]]  ;;  %s2969_s24 = sld [smem:[#allocation3 + $0xf]] }
  0x1c   :  { %v98_v56 = vadd.f32 %v97_v48, %v96_v40  ;;  %v125_v57 = vrot.slane %v124_v49, 1  ;;  %v139_v58 = vrot.slane %v138_v50, 1  ;;  %v152_v59 = vadd.f32 %v151_v51, %v150_v43  ;;  %s2945_s23 = sld [smem:[#allocation3 + $0xe]]  ;;  %s2993_s25 = sld [smem:[#allocation3 + $0x10]] }
  0x1d   :  { %v112_v60 = vadd.f32 %v111_v55, %v110_v47  ;;  %v2304_v61 = vmul.f32 0.25, %v56_v52  ;;  %v2306_v62 = vmul.f32 0.25, %v70_v53  ;;  %v2308_v63 = vmul.f32 0.25, %v84_v54  ;;  %s3009_s26 = sld [smem:[#allocation3 + $0x11]]  ;;  %s3020_s27 = sld [smem:[#allocation3 + $0x12]] }
  0x1e   :  { %v126_v6 = vadd.f32 %v125_v57, %v124_v49  ;;  %v140_v7 = vadd.f32 %v139_v58, %v138_v50  ;;  %v153_v8 = vrot.slane %v152_v59, 1  ;;  %v2310_v12 = vmul.f32 0.25, %v98_v56  ;;  %s3033_s28 = sld [smem:[#allocation3 + $0x13]]  ;;  %s3044_s29 = sld [smem:[#allocation3 + $0x14]] }
  0x1f   :  { %4760 = vst [vmem:[#allocation6_spill] sm:$0xff] %v2306_v62  ;;  %4761 = vst [vmem:[#allocation7_spill] sm:$0xff] %v2308_v63  ;;  %v2312_v13 = vmul.f32 0.25, %v112_v60  ;;  %v346_v14 = vsel %vm4722_vm1, %v2306_v62, %v2304_v61  ;;  %vm4716_vm3 = vcmask 1043459   ;;  %vm4710_vm4 = vcmask 1044484   ;;  %s3047_s30 = sld [smem:[#allocation3 + $0x1c]] }
  0x20   :  { %4762 = vst [vmem:[#allocation8_spill] sm:$0xff] %v2310_v12  ;;  %v154_v15 = vadd.f32 %v153_v8, %v152_v59  ;;  %v2317_v16 = vmul.f32 0.25, %v126_v6  ;;  %v2319_v17 = vmul.f32 0.25, %v140_v7  ;;  %v348_v18 = vsel %vm4717_vm2, %v2308_v63, %v346_v14  ;;  %s3057_s4 = sld [smem:[#allocation3 + $0x1d]] }
  0x21   :  { %4763 = vst [vmem:[#allocation9_spill] sm:$0xff] %v2312_v13  ;;  %v350_v19 = vsel %vm4716_vm3, %v2310_v12, %v348_v18  ;;  %vm4709_vm5 = vcmask 1045509   ;;  %vm4708_vm6 = vcmask 1046534   ;;  %vm4702_vm7 = vcmask 1047559  }
  0x22   :  { %4764 = vst [vmem:[#allocation10_spill] sm:$0xff] %v2317_v16  ;;  %4765 = vst [vmem:[#allocation11_spill] sm:$0xff] %v2319_v17  ;;  %v2325_v20 = vmul.f32 0.25, %v154_v15  ;;  %v352_v21 = vsel %vm4710_vm4, %v2312_v13, %v350_v19  ;;  %v2331_v22 = vcombine.high %v2252_v1, %v2252_v1  ;;  %v2335_v23 = vcombine.high %v2257_v2, %v2257_v2 }
  0x23   :  { %v354_v24 = vsel %vm4709_vm5, %v2317_v16, %v352_v21  ;;  %v2341_v25 = vcombine.high %v2262_v3, %v2262_v3  ;;  %v2345_v26 = vcombine.high %v2267_v4, %v2267_v4  ;;  %v2349_v27 = vcombine.high %v2272_v5, %v2272_v5 }
  0x24   :  { %4766 = vst [vmem:[#allocation12_spill] sm:$0xff] %v2325_v20  ;;  %v356_v28 = vsel %vm4708_vm6, %v2319_v17, %v354_v24  ;;  %v2355_v29 = vcombine.high %v2287_v10, %v2287_v10  ;;  %v2359_v30 = vcombine.high %v2292_v11, %v2292_v11  ;;  %v57_v31 = vsel %vm49_vm0, %v2282_v9, 0.0 }
  0x25   :  { %v2365_v32 = vsel %vm4702_vm7, %v2325_v20, %v356_v28  ;;  %v58_v33 = vrot.slane %v57_v31, 4  ;;  %v71_v34 = vsel %vm49_vm0, %v2331_v22, 0.0  ;;  %v85_v35 = vsel %vm49_vm0, %v2335_v23, 0.0 }
  0x26   :  { %368 = vrot.lane.b32.xlu0 %v2365_v32, %s2208_s5  ;;  %v72_v36 = vrot.slane %v71_v34, 4  ;;  %v86_v37 = vrot.slane %v85_v35, 4  ;;  %v99_v38 = vsel %vm49_vm0, %v2341_v25, 0.0  ;;  %v113_v39 = vsel %vm49_vm0, %v2345_v26, 0.0 }
  0x27   :  { %v59_v40 = vadd.f32 %v58_v33, %v57_v31  ;;  %v100_v41 = vrot.slane %v99_v38, 4  ;;  %v114_v42 = vrot.slane %v113_v39, 4  ;;  %v127_v43 = vsel %vm49_vm0, %v2349_v27, 0.0 }
  0x28   :  { %v73_v44 = vadd.f32 %v72_v36, %v71_v34  ;;  %v87_v45 = vadd.f32 %v86_v37, %v85_v35  ;;  %v128_v46 = vrot.slane %v127_v43, 4  ;;  %v141_v47 = vsel %vm49_vm0, %v2355_v29, 0.0 }
  0x29   :  { %v60_v48 = vrot.slane %v59_v40, 2  ;;  %v101_v49 = vadd.f32 %v100_v41, %v99_v38  ;;  %v115_v50 = vadd.f32 %v114_v42, %v113_v39  ;;  %v142_v51 = vrot.slane %v141_v47, 4 }
  0x2a   :  { %477 = vrot.lane.b32.xlu0 %v2365_v32, %s2209_s6  ;;  %v74_v52 = vrot.slane %v73_v44, 2  ;;  %v88_v53 = vrot.slane %v87_v45, 2  ;;  %v129_v54 = vadd.f32 %v128_v46, %v127_v43  ;;  %v155_v55 = vsel %vm49_vm0, %v2359_v30, 0.0 }
  0x2b   :  { %v61_v56 = vadd.f32 %v60_v48, %v59_v40  ;;  %v102_v57 = vrot.slane %v101_v49, 2  ;;  %v116_v58 = vrot.slane %v115_v50, 2  ;;  %v143_v59 = vadd.f32 %v142_v51, %v141_v47 }
  0x2c   :  { %v75_v60 = vadd.f32 %v74_v52, %v73_v44  ;;  %v89_v6 = vadd.f32 %v88_v53, %v87_v45  ;;  %v130_v7 = vrot.slane %v129_v54, 2  ;;  %v156_v8 = vrot.slane %v155_v55, 4 }
  0x2d   :  { %v62_v14 = vrot.slane %v61_v56, 1  ;;  %v103_v15 = vadd.f32 %v102_v57, %v101_v49  ;;  %v117_v18 = vadd.f32 %v116_v58, %v115_v50  ;;  %v144_v19 = vrot.slane %v143_v59, 2 }
  0x2e   :  { %v76_v21 = vrot.slane %v75_v60, 1  ;;  %v90_v24 = vrot.slane %v89_v6, 1  ;;  %v131_v28 = vadd.f32 %v130_v7, %v129_v54  ;;  %v157_v31 = vadd.f32 %v156_v8, %v155_v55  ;;  %580 = vrot.lane.b32.xlu0 %v2365_v32, %s2210_s7 }
  0x2f   :  { %v63_v33 = vadd.f32 %v62_v14, %v61_v56  ;;  %v104_v34 = vrot.slane %v103_v15, 1  ;;  %v118_v35 = vrot.slane %v117_v18, 1  ;;  %v145_v36 = vadd.f32 %v144_v19, %v143_v59 }
  0x30   :  { %v77_v37 = vadd.f32 %v76_v21, %v75_v60  ;;  %v91_v38 = vadd.f32 %v90_v24, %v89_v6  ;;  %v132_v39 = vrot.slane %v131_v28, 1  ;;  %v158_v40 = vrot.slane %v157_v31, 2 }
  0x31   :  { %v105_v41 = vadd.f32 %v104_v34, %v103_v15  ;;  %v119_v42 = vadd.f32 %v118_v35, %v117_v18  ;;  %v146_v43 = vrot.slane %v145_v36, 1  ;;  %v2387_v44 = vmul.f32 0.25, %v63_v33 }
  0x32   :  { %v133_v45 = vadd.f32 %v132_v39, %v131_v28  ;;  %v159_v46 = vadd.f32 %v158_v40, %v157_v31  ;;  %v2389_v47 = vmul.f32 0.25, %v77_v37  ;;  %v2391_v48 = vmul.f32 0.25, %v91_v38  ;;  %679 = vrot.lane.b32.xlu0 %v2365_v32, %s2211_s8 }
  0x33   :  { %v147_v49 = vadd.f32 %v146_v43, %v145_v36  ;;  %v2395_v50 = vmul.f32 0.25, %v105_v41  ;;  %v2397_v51 = vmul.f32 0.25, %v119_v42  ;;  %v4666_v21 = vlaneseq }
  0x34   :  { %4767 = vst [vmem:[#allocation13_spill] sm:$0xff] %v2389_v47  ;;  %4768 = vst [vmem:[#allocation14_spill] sm:$0xff] %v2391_v48  ;;  %v160_v52 = vrot.slane %v159_v46, 1  ;;  %v2399_v53 = vmul.f32 0.25, %v133_v45  ;;  %v359_v54 = vsel %vm4722_vm1, %v2389_v47, %v2387_v44  ;;  %v402_v13 = vstv %s2860_s18  ;;  %s3258_s18 = sld [smem:[#allocation3 + $0x8]] }
  0x35   :  { %4769 = vst [vmem:[#allocation15_spill] sm:$0xff] %v2395_v50  ;;  %4770 = vst [vmem:[#allocation16_spill] sm:$0xff] %v2397_v51  ;;  %v2404_v55 = vmul.f32 0.25, %v147_v49  ;;  %v360_v56 = vsel %vm4717_vm2, %v2391_v48, %v359_v54  ;;  %v2467_v28 = vand.u32 127, %v4666_v21  ;;  %v417_v48 = vstv %s2880_s19  ;;  %s3262_s19 = sld [smem:[#allocation3 + $0x7]] }
  0x36   :  { %4771 = vst [vmem:[#allocation17_spill] sm:$0xff] %v2399_v53  ;;  %v161_v57 = vadd.f32 %v160_v52, %v159_v46  ;;  %v361_v58 = vsel %vm4716_vm3, %v2395_v50, %v360_v56  ;;  %693 = vrot.lane.b32.xlu0 %v2365_v32, %s2212_s9 }
  0x37   :  { %4772 = vst [vmem:[#allocation18_spill] sm:$0xff] %v2404_v55  ;;  %v362_v59 = vsel %vm4710_vm4, %v2397_v51, %v361_v58  ;;  %vm4729_vm8 = vcmp.lt.s32.totalorder %v2467_v28, 48  ;;  %vm4724_vm9 = vcmp.lt.s32.totalorder %v2467_v28, 32  ;;  %vm4679_vm10 = vcmp.lt.s32.totalorder %v2467_v28, 112 }
  0x38   :  { %v2414_v60 = vmul.f32 0.25, %v161_v57  ;;  %v363_v6 = vsel %vm4709_vm5, %v2399_v53, %v362_v59  ;;  %vm4727_vm11 = vcmp.lt.s32.totalorder %v2467_v28, 16  ;;  %vm4701_vm12 = vcmp.lt.s32.totalorder %v2467_v28, 96 }
  0x39   :  { %v364_v7 = vsel %vm4708_vm6, %v2404_v55, %v363_v6  ;;  %vm4728_vm13 = vcmp.ge.s32.totalorder %v2467_v28, 48  ;;  %vm4723_vm15 = vcmp.ge.s32.totalorder %v2467_v28, 32 }
  0x3a   :  { %4773 = vst [vmem:[#allocation19_spill] sm:$0xff] %v2414_v60  ;;  %v2422_v8 = vsel %vm4702_vm7, %v2414_v60, %v364_v7  ;;  %707 = vrot.lane.b32.xlu0 %v2365_v32, %s2213_s10 }
  0x3b   :  { %479 = vrot.lane.b32.xlu1 %v2422_v8, %s2209_s6 }
  0x3e   :  { %370 = vrot.lane.b32.xlu0 %v2422_v8, %s2208_s5 }
  0x3f   :  { %582 = vrot.lane.b32.xlu1 %v2422_v8, %s2210_s7 }
  0x42   :  { %773 = vrot.lane.b32.xlu0 %v2365_v32, %s2214_s11 }
  0x43   :  { %681 = vrot.lane.b32.xlu1 %v2422_v8, %s2211_s8 }
  0x46   :  { %787 = vrot.lane.b32.xlu0 %v2365_v32, %s2215_s12 }
  0x47   :  { %695 = vrot.lane.b32.xlu1 %v2422_v8, %s2212_s9 }
  0x4a   :  { %801 = vrot.lane.b32.xlu0 %v2365_v32, %s2216_s13 }
  0x4b   :  { %709 = vrot.lane.b32.xlu1 %v2422_v8, %s2213_s10 }
  0x4e   :  { %821 = vrot.lane.b32.xlu0 %v2365_v32, %s2217_s14 }
  0x4f   :  { %775 = vrot.lane.b32.xlu1 %v2422_v8, %s2214_s11 }
  0x52   :  { %924 = vrot.lane.b32.xlu0 %v2365_v32, %s2218_s15 }
  0x53   :  { %789 = vrot.lane.b32.xlu1 %v2422_v8, %s2215_s12 }
  0x57   :  { %803 = vrot.lane.b32.xlu1 %v2422_v8, %s2216_s13 }
  0x5b   :  { %823 = vrot.lane.b32.xlu1 %v2422_v8, %s2217_s14 }
  0x5f   :  { %926 = vrot.lane.b32.xlu1 %v2422_v8, %s2218_s15 }
  0x98   :  { %v369_v14 = vpop.permute.xlu0 %368 }
  0x9c   :  { %v2458_v15 = vpop.permute.xlu0 %477 }
  0xa0   :  { %v2460_v18 = vpop.permute.xlu0 %580 }
  0xa4   :  { %v2462_v19 = vpop.permute.xlu0 %679 }
  0xa8   :  { %v2464_v24 = vpop.permute.xlu0 %693 }
  0xac   :  { %v2469_v31 = vpop.permute.xlu0 %707 }
  0xad   :  { %4774 = vst [vmem:[#allocation20_spill] sm:$0xff] %v2469_v31  ;;  %v2471_v33 = vpop.permute.xlu1 %479 }
  0xae   :  { %v2513_v46 = vsel %vm4724_vm9, %v2458_v15, %v2471_v33 }
  0xb0   :  { %v371_v34 = vpop.permute.xlu0 %370 }
  0xb1   :  { %v2474_v35 = vpop.permute.xlu1 %582  ;;  %v2478_v36 = vsel %vm4729_vm8, %v369_v14, %v371_v34  ;;  %v374_v7 = vsel %vm4729_vm8, %v371_v34, %v369_v14  ;;  %v2594_v14 = vadd.s32 128, %v2467_v28  ;;  %v185_v34 = vsel %vm49_vm0, %v2282_v9, -inf }
  0xb2   :  { %379 = vrot.lane.b32.xlu1 %v2478_v36, %s2211_s8  ;;  %v2549_v57 = vsel %vm4727_vm11, %v2460_v18, %v2474_v35  ;;  %v2575_v21 = vsel %vm4728_vm13, %v374_v7, 0.0  ;;  %v199_v7 = vsel %vm49_vm0, %v2331_v22, -inf  ;;  %v186_v9 = vrot.slane %v185_v34, 4 }
  0xb3   :  { %4783 = vst [vmem:[#allocation29_spill] sm:$0xff] %v2594_v14  ;;  %vm4677_vm14 = vcmp.lt.s32.totalorder %v2594_v14, 240  ;;  %v200_v22 = vrot.slane %v199_v7, 4  ;;  %vm462_vm13 = vcmp.lt.s32.totalorder %v2467_v28, 125 }
  0xb4   :  { %v2488_v39 = vpop.permute.xlu0 %773  ;;  %v187_v20 = vmax.f32 %v185_v34, %v186_v9  ;;  %v255_v34 = vsel %vm49_vm0, %v2349_v27, -inf  ;;  %v283_v27 = vsel %vm49_vm0, %v2359_v30, -inf  ;;  %v192_v30 = vsel %vm49_vm0, %v2252_v1, -inf }
  0xb5   :  { %v2482_v37 = vpop.permute.xlu1 %681  ;;  %4775 = vst [vmem:[#allocation21_spill] sm:$0xff] %v2488_v39  ;;  %v256_v16 = vrot.slane %v255_v34, 4  ;;  %v193_v1 = vrot.slane %v192_v30, 4 }
  0xb6   :  { %394 = vrot.lane.b32.xlu1 %v2478_v36, %s2212_s9 }
  0xb8   :  { %v2496_v41 = vpop.permute.xlu0 %787 }
  0xb9   :  { %v2486_v38 = vpop.permute.xlu1 %695  ;;  %4777 = vst [vmem:[#allocation23_spill] sm:$0xff] %v2496_v41  ;;  %v188_v41 = vrot.slane %v187_v20, 2 }
  0xba   :  { %409 = vrot.lane.b32.xlu1 %v2478_v36, %s2213_s10 }
  0xbc   :  { %v2504_v45 = vpop.permute.xlu0 %801 }
  0xbd   :  { %v2492_v40 = vpop.permute.xlu1 %709  ;;  %4780 = vst [vmem:[#allocation26_spill] sm:$0xff] %v2504_v45  ;;  %v483_v45 = vsel %vm4724_vm9, %v2471_v33, %v2458_v15  ;;  %v227_v15 = vsel %vm49_vm0, %v2341_v25, -inf }
  0xbe   :  { %4776 = vst [vmem:[#allocation22_spill] sm:$0xff] %v2492_v40  ;;  %430 = vrot.lane.b32.xlu1 %v2478_v36, %s2214_s11  ;;  %v228_v55 = vrot.slane %v227_v15, 4 }
  0xc0   :  { %v822_v52 = vpop.permute.xlu0 %821  ;;  %v229_v17 = vmax.f32 %v227_v15, %v228_v55 }
  0xc1   :  { %v2498_v42 = vpop.permute.xlu1 %775 }
  0xc2   :  { %4778 = vst [vmem:[#allocation24_spill] sm:$0xff] %v2498_v42  ;;  %445 = vrot.lane.b32.xlu1 %v2478_v36, %s2215_s12  ;;  %v230_v53 = vrot.slane %v229_v17, 2 }
  0xc4   :  { %v2554_v59 = vpop.permute.xlu0 %924 }
  0xc5   :  { %v2502_v43 = vpop.permute.xlu1 %789 }
  0xc6   :  { %4779 = vst [vmem:[#allocation25_spill] sm:$0xff] %v2502_v43  ;;  %460 = vrot.lane.b32.xlu1 %v2478_v36, %s2216_s13 }
  0xc9   :  { %v2515_v49 = vpop.permute.xlu1 %803 }
  0xca   :  { %4781 = vst [vmem:[#allocation27_spill] sm:$0xff] %v2515_v49  ;;  %488 = vrot.lane.b32.xlu1 %v2513_v46, %s2211_s8  ;;  %v213_v49 = vsel %vm49_vm0, %v2335_v23, -inf  ;;  %v201_v23 = vmax.f32 %v199_v7, %v200_v22  ;;  %v189_v7 = vmax.f32 %v187_v20, %v188_v41 }
  0xcb   :  { %v214_v33 = vrot.slane %v213_v49, 4 }
  0xcc   :  { %v202_v43 = vrot.slane %v201_v23, 2  ;;  %v190_v15 = vrot.slane %v189_v7, 1 }
  0xcd   :  { %v824_v54 = vpop.permute.xlu1 %823 }
  0xce   :  { %v2522_v56 = vsel %vm4679_vm10, %v822_v52, %v824_v54  ;;  %502 = vrot.lane.b32.xlu1 %v2513_v46, %s2212_s9  ;;  %v827_v60 = vsel %vm4679_vm10, %v824_v54, %v822_v52  ;;  %v2620_v54 = vsel %vm4723_vm15, %v483_v45, 0.0  ;;  %v215_v45 = vmax.f32 %v213_v49, %v214_v33 }
  0xcf   :  { %830 = vrot.lane.b32.xlu0 %v2522_v56, %s2211_s8  ;;  %v2616_v52 = vsel %vm4677_vm14, %v827_v60, 0.0  ;;  %v241_v60 = vsel %vm49_vm0, %v2345_v26, -inf  ;;  %v203_v9 = vmax.f32 %v201_v23, %v202_v43  ;;  %v269_v49 = vsel %vm49_vm0, %v2355_v29, -inf }
  0xd0   :  { %4784 = vst [vmem:[#allocation30_spill] sm:$0xff] %v2616_v52  ;;  %v242_v25 = vrot.slane %v241_v60, 4  ;;  %v216_v26 = vrot.slane %v215_v45, 2  ;;  %v270_v41 = vrot.slane %v269_v49, 4  ;;  %v231_v43 = vmax.f32 %v229_v17, %v230_v53 }
  0xd1   :  { %v2551_v58 = vpop.permute.xlu1 %926  ;;  %v204_v33 = vrot.slane %v203_v9, 1  ;;  %v257_v23 = vmax.f32 %v255_v34, %v256_v16  ;;  %vm4700_vm14 = vcmp.lt.s32.totalorder %v2594_v14, 224  ;;  %vm4725_vm10 = vcmp.ge.s32.totalorder %v2467_v28, 16 }
  0xd2   :  { %516 = vrot.lane.b32.xlu1 %v2513_v46, %s2213_s10  ;;  %v2564_v6 = vsel %vm4701_vm12, %v2554_v59, %v2551_v58  ;;  %v243_v22 = vmax.f32 %v241_v60, %v242_v25  ;;  %v217_v55 = vmax.f32 %v215_v45, %v216_v26  ;;  %v284_v60 = vrot.slane %v283_v27, 4 }
  0xd3   :  { %844 = vrot.lane.b32.xlu0 %v2522_v56, %s2212_s9  ;;  %4782 = vst [vmem:[#allocation28_spill] sm:$0xff] %v2564_v6  ;;  %v178_v45 = vsel %vm49_vm0, %v2247_v0, -inf  ;;  %v2656_v25 = vmax.f32 %v189_v7, %v190_v15  ;;  %v2658_v26 = vmax.f32 %v203_v9, %v204_v33  ;;  %v271_v16 = vmax.f32 %v269_v49, %v270_v41 }
  0xd4   :  { %v244_v20 = vrot.slane %v243_v22, 2  ;;  %v218_v29 = vrot.slane %v217_v55, 1  ;;  %v232_v53 = vrot.slane %v231_v43, 1  ;;  %v258_v34 = vrot.slane %v257_v23, 2 }
  0xd5   :  { %4785 = vst [vmem:[#allocation31_spill] sm:$0xff] %v2656_v25  ;;  %4786 = vst [vmem:[#allocation32_spill] sm:$0xff] %v2658_v26  ;;  %v930_v51 = vsel %vm4701_vm12, %v2551_v58, %v2554_v59  ;;  %v179_v0 = vrot.slane %v178_v45, 4  ;;  %v206_v7 = vsel %vm49_vm0, %v2257_v2, -inf  ;;  %v586_v9 = vsel %vm4727_vm11, %v2474_v35, %v2460_v18 }
  0xd6   :  { %536 = vrot.lane.b32.xlu1 %v2513_v46, %s2214_s11  ;;  %v245_v17 = vmax.f32 %v243_v22, %v244_v20  ;;  %v2676_v22 = vmax.f32 %v217_v55, %v218_v29  ;;  %v285_v58 = vmax.f32 %v283_v27, %v284_v60  ;;  %v272_v49 = vrot.slane %v271_v16, 2 }
  0xd7   :  { %858 = vrot.lane.b32.xlu0 %v2522_v56, %s2213_s10  ;;  %v1149_v15 = vsel %vm4722_vm1, %v2658_v26, %v2656_v25  ;;  %v2683_v2 = vsel %vm4700_vm14, %v930_v51, 0.0  ;;  %v259_v33 = vmax.f32 %v257_v23, %v258_v34  ;;  %v207_v20 = vrot.slane %v206_v7, 4 }
  0xd8   :  { %4787 = vst [vmem:[#allocation33_spill] sm:$0xff] %v2676_v22  ;;  %v246_v59 = vrot.slane %v245_v17, 1  ;;  %4788 = vst [vmem:[#allocation34_spill] sm:$0xff] %v2683_v2  ;;  %v220_v18 = vsel %vm49_vm0, %v2262_v3, -inf  ;;  %v2689_v35 = vsel %vm4725_vm10, %v586_v9, 0.0  ;;  %v2693_v55 = vmax.f32 %v231_v43, %v232_v53 }
  0xd9   :  { %v180_v27 = vmax.f32 %v178_v45, %v179_v0  ;;  %v194_v41 = vmax.f32 %v192_v30, %v193_v1  ;;  %v286_v51 = vrot.slane %v285_v58, 2  ;;  %v1150_v23 = vsel %vm4717_vm2, %v2676_v22, %v1149_v15 }
  0xda   :  { %550 = vrot.lane.b32.xlu1 %v2513_v46, %s2215_s12  ;;  %4789 = vst [vmem:[#allocation35_spill] sm:$0xff] %v2693_v55  ;;  %v273_v29 = vmax.f32 %v271_v16, %v272_v49  ;;  %v221_v3 = vrot.slane %v220_v18, 4  ;;  %v234_v60 = vsel %vm49_vm0, %v2267_v4, -inf  ;;  %v2701_v34 = vmax.f32 %v245_v17, %v246_v59 }
  0xdb   :  { %878 = vrot.lane.b32.xlu0 %v2522_v56, %s2214_s11  ;;  %v260_v9 = vrot.slane %v259_v33, 1  ;;  %v208_v26 = vmax.f32 %v206_v7, %v207_v20  ;;  %v1151_v43 = vsel %vm4716_vm3, %v2693_v55, %v1150_v23  ;;  %v181_v45 = vrot.slane %v180_v27, 2 }
  0xdc   :  { %4790 = vst [vmem:[#allocation36_spill] sm:$0xff] %v2701_v34  ;;  %v195_v30 = vrot.slane %v194_v41, 2  ;;  %v287_v16 = vmax.f32 %v285_v58, %v286_v51  ;;  %v235_v53 = vrot.slane %v234_v60, 4  ;;  %v248_v4 = vsel %vm49_vm0, %v2272_v5, -inf }
  0xdd   :  { %v274_v17 = vrot.slane %v273_v29, 1  ;;  %v222_v0 = vmax.f32 %v220_v18, %v221_v3  ;;  %v2711_v1 = vmax.f32 %v259_v33, %v260_v9  ;;  %v1152_v7 = vsel %vm4710_vm4, %v2701_v34, %v1151_v43 }
  0xde   :  { %564 = vrot.lane.b32.xlu1 %v2513_v46, %s2216_s13  ;;  %v209_v59 = vrot.slane %v208_v26, 2  ;;  %v182_v49 = vmax.f32 %v180_v27, %v181_v45  ;;  %v196_v15 = vmax.f32 %v194_v41, %v195_v30  ;;  %v249_v20 = vrot.slane %v248_v4, 4 }
  0xdf   :  { %892 = vrot.lane.b32.xlu0 %v2522_v56, %s2215_s12  ;;  %4791 = vst [vmem:[#allocation37_spill] sm:$0xff] %v2711_v1  ;;  %v262_v58 = vsel %vm49_vm0, %v2287_v10, -inf  ;;  %v288_v5 = vrot.slane %v287_v16, 1  ;;  %v236_v18 = vmax.f32 %v234_v60, %v235_v53  ;;  %v2721_v33 = vmax.f32 %v273_v29, %v274_v17 }
  0xe0   :  { %v223_v51 = vrot.slane %v222_v0, 2  ;;  %v1153_v23 = vsel %vm4709_vm5, %v2711_v1, %v1152_v7  ;;  %v210_v3 = vmax.f32 %v208_v26, %v209_v59  ;;  %v263_v9 = vrot.slane %v262_v58, 4 }
  0xe1   :  { %4792 = vst [vmem:[#allocation38_spill] sm:$0xff] %v2721_v33  ;;  %v276_v27 = vsel %vm49_vm0, %v2292_v11, -inf  ;;  %v183_v10 = vrot.slane %v182_v49, 1  ;;  %v197_v41 = vrot.slane %v196_v15, 1  ;;  %v250_v43 = vmax.f32 %v248_v4, %v249_v20 }
  0xe2   :  { %591 = vrot.lane.b32.xlu1 %v2549_v57, %s2211_s8  ;;  %v2731_v29 = vmax.f32 %v287_v16, %v288_v5  ;;  %v237_v60 = vrot.slane %v236_v18, 2  ;;  %v1154_v26 = vsel %vm4708_vm6, %v2721_v33, %v1153_v23  ;;  %v224_v30 = vmax.f32 %v222_v0, %v223_v51 }
  0xe3   :  { %906 = vrot.lane.b32.xlu0 %v2522_v56, %s2216_s13  ;;  %v277_v53 = vrot.slane %v276_v27, 4  ;;  %v211_v11 = vrot.slane %v210_v3, 1  ;;  %v264_v17 = vmax.f32 %v262_v58, %v263_v9  ;;  %v2739_v7 = vmax.f32 %v182_v49, %v183_v10 }
  0xe4   :  { %4793 = vst [vmem:[#allocation39_spill] sm:$0xff] %v2731_v29  ;;  %v2741_v4 = vmax.f32 %v196_v15, %v197_v41  ;;  %v251_v59 = vrot.slane %v250_v43, 2  ;;  %v2747_v16 = vsel %vm4702_vm7, %v2731_v29, %v1154_v26  ;;  %v238_v20 = vmax.f32 %v236_v18, %v237_v60 }
  0xe5   :  { %4794 = vst [vmem:[#allocation40_spill] sm:$0xff] %v2739_v7  ;;  %v225_v5 = vrot.slane %v224_v30, 1  ;;  %v278_v58 = vmax.f32 %v276_v27, %v277_v53  ;;  %v2751_v51 = vmax.f32 %v210_v3, %v211_v11  ;;  %v265_v23 = vrot.slane %v264_v17, 2 }
  0xe6   :  { %605 = vrot.lane.b32.xlu1 %v2549_v57, %s2212_s9  ;;  %4795 = vst [vmem:[#allocation41_spill] sm:$0xff] %v2741_v4  ;;  %v252_v49 = vmax.f32 %v250_v43, %v251_v59  ;;  %v1142_v15 = vsel %vm4722_vm1, %v2741_v4, %v2739_v7  ;;  %v239_v9 = vrot.slane %v238_v20, 1  ;;  %v2863_v25 = vand.u32 15, %v2467_v28 }
  0xe7   :  { %933 = vrot.lane.b32.xlu0 %v2564_v6, %s2211_s8  ;;  %4796 = vst [vmem:[#allocation42_spill] sm:$0xff] %v2751_v51  ;;  %v2762_v10 = vmax.f32 %v224_v30, %v225_v5  ;;  %v279_v27 = vrot.slane %v278_v58, 2  ;;  %v266_v3 = vmax.f32 %v264_v17, %v265_v23  ;;  %v1143_v41 = vsel %vm4717_vm2, %v2751_v51, %v1142_v15 }
  0xe8   :  { %v253_v43 = vrot.slane %v252_v49, 1  ;;  %v2770_v60 = vmax.f32 %v238_v20, %v239_v9  ;;  %v2866_v7 = vand.u32 15, %v2594_v14  ;;  %vm381_vm0 = vcmp.lt.s32.totalorder %v2467_v28, 3 }
  0xe9   :  { %4797 = vst [vmem:[#allocation43_spill] sm:$0xff] %v2762_v10  ;;  %v280_v53 = vmax.f32 %v278_v58, %v279_v27  ;;  %v1144_v30 = vsel %vm4716_vm3, %v2762_v10, %v1143_v41  ;;  %v267_v11 = vrot.slane %v266_v3, 1  ;;  %vm396_vm14 = vcmp.lt.s32.totalorder %v2467_v28, 2 }
  0xea   :  { %619 = vrot.lane.b32.xlu1 %v2549_v57, %s2213_s10  ;;  %4798 = vst [vmem:[#allocation44_spill] sm:$0xff] %v2770_v60  ;;  %v2776_v17 = vmax.f32 %v252_v49, %v253_v43  ;;  %v1145_v59 = vsel %vm4710_vm4, %v2770_v60, %v1144_v30  ;;  %vm295_vm12 = vcmp.ge.s32.totalorder %v2863_v25, 3  ;;  %vm411_vm4 = vcmp.lt.s32.totalorder %v2467_v28, 1 }
  0xeb   :  { %392 = vrot.lane.b32.xlu0 %v2575_v21, %s2212_s9  ;;  %v281_v20 = vrot.slane %v280_v53, 1  ;;  %v2786_v58 = vmax.f32 %v266_v3, %v267_v11  ;;  %vm305_vm3 = vcmp.ge.s32.totalorder %v2863_v25, 1  ;;  %vm306_vm2 = vcmp.ge.s32.totalorder %v2866_v7, 1 }
  0xec   :  { %4799 = vst [vmem:[#allocation45_spill] sm:$0xff] %v2776_v17  ;;  %v1146_v23 = vsel %vm4709_vm5, %v2776_v17, %v1145_v59  ;;  %vm302_vm5 = vcmp.ge.s32.totalorder %v2866_v7, 2  ;;  %vm432_vm1 = vcmp.lt.s32.totalorder %v2467_v28, 127  ;;  %vm4759_vm15 = vcmp.lt.s32.totalorder %v2863_v25, 15 }
  0xed   :  { %4800 = vst [vmem:[#allocation46_spill] sm:$0xff] %v2786_v58  ;;  %v1147_v15 = vsel %vm4708_vm6, %v2786_v58, %v1146_v23  ;;  %vm301_vm6 = vcmp.ge.s32.totalorder %v2863_v25, 2  ;;  %vm4726_vm9 = vcmp.lt.s32.totalorder %v2866_v7, 15  ;;  %vm4730_vm10 = vcmp.lt.s32.totalorder %v2467_v28, 126 }
  0xee   :  { %639 = vrot.lane.b32.xlu1 %v2549_v57, %s2214_s11  ;;  %vm4739_vm11 = vcmp.lt.s32.totalorder %v2866_v7, 14  ;;  %vm4742_vm8 = vcmp.lt.s32.totalorder %v2863_v25, 13 }
  0xef   :  { %407 = vrot.lane.b32.xlu0 %v2575_v21, %s2213_s10 }
  0xf2   :  { %653 = vrot.lane.b32.xlu1 %v2549_v57, %s2215_s12 }
  0xf3   :  { %428 = vrot.lane.b32.xlu0 %v2575_v21, %s2214_s11 }
  0xf6   :  { %667 = vrot.lane.b32.xlu1 %v2549_v57, %s2216_s13 }
  0xf7   :  { %443 = vrot.lane.b32.xlu0 %v2575_v21, %s2215_s12 }
  0xfa   :  { %377 = vrot.lane.b32.xlu1 %v2575_v21, %s2211_s8 }
  0xfb   :  { %458 = vrot.lane.b32.xlu0 %v2575_v21, %s2216_s13 }
  0xfe   :  { %832 = vrot.lane.b32.xlu1 %v2616_v52, %s2211_s8 }
  0xff   :  { %486 = vrot.lane.b32.xlu0 %v2620_v54, %s2211_s8 }
 0x102   :  { %846 = vrot.lane.b32.xlu1 %v2616_v52, %s2212_s9 }
 0x103   :  { %500 = vrot.lane.b32.xlu0 %v2620_v54, %s2212_s9 }
 0x106   :  { %860 = vrot.lane.b32.xlu1 %v2616_v52, %s2213_s10 }
 0x107   :  { %514 = vrot.lane.b32.xlu0 %v2620_v54, %s2213_s10 }
 0x10a   :  { %880 = vrot.lane.b32.xlu1 %v2616_v52, %s2214_s11 }
 0x10b   :  { %534 = vrot.lane.b32.xlu0 %v2620_v54, %s2214_s11 }
 0x10e   :  { %894 = vrot.lane.b32.xlu1 %v2616_v52, %s2215_s12 }
 0x10f   :  { %548 = vrot.lane.b32.xlu0 %v2620_v54, %s2215_s12 }
 0x112   :  { %908 = vrot.lane.b32.xlu1 %v2616_v52, %s2216_s13 }
 0x113   :  { %562 = vrot.lane.b32.xlu0 %v2620_v54, %s2216_s13 }
 0x116   :  { %935 = vrot.lane.b32.xlu1 %v2683_v2, %s2211_s8 }
 0x117   :  { %589 = vrot.lane.b32.xlu0 %v2689_v35, %s2211_s8 }
 0x11a   :  { %949 = vrot.lane.b32.xlu1 %v2683_v2, %s2212_s9 }
 0x11b   :  { %603 = vrot.lane.b32.xlu0 %v2689_v35, %s2212_s9 }
 0x11e   :  { %963 = vrot.lane.b32.xlu1 %v2683_v2, %s2213_s10 }
 0x11f   :  { %617 = vrot.lane.b32.xlu0 %v2689_v35, %s2213_s10 }
 0x122   :  { %983 = vrot.lane.b32.xlu1 %v2683_v2, %s2214_s11 }
 0x123   :  { %637 = vrot.lane.b32.xlu0 %v2689_v35, %s2214_s11 }
 0x124   :  { %v2733_v45 = vpop.permute.xlu1 %379 }
 0x126   :  { %997 = vrot.lane.b32.xlu1 %v2683_v2, %s2215_s12 }
 0x127   :  { %651 = vrot.lane.b32.xlu0 %v2689_v35, %s2215_s12 }
 0x128   :  { %v2749_v0 = vpop.permute.xlu1 %394 }
 0x12a   :  { %1160 = vrot.lane.b32.xlu1 %v2747_v16, %s2208_s5 }
 0x12b   :  { %665 = vrot.lane.b32.xlu0 %v2689_v35, %s2216_s13 }
 0x12c   :  { %v2760_v18 = vpop.permute.xlu1 %409 }
 0x12e   :  { %1011 = vrot.lane.b32.xlu1 %v2683_v2, %s2216_s13 }
 0x12f   :  { %947 = vrot.lane.b32.xlu0 %v2564_v6, %s2212_s9 }
 0x130   :  { %v2772_v26 = vpop.permute.xlu1 %430 }
 0x132   :  { %1029 = vrot.lane.b32.xlu1 %v2422_v8, %s2219_s16  ;;  %v2794_v8 = vmax.f32 %v280_v53, %v281_v20 }
 0x133   :  { %961 = vrot.lane.b32.xlu0 %v2564_v6, %s2213_s10 }
 0x134   :  { %v2784_v5 = vpop.permute.xlu1 %445  ;;  %4801 = vst [vmem:[#allocation47_spill] sm:$0xff] %v2794_v8  ;;  %v2806_v9 = vsel %vm4702_vm7, %v2794_v8, %v1147_v15  ;;  %vm296_vm7 = vcmp.ge.s32.totalorder %v2866_v7, 3 }
 0x136   :  { %1356 = vrot.lane.b32.xlu1 %v2747_v16, %s2210_s7 }
 0x137   :  { %981 = vrot.lane.b32.xlu0 %v2564_v6, %s2214_s11 }
 0x138   :  { %v2796_v49 = vpop.permute.xlu1 %460 }
 0x13a   :  { %1258 = vrot.lane.b32.xlu1 %v2747_v16, %s2209_s6 }
 0x13b   :  { %995 = vrot.lane.b32.xlu0 %v2564_v6, %s2215_s12 }
 0x13c   :  { %v2808_v27 = vpop.permute.xlu1 %488 }
 0x13f   :  { %1158 = vrot.lane.b32.xlu0 %v2806_v9, %s2208_s5  ;;  %s3066_s5 = sld [smem:[#allocation3 + $0x1e]] }
 0x140   :  { %v2812_v3 = vpop.permute.xlu1 %502 }
 0x141   :  { %v2814_v41 = vpop.permute.xlu0 %830 }
 0x143   :  { %1009 = vrot.lane.b32.xlu0 %v2564_v6, %s2216_s13 }
 0x144   :  { %v2818_v43 = vpop.permute.xlu1 %516 }
 0x145   :  { %v2820_v53 = vpop.permute.xlu0 %844 }
 0x147   :  { %1027 = vrot.lane.b32.xlu0 %v2365_v32, %s2219_s16 }
 0x148   :  { %v2824_v30 = vpop.permute.xlu1 %536 }
 0x149   :  { %v2826_v11 = vpop.permute.xlu0 %858 }
 0x14b   :  { %1354 = vrot.lane.b32.xlu0 %v2806_v9, %s2210_s7  ;;  %s3242_s7 = sld [smem:[#allocation3 + $0x15]] }
 0x14c   :  { %v2830_v59 = vpop.permute.xlu1 %550 }
 0x14d   :  { %v2832_v20 = vpop.permute.xlu0 %878 }
 0x14e   :  { %4802 = vst [vmem:[#allocation48_spill] sm:$0xff] %v2832_v20 }
 0x14f   :  { %1256 = vrot.lane.b32.xlu0 %v2806_v9, %s2209_s6  ;;  %s3080_s6 = sld [smem:[#allocation3 + $0x1f]] }
 0x150   :  { %v2836_v23 = vpop.permute.xlu1 %564 }
 0x151   :  { %v2838_v15 = vpop.permute.xlu0 %892 }
 0x152   :  { %4803 = vst [vmem:[#allocation49_spill] sm:$0xff] %v2838_v15 }
 0x154   :  { %v2840_v29 = vpop.permute.xlu1 %591 }
 0x155   :  { %v2842_v32 = vpop.permute.xlu0 %906 }
 0x156   :  { %4804 = vst [vmem:[#allocation50_spill] sm:$0xff] %v2842_v32 }
 0x158   :  { %v2844_v8 = vpop.permute.xlu1 %605 }
 0x159   :  { %v2846_v33 = vpop.permute.xlu0 %933 }
 0x15a   :  { %4805 = vst [vmem:[#allocation51_spill] sm:$0xff] %v2846_v33 }
 0x15c   :  { %v2848_v58 = vpop.permute.xlu1 %619 }
 0x15d   :  { %v393_v1 = vpop.permute.xlu0 %392 }
 0x15e   :  { %v397_v15 = vsel %vm396_vm14, %v393_v1, %v2749_v0  ;;  %v398_v52 = vsel %vm396_vm14, %v2749_v0, %v393_v1 }
 0x15f   :  { %v399_v1 = vsel %vm301_vm6, %v398_v52, 0.0  ;;  %v400_v0 = vsel %vm302_vm5, %v397_v15, 0.0 }
 0x160   :  { %v2850_v17 = vpop.permute.xlu1 %639  ;;  %v403_v52 = vmul.f32 %v402_v13, %v399_v1  ;;  %v404_v15 = vmul.f32 %v402_v13, %v400_v0  ;;  %v423_v13 = vstv %s2906_s0  ;;  %s3264_s0 = sld [smem:[#allocation3 + $0x9]] }
 0x161   :  { %v408_v34 = vpop.permute.xlu0 %407 }
 0x164   :  { %v2852_v60 = vpop.permute.xlu1 %653 }
 0x165   :  { %v429_v55 = vpop.permute.xlu0 %428 }
 0x166   :  { %v433_v1 = vsel %vm432_vm1, %v429_v55, %v2772_v26 }
 0x168   :  { %v2854_v10 = vpop.permute.xlu1 %667 }
 0x169   :  { %v2856_v22 = vpop.permute.xlu0 %443 }
 0x16c   :  { %v378_v51 = vpop.permute.xlu1 %377 }
 0x16d   :  { %v2858_v4 = vpop.permute.xlu0 %458  ;;  %v382_v33 = vsel %vm381_vm0, %v378_v51, %v2733_v45  ;;  %v383_v32 = vsel %vm381_vm0, %v2733_v45, %v378_v51  ;;  %v387_v45 = vstv %s386_s17  ;;  %s3254_s17 = sld [smem:[#allocation3 + $0x19]] }
 0x16e   :  { %v384_v51 = vsel %vm295_vm12, %v383_v32, 0.0  ;;  %v385_v42 = vsel %vm296_vm7, %v382_v33, 0.0  ;;  %v412_v33 = vsel %vm411_vm4, %v408_v34, %v2760_v18  ;;  %v413_v32 = vsel %vm411_vm4, %v2760_v18, %v408_v34 }
 0x16f   :  { %v388_v50 = vmul.f32 %v387_v45, %v384_v51  ;;  %v389_v31 = vmul.f32 %v387_v45, %v385_v42  ;;  %v414_v63 = vsel %vm305_vm3, %v413_v32, 0.0  ;;  %v415_v34 = vsel %vm306_vm2, %v412_v33, 0.0 }
 0x170   :  { %v2868_v2 = vpop.permute.xlu1 %832  ;;  %v418_v47 = vmul.f32 %v417_v48, %v414_v63  ;;  %v419_v62 = vmul.f32 %v417_v48, %v415_v34  ;;  %v424_v48 = vmul.f32 %v423_v13, %v2575_v21  ;;  %v425_v33 = vmul.f32 %v423_v13, %v2478_v36 }
 0x171   :  { %v2871_v6 = vpop.permute.xlu0 %486  ;;  %v405_v42 = vadd.f32 %v403_v52, %v388_v50  ;;  %v406_v18 = vadd.f32 %v404_v15, %v389_v31  ;;  %v434_v50 = vsel %vm432_vm1, %v2772_v26, %v429_v55  ;;  %v438_v55 = vstv %s2925_s20  ;;  %s3266_s20 = sld [smem:[#allocation3 + $0x1a]] }
 0x172   :  { %v448_v32 = vsel %vm4730_vm10, %v2856_v22, %v2784_v5  ;;  %v449_v21 = vsel %vm4730_vm10, %v2784_v5, %v2856_v22  ;;  %v463_v13 = vsel %vm462_vm13, %v2858_v4, %v2796_v49  ;;  %vm4731_vm10 = vcmp.lt.s32.totalorder %v2866_v7, 13 }
 0x173   :  { %v420_v31 = vadd.f32 %v418_v47, %v405_v42  ;;  %v421_v0 = vadd.f32 %v419_v62, %v406_v18  ;;  %v435_v62 = vsel %vm4759_vm15, %v433_v1, 0.0  ;;  %v436_v47 = vsel %vm4726_vm9, %v434_v50, 0.0 }
 0x174   :  { %v2890_v20 = vpop.permute.xlu1 %846  ;;  %vm4744_vm9 = vcmp.lt.s32.totalorder %v2863_v25, 14  ;;  %v439_v34 = vmul.f32 %v438_v55, %v435_v62  ;;  %v440_v42 = vmul.f32 %v438_v55, %v436_v47  ;;  %v453_v18 = vstv %s2932_s21  ;;  %s3274_s21 = sld [smem:[#allocation3 + $0x1b]] }
 0x175   :  { %v2892_v39 = vpop.permute.xlu0 %500  ;;  %v426_v36 = vadd.f32 %v424_v48, %v420_v31  ;;  %v427_v52 = vadd.f32 %v425_v33, %v421_v0  ;;  %v450_v22 = vsel %vm4744_vm9, %v448_v32, 0.0  ;;  %v451_v5 = vsel %vm4739_vm11, %v449_v21, 0.0 }
 0x176   :  { %v464_v1 = vsel %vm462_vm13, %v2796_v49, %v2858_v4  ;;  %v468_v0 = vstv %s2941_s22  ;;  %v598_v48 = vstv %s2945_s23  ;;  %v454_v62 = vmul.f32 %v453_v18, %v450_v22  ;;  %s3294_s22 = sld [smem:[#allocation3 + $0x18]]  ;;  %s3307_s23 = sld [smem:[#allocation3 + $0xb]] }
 0x177   :  { %v441_v50 = vadd.f32 %v439_v34, %v426_v36  ;;  %v442_v31 = vadd.f32 %v440_v42, %v427_v52  ;;  %v455_v47 = vmul.f32 %v453_v18, %v451_v5  ;;  %v465_v32 = vsel %vm4742_vm8, %v463_v13, 0.0 }
 0x178   :  { %v2914_v40 = vpop.permute.xlu1 %860  ;;  %v466_v21 = vsel %vm4731_vm10, %v464_v1, 0.0  ;;  %v612_v18 = vstv %s2969_s24  ;;  %vm4807_vm10 = vcmp.lt.s32.totalorder %v2467_v28, 126  ;;  %vm4740_vm11 = vcmp.lt.s32.totalorder %v2594_v14, 208  ;;  %s3322_s24 = sld [smem:[#allocation3 + $0xc]] }
 0x179   :  { %v2916_v12 = vpop.permute.xlu0 %514  ;;  %v456_v34 = vadd.f32 %v454_v62, %v441_v50  ;;  %v457_v42 = vadd.f32 %v455_v47, %v442_v31  ;;  %v470_v5 = vmul.f32 %v468_v0, %v466_v21 }
 0x17b   :  { %v472_v31 = vadd.f32 %v470_v5, %v457_v42 }
 0x17c   :  { %v2929_v51 = vpop.permute.xlu1 %880  ;;  %v543_v14 = vstv %s3307_s23  ;;  %s3889_s23 = sld [smem:[#allocation3 + $0x33]] }
 0x17d   :  { %v2927_v45 = vpop.permute.xlu0 %534 }
 0x180   :  { %v2957_v26 = vpop.permute.xlu1 %894 }
 0x181   :  { %v2943_v63 = vpop.permute.xlu0 %548 }
 0x184   :  { %v2991_v55 = vpop.permute.xlu1 %908 }
 0x185   :  { %v2967_v15 = vpop.permute.xlu0 %562 }
 0x189   :  { %v590_v33 = vpop.permute.xlu0 %589 }
 0x18a   :  { %v593_v4 = vsel %vm381_vm0, %v590_v33, %v2840_v29  ;;  %v594_v49 = vsel %vm381_vm0, %v2840_v29, %v590_v33  ;;  %v469_v29 = vmul.f32 %v468_v0, %v465_v32  ;;  %v626_v32 = vstv %s2993_s25  ;;  %s3324_s25 = sld [smem:[#allocation3 + $0xd]] }
 0x18b   :  { %v595_v36 = vsel %vm295_vm12, %v594_v49, 0.0  ;;  %v596_v52 = vsel %vm296_vm7, %v593_v4, 0.0  ;;  %v3018_v4 = vpop.permute.xlu1 %935 }
 0x18c   :  { %v599_v33 = vmul.f32 %v598_v48, %v595_v36  ;;  %v600_v13 = vmul.f32 %v598_v48, %v596_v52  ;;  %v471_v50 = vadd.f32 %v469_v29, %v456_v34 }
 0x18d   :  { %v604_v22 = vpop.permute.xlu0 %603 }
 0x18e   :  { %v607_v1 = vsel %vm396_vm14, %v604_v22, %v2844_v8  ;;  %v608_v49 = vsel %vm396_vm14, %v2844_v8, %v604_v22  ;;  %v601_v36 = vadd.f32 %v599_v33, %v471_v50  ;;  %v602_v52 = vadd.f32 %v600_v13, %v472_v31 }
 0x18f   :  { %v609_v0 = vsel %vm301_vm6, %v608_v49, 0.0  ;;  %v610_v48 = vsel %vm302_vm5, %v607_v1, 0.0  ;;  %v632_v22 = vstv %s3009_s26  ;;  %v3042_v49 = vpop.permute.xlu1 %949  ;;  %s3538_s26 = sld [smem:[#allocation3 + $0x20]] }
 0x190   :  { %v613_v62 = vmul.f32 %v612_v18, %v609_v0  ;;  %v614_v47 = vmul.f32 %v612_v18, %v610_v48  ;;  %4806 = vst [vmem:[#allocation52_spill] sm:$0xff] %v3042_v49  ;;  %v634_v31 = vmul.f32 %v632_v22, %v2549_v57  ;;  %v4733_v0 = vstv %s3020_s27 }
 0x191   :  { %v618_v21 = vpop.permute.xlu0 %617 }
 0x192   :  { %v621_v8 = vsel %vm411_vm4, %v618_v21, %v2848_v58  ;;  %v622_v34 = vsel %vm411_vm4, %v2848_v58, %v618_v21  ;;  %v615_v29 = vadd.f32 %v613_v62, %v601_v36  ;;  %v616_v5 = vadd.f32 %v614_v47, %v602_v52 }
 0x193   :  { %v623_v42 = vsel %vm305_vm3, %v622_v34, 0.0  ;;  %v624_v18 = vsel %vm306_vm2, %v621_v8, 0.0  ;;  %v633_v62 = vmul.f32 %v632_v22, %v2689_v35  ;;  %v4732_v52 = vstv %s3033_s28  ;;  %v3072_v8 = vpop.permute.xlu1 %963 }
 0x194   :  { %v627_v33 = vmul.f32 %v626_v32, %v623_v42  ;;  %v628_v13 = vmul.f32 %v626_v32, %v624_v18  ;;  %4808 = vst [vmem:[#allocation53_spill] sm:$0xff] %v3072_v8  ;;  %v835_v34 = vsel %vm381_vm0, %v2868_v2, %v2814_v41  ;;  %v4734_v22 = vstv %s3044_s29 }
 0x195   :  { %v3040_v1 = vpop.permute.xlu0 %637 }
 0x196   :  { %v629_v58 = vadd.f32 %v627_v33, %v615_v29  ;;  %v630_v50 = vadd.f32 %v628_v13, %v616_v5  ;;  %v641_v48 = vsel %vm432_vm1, %v3040_v1, %v2850_v17  ;;  %v849_v5 = vsel %vm396_vm14, %v2890_v20, %v2820_v53 }
 0x197   :  { %v643_v32 = vsel %vm4759_vm15, %v641_v48, 0.0  ;;  %v863_v48 = vsel %vm411_vm4, %v2914_v40, %v2826_v11 }
 0x198   :  { %v3055_v47 = vadd.f32 %v634_v31, %v630_v50  ;;  %v635_v21 = vadd.f32 %v633_v62, %v629_v58  ;;  %v647_v36 = vmul.f32 %v4733_v0, %v643_v32  ;;  %v4738_v58 = vstv %s3047_s30 }
 0x199   :  { %v3061_v57 = vpop.permute.xlu0 %651  ;;  %v836_v50 = vsel %vm295_vm12, %v835_v34, 0.0  ;;  %v864_v0 = vsel %vm305_vm3, %v863_v48, 0.0 }
 0x19a   :  { %v655_v35 = vsel %vm4807_vm10, %v3061_v57, %v2852_v60  ;;  %v649_v33 = vadd.f32 %v647_v36, %v635_v21  ;;  %v4746_v21 = vstv %s3057_s4  ;;  %v850_v36 = vsel %vm301_vm6, %v849_v5, 0.0 }
 0x19b   :  { %v657_v42 = vsel %vm4744_vm9, %v655_v35, 0.0  ;;  %v3109_v35 = vpop.permute.xlu1 %983  ;;  %vm4741_vm10 = vcmp.lt.s32.totalorder %v2467_v28, 80  ;;  %vm4826_vm9 = vcmp.lt.s32.totalorder %v2467_v28, 32 }
 0x19c   :  { %v661_v18 = vmul.f32 %v4732_v52, %v657_v42  ;;  %4809 = vst [vmem:[#allocation54_spill] sm:$0xff] %v3109_v35  ;;  %v840_v42 = vmul.f32 %v4738_v58, %v836_v50  ;;  %v4745_v52 = vstv %s3066_s5 }
 0x19d   :  { %v3085_v29 = vpop.permute.xlu0 %665  ;;  %v868_v8 = vmul.f32 %v4745_v52, %v864_v0 }
 0x19e   :  { %v669_v13 = vsel %vm462_vm13, %v3085_v29, %v2854_v10  ;;  %v663_v62 = vadd.f32 %v661_v18, %v649_v33  ;;  %v854_v18 = vmul.f32 %v4746_v21, %v850_v36 }
 0x19f   :  { %v671_v31 = vsel %vm4742_vm8, %v669_v13, 0.0  ;;  %v3125_v49 = vpop.permute.xlu1 %997 }
 0x1a0   :  { %v675_v32 = vmul.f32 %v4734_v22, %v671_v31  ;;  %v4743_v31 = vstv %s3080_s6  ;;  %4811 = vst [vmem:[#allocation56_spill] sm:$0xff] %v3125_v49 }
 0x1a1   :  { %v3111_v34 = vpop.permute.xlu0 %947  ;;  %v874_v35 = vmul.f32 %v4743_v31, %v2522_v56 }
 0x1a2   :  { %v677_v13 = vadd.f32 %v675_v32, %v663_v62 }
 0x1a3   :  { %v1161_v48 = vpop.permute.xlu1 %1160 }
 0x1a4   :  { %v842_v33 = vadd.f32 %v840_v42, %v677_v13 }
 0x1a5   :  { %v3121_v22 = vpop.permute.xlu0 %961 }
 0x1a6   :  { %4810 = vst [vmem:[#allocation55_spill] sm:$0xff] %v3121_v22  ;;  %v856_v5 = vadd.f32 %v854_v18, %v842_v33 }
 0x1a7   :  { %v3136_v42 = vpop.permute.xlu1 %1011 }
 0x1a8   :  { %v870_v50 = vadd.f32 %v868_v8, %v856_v5  ;;  %4814 = vst [vmem:[#allocation59_spill] sm:$0xff] %v3136_v42 }
 0x1a9   :  { %v3130_v62 = vpop.permute.xlu0 %981 }
 0x1aa   :  { %4812 = vst [vmem:[#allocation57_spill] sm:$0xff] %v3130_v62  ;;  %v3132_v32 = vadd.f32 %v874_v35, %v870_v50  ;;  %v495_v62 = vstv %s3262_s19  ;;  %s3797_s19 = sld [smem:[#allocation3 + $0x29]] }
 0x1ab   :  { %v1030_v0 = vpop.permute.xlu1 %1029 }
 0x1ad   :  { %v3134_v58 = vpop.permute.xlu0 %995 }
 0x1ae   :  { %4813 = vst [vmem:[#allocation58_spill] sm:$0xff] %v3134_v58  ;;  %v509_v58 = vstv %s3258_s18  ;;  %s3784_s18 = sld [smem:[#allocation3 + $0x28]] }
 0x1b1   :  { %v1159_v36 = vpop.permute.xlu0 %1158 }
 0x1b5   :  { %v3138_v13 = vpop.permute.xlu0 %1009 }
 0x1b6   :  { %4815 = vst [vmem:[#allocation60_spill] sm:$0xff] %v3138_v13 }
 0x1b9   :  { %v1028_v18 = vpop.permute.xlu0 %1027 }
 0x1ba   :  { %v3144_v56 = vsel %vm4741_vm10, %v1028_v18, %v1030_v0  ;;  %v1033_v8 = vsel %vm4741_vm10, %v1030_v0, %v1028_v18  ;;  %vm4819_vm10 = vcmp.ge.s32.totalorder %v2467_v28, 48 }
 0x1bb   :  { %4816 = vst [vmem:[#allocation61_spill] sm:$0xff] %v3144_v56  ;;  %v3150_v35 = vsel %vm4740_vm11, %v1033_v8, 0.0  ;;  %1036 = vrot.lane.b32.xlu0 %v3144_v56, %s2211_s8  ;;  %vm4818_vm11 = vcmp.lt.s32.totalorder %v2467_v28, 48 }
 0x1bc   :  { %4817 = vst [vmem:[#allocation62_spill] sm:$0xff] %v3150_v35  ;;  %1038 = vrot.lane.b32.xlu1 %v3150_v35, %s2211_s8  ;;  %v1163_v33 = vsel %vm4818_vm11, %v1161_v48, %v1159_v36  ;;  %vm4821_vm8 = vmmov %vm4818_vm11  ;;  %vm4824_vm11 = vcmp.ge.s32.totalorder %v2467_v28, 16 }
 0x1bd   :  { %v3192_v5 = vsel %vm4819_vm10, %v1163_v33, 0.0  ;;  %v3196_v50 = vsel %vm4821_vm8, %v1159_v36, %v1161_v48  ;;  %v1357_v48 = vpop.permute.xlu1 %1356  ;;  %v1355_v36 = vpop.permute.xlu0 %1354  ;;  %vm4823_vm8 = vcmp.lt.s32.totalorder %v2467_v28, 16 }
 0x1be   :  { %4820 = vst [vmem:[#allocation63_spill] sm:$0xff] %v3192_v5  ;;  %4822 = vst [vmem:[#allocation64_spill] sm:$0xff] %v3196_v50  ;;  %v1359_v0 = vsel %vm4823_vm8, %v1357_v48, %v1355_v36 }
 0x1bf   :  { %1050 = vrot.lane.b32.xlu0 %v3144_v56, %s2212_s9  ;;  %v3226_v33 = vsel %vm4824_vm11, %v1359_v0, 0.0  ;;  %vm4825_vm10 = vmmov %vm4823_vm8  ;;  %vm4827_vm8 = vcmp.ge.s32.totalorder %v2467_v28, 32 }
 0x1c0   :  { %1588 = vrot.lane.b32.xlu1 %v2806_v9, %s2217_s14  ;;  %v3230_v31 = vsel %vm4825_vm10, %v1355_v36, %v1357_v48  ;;  %vm4828_vm11 = vmmov %vm4826_vm9  ;;  %v688_v36 = vstv %s3242_s7  ;;  %s3675_s7 = sld [smem:[#allocation3 + $0x2b]] }
 0x1c1   :  { %v1259_v18 = vpop.permute.xlu1 %1258  ;;  %v1257_v8 = vpop.permute.xlu0 %1256 }
 0x1c2   :  { %v1261_v52 = vsel %vm4826_vm9, %v1259_v18, %v1257_v8  ;;  %v3248_v48 = vsel %vm4828_vm11, %v1257_v8, %v1259_v18  ;;  %v505_v18 = vsel %vm396_vm14, %v2812_v3, %v2892_v39  ;;  %v683_v8 = vsel %vm381_vm0, %v2462_v19, %v2482_v37 }
 0x1c3   :  { %1590 = vrot.lane.b32.xlu0 %v2747_v16, %s2217_s14  ;;  %v3240_v21 = vsel %vm4827_vm8, %v1261_v52, 0.0  ;;  %s3244_s14 = sld [smem:[#allocation3 + $0x16]]  ;;  %v684_v52 = vsel %vm381_vm0, %v2482_v37, %v2462_v19  ;;  %v491_v19 = vsel %vm381_vm0, %v2808_v27, %v2871_v6  ;;  %v519_v37 = vsel %vm411_vm4, %v2818_v43, %v2916_v12 }
 0x1c4   :  { %1052 = vrot.lane.b32.xlu1 %v3150_v35, %s2212_s9  ;;  %v685_v42 = vsel %vm295_vm12, %v684_v52, 0.0  ;;  %v697_v52 = vsel %vm396_vm14, %v2464_v24, %v2486_v38  ;;  %v506_v49 = vsel %vm301_vm6, %v505_v18, 0.0  ;;  %v518_v18 = vsel %vm411_vm4, %v2916_v12, %v2818_v43 }
 0x1c5   :  { %vm4829_vm9 = vcmp.lt.s32.totalorder %v2467_v28, 126  ;;  %vm4834_vm11 = vcmp.lt.s32.totalorder %v2863_v25, 14 }
 0x1c6   :  { %vm4832_vm10 = vmmov %vm4829_vm9 }
 0x1c7   :  { %1064 = vrot.lane.b32.xlu0 %v3144_v56, %s2213_s10  ;;  %vm4833_vm8 = vmmov %vm4829_vm9 }
 0x1c8   :  { %1066 = vrot.lane.b32.xlu1 %v3150_v35, %s2213_s10 }
 0x1c9   :  { %v702_v0 = vstv %s3244_s14  ;;  %s3696_s14 = sld [smem:[#allocation3 + $0x2c]] }
 0x1cb   :  { %1084 = vrot.lane.b32.xlu0 %v3144_v56, %s2214_s11 }
 0x1cc   :  { %1086 = vrot.lane.b32.xlu1 %v3150_v35, %s2214_s11 }
 0x1cf   :  { %1686 = vrot.lane.b32.xlu0 %v2806_v9, %s2218_s15 }
 0x1d0   :  { %1688 = vrot.lane.b32.xlu1 %v2747_v16, %s2218_s15  ;;  %s3250_s15 = sld [smem:[#allocation3 + $0x17]] }
 0x1d3   :  { %1784 = vrot.lane.b32.xlu0 %v2806_v9, %s2219_s16 }
 0x1d4   :  { %1786 = vrot.lane.b32.xlu1 %v2747_v16, %s2219_s16  ;;  %s3252_s16 = sld [smem:[#allocation3 + $0xa]] }
 0x1d7   :  { %1098 = vrot.lane.b32.xlu0 %v3144_v56, %s2215_s12 }
 0x1d8   :  { %1100 = vrot.lane.b32.xlu1 %v3150_v35, %s2215_s12 }
 0x1da   :  { %v529_v13 = vstv %s3252_s16  ;;  %s3755_s16 = sld [smem:[#allocation3 + $0x26]] }
 0x1db   :  { %1112 = vrot.lane.b32.xlu0 %v3144_v56, %s2216_s13  ;;  %v531_v56 = vmul.f32 %v529_v13, %v2513_v46  ;;  %v552_v46 = vsel %vm4829_vm9, %v2943_v63, %v2830_v59  ;;  %vm4835_vm9 = vcmp.lt.s32.totalorder %v2866_v7, 15 }
 0x1dc   :  { %1114 = vrot.lane.b32.xlu1 %v3150_v35, %s2216_s13  ;;  %v523_v35 = vstv %s3264_s0  ;;  %s3801_s0 = sld [smem:[#allocation3 + $0x2f]] }
 0x1df   :  { %1166 = vrot.lane.b32.xlu0 %v3192_v5, %s2211_s8 }
 0x1e0   :  { %1168 = vrot.lane.b32.xlu1 %v3196_v50, %s2211_s8 }
 0x1e3   :  { %1180 = vrot.lane.b32.xlu0 %v3192_v5, %s2212_s9 }
 0x1e4   :  { %1182 = vrot.lane.b32.xlu1 %v3196_v50, %s2212_s9 }
 0x1e7   :  { %1194 = vrot.lane.b32.xlu0 %v3192_v5, %s2213_s10 }
 0x1e8   :  { %1196 = vrot.lane.b32.xlu1 %v3196_v50, %s2213_s10 }
 0x1eb   :  { %1214 = vrot.lane.b32.xlu0 %v3192_v5, %s2214_s11 }
 0x1ec   :  { %1216 = vrot.lane.b32.xlu1 %v3196_v50, %s2214_s11 }
 0x1ef   :  { %1228 = vrot.lane.b32.xlu0 %v3192_v5, %s2215_s12 }
 0x1f0   :  { %1230 = vrot.lane.b32.xlu1 %v3196_v50, %s2215_s12 }
 0x1f3   :  { %1242 = vrot.lane.b32.xlu0 %v3192_v5, %s2216_s13  ;;  %v504_v5 = vsel %vm396_vm14, %v2892_v39, %v2812_v3  ;;  %v490_v39 = vsel %vm381_vm0, %v2871_v6, %v2808_v27  ;;  %v492_v3 = vsel %vm295_vm12, %v491_v19, 0.0  ;;  %v510_v6 = vmul.f32 %v509_v58, %v506_v49 }
 0x1f4   :  { %1244 = vrot.lane.b32.xlu1 %v3196_v50, %s2216_s13  ;;  %v698_v50 = vsel %vm396_vm14, %v2486_v38, %v2464_v24  ;;  %v686_v24 = vsel %vm296_vm7, %v683_v8, 0.0  ;;  %v520_v8 = vsel %vm305_vm3, %v519_v37, 0.0  ;;  %v507_v22 = vsel %vm302_vm5, %v504_v5, 0.0 }
 0x1f5   :  { %v699_v38 = vsel %vm301_vm6, %v698_v50, 0.0  ;;  %v700_v50 = vsel %vm302_vm5, %v697_v52, 0.0  ;;  %v3353_v27 = vmul.f32 %v688_v36, %v685_v42  ;;  %v3355_v19 = vmul.f32 %v688_v36, %v686_v24 }
 0x1f6   :  { %v3357_v12 = vmul.f32 %v702_v0, %v699_v38  ;;  %v493_v37 = vsel %vm296_vm7, %v490_v39, 0.0  ;;  %v496_v49 = vmul.f32 %v495_v62, %v492_v3  ;;  %v521_v5 = vsel %vm306_vm2, %v518_v18, 0.0 }
 0x1f7   :  { %1362 = vrot.lane.b32.xlu0 %v3226_v33, %s2211_s8  ;;  %v524_v52 = vmul.f32 %v523_v35, %v520_v8  ;;  %v3366_v42 = vmul.f32 %v702_v0, %v700_v50  ;;  %v511_v36 = vmul.f32 %v509_v58, %v507_v22  ;;  %v530_v24 = vmul.f32 %v529_v13, %v2620_v54 }
 0x1f8   :  { %1364 = vrot.lane.b32.xlu1 %v3230_v31, %s2211_s8  ;;  %v3370_v38 = vstv %s3294_s22  ;;  %v512_v43 = vadd.f32 %v510_v6, %v496_v49  ;;  %v538_v39 = vsel %vm432_vm1, %v2927_v45, %v2824_v30  ;;  %v497_v3 = vmul.f32 %v495_v62, %v493_v37  ;;  %v4830_v6 = vld [vmem:[#allocation6_spill] sm:$0xff]  ;;  %s3875_s22 = sld [smem:[#allocation3 + $0x32]] }
 0x1f9   :  { %v525_v0 = vmul.f32 %v523_v35, %v521_v5  ;;  %v557_v18 = vstv %s3322_s24  ;;  %v571_v22 = vstv %s3324_s25  ;;  %v723_v58 = vmul.f32 %v3370_v38, %v2304_v61  ;;  %s3891_s24 = sld [smem:[#allocation3 + $0x34]]  ;;  %s3911_s25 = sld [smem:[#allocation3 + $0x35]] }
 0x1fa   :  { %v526_v54 = vadd.f32 %v524_v52, %v512_v43  ;;  %v642_v62 = vsel %vm432_vm1, %v2850_v17, %v3040_v1  ;;  %v513_v13 = vadd.f32 %v511_v36, %v497_v3  ;;  %v539_v35 = vsel %vm432_vm1, %v2824_v30, %v2927_v45  ;;  %v4831_v1 = vld [vmem:[#allocation13_spill] sm:$0xff]  ;;  %v4838_v36 = vld [vmem:[#allocation7_spill] sm:$0xff] }
 0x1fb   :  { %1264 = vrot.lane.b32.xlu0 %v3240_v21, %s2211_s8  ;;  %v540_v8 = vsel %vm4759_vm15, %v538_v39, 0.0  ;;  %v724_v50 = vmul.f32 %v3370_v38, %v2387_v44  ;;  %v566_v61 = vsel %vm462_vm13, %v2967_v15, %v2836_v23  ;;  %v725_v17 = vmul.f32 %v3370_v38, %v4830_v6 }
 0x1fc   :  { %1266 = vrot.lane.b32.xlu1 %v3248_v48, %s2211_s8  ;;  %v726_v43 = vmul.f32 %v3370_v38, %v4831_v1  ;;  %v656_v30 = vsel %vm4832_vm10, %v2852_v60, %v3061_v57  ;;  %v527_v44 = vadd.f32 %v525_v0, %v513_v13  ;;  %v553_v45 = vsel %vm4833_vm8, %v2830_v59, %v2943_v63  ;;  %vm4836_vm10 = vmmov %vm4835_vm9 }
 0x1fd   :  { %v554_v37 = vsel %vm4834_vm11, %v552_v46, 0.0  ;;  %v644_v49 = vsel %vm4835_vm9, %v642_v62, 0.0  ;;  %v532_v60 = vadd.f32 %v530_v24, %v526_v54  ;;  %v541_v57 = vsel %vm4836_vm10, %v539_v35, 0.0  ;;  %v4843_v46 = vld [vmem:[#allocation14_spill] sm:$0xff] }
 0x1fe   :  { %v544_v5 = vmul.f32 %v543_v14, %v540_v8  ;;  %v670_v52 = vsel %vm462_vm13, %v2854_v10, %v3085_v29  ;;  %v567_v59 = vsel %vm462_vm13, %v2836_v23, %v2967_v15  ;;  %vm4837_vm8 = vcmp.lt.s32.totalorder %v2863_v25, 13 }
 0x1ff   :  { %1278 = vrot.lane.b32.xlu0 %v3240_v21, %s2212_s9  ;;  %v568_v63 = vsel %vm4837_vm8, %v566_v61, 0.0  ;;  %v727_v24 = vmul.f32 %v3370_v38, %v4838_v36  ;;  %vm4839_vm11 = vcmp.lt.s32.totalorder %v2866_v7, 14  ;;  %v558_v0 = vmul.f32 %v557_v18, %v554_v37 }
 0x200   :  { %1280 = vrot.lane.b32.xlu1 %v3248_v48, %s2212_s9  ;;  %v658_v39 = vsel %vm4839_vm11, %v656_v30, 0.0  ;;  %vm4840_vm9 = vmmov %vm4839_vm11  ;;  %vm4841_vm10 = vcmask 1041409   ;;  %v4842_v29 = vstv %s3020_s27  ;;  %v533_v23 = vadd.f32 %v531_v56, %v527_v44  ;;  %v4847_v56 = vld [vmem:[#allocation8_spill] sm:$0xff]  ;;  %s3565_s27 = sld [smem:[#allocation3 + $0x21]] }
 0x201   :  { %v555_v3 = vsel %vm4840_vm9, %v553_v45, 0.0  ;;  %v755_v10 = vsel %vm4841_vm10, %v725_v17, %v723_v58  ;;  %v648_v54 = vmul.f32 %v4842_v29, %v644_v49  ;;  %v545_v15 = vmul.f32 %v543_v14, %v541_v57  ;;  %v4851_v57 = vld [vmem:[#allocation20_spill] sm:$0xff]  ;;  %v4857_v29 = vld [vmem:[#allocation21_spill] sm:$0xff] }
 0x202   :  { %v728_v62 = vmul.f32 %v3370_v38, %v4843_v46  ;;  %vm4844_vm8 = vcmp.lt.s32.totalorder %v2866_v7, 13  ;;  %v546_v35 = vadd.f32 %v544_v5, %v532_v60  ;;  %v572_v8 = vmul.f32 %v571_v22, %v568_v63 }
 0x203   :  { %1376 = vrot.lane.b32.xlu0 %v3226_v33, %s2212_s9  ;;  %v672_v13 = vsel %vm4844_vm8, %v670_v52, 0.0  ;;  %vm4845_vm11 = vmmov %vm4844_vm8  ;;  %v4846_v61 = vstv %s3033_s28  ;;  %v559_v17 = vmul.f32 %v557_v18, %v555_v3  ;;  %v729_v14 = vmul.f32 %v3370_v38, %v4847_v56  ;;  %v4850_v18 = vld [vmem:[#allocation22_spill] sm:$0xff]  ;;  %s3567_s28 = sld [smem:[#allocation3 + $0x22]] }
 0x204   :  { %1378 = vrot.lane.b32.xlu1 %v3230_v31, %s2212_s9  ;;  %v569_v58 = vsel %vm4845_vm11, %v567_v59, 0.0  ;;  %v662_v6 = vmul.f32 %v4846_v61, %v658_v39  ;;  %vm4848_vm9 = vcmask 1042434   ;;  %v762_v30 = vsel %vm4841_vm10, %v726_v43, %v724_v50  ;;  %v4853_v59 = vld [vmem:[#allocation9_spill] sm:$0xff] }
 0x205   :  { %v756_v1 = vsel %vm4848_vm9, %v727_v24, %v755_v10  ;;  %v834_v44 = vsel %vm381_vm0, %v2814_v41, %v2868_v2  ;;  %v560_v45 = vadd.f32 %v558_v0, %v546_v35  ;;  %v650_v37 = vadd.f32 %v648_v54, %v3055_v47  ;;  %v4852_v47 = vld [vmem:[#allocation15_spill] sm:$0xff]  ;;  %vm4855_vm11 = vmmov %vm4848_vm9  ;;  %v4856_v10 = vld [vmem:[#allocation24_spill] sm:$0xff] }
 0x206   :  { %v4849_v49 = vstv %s3044_s29  ;;  %v711_v5 = vsel %vm411_vm4, %v4851_v57, %v4850_v18  ;;  %v712_v50 = vsel %vm411_vm4, %v4850_v18, %v4851_v57  ;;  %v547_v43 = vadd.f32 %v545_v15, %v533_v23  ;;  %s3584_s29 = sld [smem:[#allocation3 + $0x23]] }
 0x207   :  { %1292 = vrot.lane.b32.xlu0 %v3240_v21, %s2213_s10  ;;  %v676_v60 = vmul.f32 %v4849_v49, %v672_v13  ;;  %v573_v2 = vmul.f32 %v571_v22, %v569_v58  ;;  %v574_v41 = vadd.f32 %v572_v8, %v560_v45  ;;  %v730_v52 = vmul.f32 %v3370_v38, %v4852_v47  ;;  %v4858_v13 = vld [vmem:[#allocation16_spill] sm:$0xff]  ;;  %v4859_v58 = vld [vmem:[#allocation10_spill] sm:$0xff]  ;;  %v4864_v45 = vld [vmem:[#allocation17_spill] sm:$0xff] }
 0x208   :  { %1294 = vrot.lane.b32.xlu1 %v3248_v48, %s2213_s10  ;;  %v731_v63 = vmul.f32 %v3370_v38, %v4853_v59  ;;  %v664_v36 = vadd.f32 %v662_v6, %v650_v37  ;;  %v837_v24 = vsel %vm296_vm7, %v834_v44, 0.0  ;;  %v561_v39 = vadd.f32 %v559_v17, %v547_v43  ;;  %v4865_v49 = vld [vmem:[#allocation11_spill] sm:$0xff] }
 0x209   :  { %vm4854_vm8 = vcmask 1043459   ;;  %v763_v22 = vsel %vm4855_vm11, %v728_v62, %v762_v30  ;;  %v713_v0 = vsel %vm305_vm3, %v712_v50, 0.0  ;;  %v777_v54 = vsel %vm432_vm1, %v4857_v29, %v4856_v10 }
 0x20a   :  { %v757_v3 = vsel %vm4854_vm8, %v729_v14, %v756_v1  ;;  %v848_v23 = vsel %vm396_vm14, %v2820_v53, %v2890_v20  ;;  %v678_v15 = vadd.f32 %v676_v60, %v664_v36  ;;  %v778_v46 = vsel %vm432_vm1, %v4856_v10, %v4857_v29  ;;  %vm4862_vm10 = vmmov %vm4854_vm8 }
 0x20b   :  { %1390 = vrot.lane.b32.xlu0 %v3226_v33, %s2213_s10  ;;  %v575_v62 = vadd.f32 %v573_v2, %v561_v39  ;;  %v732_v35 = vmul.f32 %v3370_v38, %v4858_v13  ;;  %v733_v8 = vmul.f32 %v3370_v38, %v4859_v58  ;;  %v4860_v53 = vstv %s3047_s30  ;;  %v4869_v2 = vld [vmem:[#allocation25_spill] sm:$0xff]  ;;  %v4874_v39 = vld [vmem:[#allocation18_spill] sm:$0xff]  ;;  %s3612_s30 = sld [smem:[#allocation3 + $0x24]] }
 0x20c   :  { %1392 = vrot.lane.b32.xlu1 %v3230_v31, %s2213_s10  ;;  %v841_v20 = vmul.f32 %v4860_v53, %v837_v24  ;;  %v691_v61 = vadd.f32 %v3353_v27, %v574_v41  ;;  %vm4861_vm9 = vcmask 1044484   ;;  %v764_v17 = vsel %vm4862_vm10, %v730_v52, %v763_v22  ;;  %v4870_v41 = vld [vmem:[#allocation23_spill] sm:$0xff]  ;;  %v4875_v22 = vld [vmem:[#allocation12_spill] sm:$0xff]  ;;  %v4881_v13 = vld [vmem:[#allocation26_spill] sm:$0xff] }
 0x20d   :  { %v758_v6 = vsel %vm4861_vm9, %v731_v63, %v757_v3  ;;  %v714_v56 = vsel %vm306_vm2, %v711_v5, 0.0  ;;  %v4863_v14 = vstv %s3250_s15  ;;  %v779_v30 = vsel %vm4759_vm15, %v777_v54, 0.0  ;;  %s3713_s15 = sld [smem:[#allocation3 + $0x2e]] }
 0x20e   :  { %v717_v1 = vmul.f32 %v4863_v14, %v713_v0  ;;  %v851_v44 = vsel %vm302_vm5, %v848_v23, 0.0  ;;  %v862_v27 = vsel %vm411_vm4, %v2826_v11, %v2914_v40  ;;  %v734_v37 = vmul.f32 %v3370_v38, %v4864_v45 }
 0x20f   :  { %1312 = vrot.lane.b32.xlu0 %v3240_v21, %s2214_s11  ;;  %v735_v60 = vmul.f32 %v3370_v38, %v4865_v49  ;;  %v843_v18 = vadd.f32 %v841_v20, %v678_v15  ;;  %vm4866_vm8 = vcmp.lt.s32.totalorder %v2866_v7, 15  ;;  %v692_v5 = vadd.f32 %v3355_v19, %v575_v62  ;;  %v4880_v62 = vld [vmem:[#allocation27_spill] sm:$0xff]  ;;  %v4891_v49 = vld [vmem:[#allocation30_spill] sm:$0xff] }
 0x210   :  { %1314 = vrot.lane.b32.xlu1 %v3248_v48, %s2214_s11  ;;  %v780_v57 = vsel %vm4866_vm8, %v778_v46, 0.0  ;;  %vm4867_vm11 = vcmask 1045509   ;;  %v765_v11 = vsel %vm4861_vm9, %v732_v35, %v764_v17  ;;  %v4868_v50 = vmov %v4863_v14 }
 0x211   :  { %v759_v40 = vsel %vm4867_vm11, %v733_v8, %v758_v6  ;;  %v718_v43 = vmul.f32 %v4868_v50, %v714_v56  ;;  %vm4871_vm10 = vcmp.lt.s32.totalorder %v2467_v28, 126  ;;  %v4872_v52 = vstv %s3057_s4  ;;  %v4883_v6 = vld [vmem:[#allocation19_spill] sm:$0xff]  ;;  %s3641_s4 = sld [smem:[#allocation3 + $0x2a]] }
 0x212   :  { %v791_v47 = vsel %vm4871_vm10, %v4870_v41, %v4869_v2  ;;  %v855_v59 = vmul.f32 %v4872_v52, %v851_v44  ;;  %v705_v19 = vadd.f32 %v3357_v12, %v691_v61  ;;  %v4873_v63 = vstv %s3254_s17  ;;  %vm4878_vm9 = vmmov %vm4871_vm10  ;;  %s3767_s17 = sld [smem:[#allocation3 + $0x27]] }
 0x213   :  { %1410 = vrot.lane.b32.xlu0 %v3226_v33, %s2214_s11  ;;  %v783_v36 = vmul.f32 %v4873_v63, %v779_v30  ;;  %v865_v24 = vsel %vm306_vm2, %v862_v27, 0.0  ;;  %v736_v3 = vmul.f32 %v3370_v38, %v4874_v39  ;;  %v737_v0 = vmul.f32 %v3370_v38, %v4875_v22 }
 0x214   :  { %1412 = vrot.lane.b32.xlu1 %v3230_v31, %s2214_s11  ;;  %v4876_v10 = vmov %v4873_v63  ;;  %vm4877_vm8 = vcmask 1046534   ;;  %v766_v54 = vsel %vm4867_vm11, %v734_v37, %v765_v11  ;;  %v857_v23 = vadd.f32 %v855_v59, %v843_v18 }
 0x215   :  { %v3563_v29 = vmul.f32 %v4876_v10, %v780_v57  ;;  %v760_v12 = vsel %vm4877_vm8, %v735_v60, %v759_v40  ;;  %v792_v15 = vsel %vm4878_vm9, %v4869_v2, %v4870_v41  ;;  %vm4879_vm10 = vcmp.lt.s32.totalorder %v2863_v25, 14 }
 0x216   :  { %v793_v46 = vsel %vm4879_vm10, %v791_v47, 0.0  ;;  %v805_v35 = vsel %vm462_vm13, %v4881_v13, %v4880_v62  ;;  %v706_v58 = vadd.f32 %v3366_v42, %v692_v5  ;;  %v806_v8 = vsel %vm462_vm13, %v4880_v62, %v4881_v13  ;;  %v4884_v42 = vld [vmem:[#allocation48_spill] sm:$0xff] }
 0x217   :  { %1326 = vrot.lane.b32.xlu0 %v3240_v21, %s2215_s12  ;;  %v4882_v53 = vstv %s3066_s5  ;;  %v719_v61 = vadd.f32 %v717_v1, %v705_v19  ;;  %v738_v17 = vmul.f32 %v3370_v38, %v4883_v6  ;;  %v882_v56 = vsel %vm432_vm1, %v4884_v42, %v2929_v51  ;;  %s3649_s5 = sld [smem:[#allocation3 + $0x25]] }
 0x218   :  { %1328 = vrot.lane.b32.xlu1 %v3248_v48, %s2215_s12  ;;  %v869_v20 = vmul.f32 %v4882_v53, %v865_v24  ;;  %v883_v14 = vsel %vm432_vm1, %v2929_v51, %v4884_v42  ;;  %vm4885_vm8 = vcmask 1047559   ;;  %vm4886_vm11 = vcmask 1046534  }
 0x219   :  { %v761_v30 = vsel %vm4885_vm8, %v737_v0, %v760_v12  ;;  %v767_v44 = vsel %vm4886_vm11, %v736_v3, %v766_v54  ;;  %vm4887_vm9 = vcmp.lt.s32.totalorder %v2866_v7, 14  ;;  %v4888_v27 = vstv %s3266_s20  ;;  %s3831_s20 = sld [smem:[#allocation3 + $0x30]] }
 0x21a   :  { %v794_v1 = vsel %vm4887_vm9, %v792_v15, 0.0  ;;  %v797_v38 = vmul.f32 %v4888_v27, %v793_v46  ;;  %vm4889_vm10 = vcmp.lt.s32.totalorder %v2863_v25, 13  ;;  %v871_v37 = vadd.f32 %v869_v20, %v857_v23  ;;  %v4903_v46 = vld [vmem:[#allocation50_spill] sm:$0xff] }
 0x21b   :  { %1424 = vrot.lane.b32.xlu0 %v3226_v33, %s2215_s12  ;;  %v807_v45 = vsel %vm4889_vm10, %v805_v35, 0.0  ;;  %vm4890_vm8 = vcmp.lt.s32.totalorder %v2866_v7, 13  ;;  %v4892_v60 = vstv %s3080_s6  ;;  %v720_v57 = vadd.f32 %v718_v43, %v706_v58  ;;  %v4897_v43 = vld [vmem:[#allocation49_spill] sm:$0xff]  ;;  %s3651_s6 = sld [smem:[#allocation3 + $0x2d]] }
 0x21c   :  { %1426 = vrot.lane.b32.xlu1 %v3230_v31, %s2215_s12  ;;  %v808_v51 = vsel %vm4890_vm8, %v806_v8, 0.0  ;;  %v875_v18 = vmul.f32 %v4892_v60, %v4891_v49  ;;  %v887_v5 = vstv %s3538_s26  ;;  %v884_v40 = vsel %vm4759_vm15, %v882_v56, 0.0  ;;  %v4904_v8 = vld [vmem:[#allocation51_spill] sm:$0xff]  ;;  %s3927_s26 = sld [smem:[#allocation3 + $0x36]] }
 0x21d   :  { %vm4893_vm11 = vcmp.lt.s32.totalorder %v2866_v7, 15  ;;  %vm4894_vm9 = vcmask 1047559   ;;  %v771_v2 = vadd.f32 %v761_v30, %v719_v61  ;;  %v4895_v41 = vmov %v4888_v27 }
 0x21e   :  { %v885_v11 = vsel %vm4893_vm11, %v883_v14, 0.0  ;;  %v768_v50 = vsel %vm4894_vm9, %v738_v17, %v767_v44  ;;  %v798_v47 = vmul.f32 %v4895_v41, %v794_v1  ;;  %v4896_v52 = vstv %s3274_s21  ;;  %s3873_s21 = sld [smem:[#allocation3 + $0x31]] }
 0x21f   :  { %1340 = vrot.lane.b32.xlu0 %v3240_v21, %s2216_s13  ;;  %v811_v59 = vmul.f32 %v4896_v52, %v807_v45  ;;  %vm4898_vm10 = vcmp.lt.s32.totalorder %v2467_v28, 126  ;;  %v4900_v24 = vmov %v4896_v52  ;;  %v901_v3 = vstv %s3565_s27  ;;  %v4907_v52 = vld [vmem:[#allocation52_spill] sm:$0xff]  ;;  %s3948_s27 = sld [smem:[#allocation3 + $0x37]] }
 0x220   :  { %1342 = vrot.lane.b32.xlu1 %v3248_v48, %s2216_s13  ;;  %v896_v19 = vsel %vm4898_vm10, %v4897_v43, %v2957_v26  ;;  %vm4899_vm8 = vmmov %vm4898_vm10  ;;  %v3645_v39 = vmul.f32 %v4900_v24, %v808_v51  ;;  %v915_v22 = vstv %s3567_s28  ;;  %v877_v0 = vadd.f32 %v875_v18, %v871_v37  ;;  %s3977_s28 = sld [smem:[#allocation3 + $0x3f]] }
 0x221   :  { %v897_v63 = vsel %vm4899_vm8, %v2957_v26, %v4897_v43  ;;  %v888_v10 = vmul.f32 %v887_v5, %v884_v40  ;;  %v889_v12 = vmul.f32 %v887_v5, %v885_v11  ;;  %v942_v54 = vstv %s3584_s29  ;;  %s4014_s29 = sld [smem:[#allocation3 + $0x38]] }
 0x222   :  { %v772_v23 = vadd.f32 %v768_v50, %v720_v57  ;;  %vm4901_vm11 = vcmp.lt.s32.totalorder %v2863_v25, 14  ;;  %vm4902_vm9 = vcmp.lt.s32.totalorder %v2866_v7, 14  ;;  %v910_v62 = vsel %vm462_vm13, %v4903_v46, %v2991_v55 }
 0x223   :  { %1438 = vrot.lane.b32.xlu0 %v3226_v33, %s2216_s13  ;;  %v898_v26 = vsel %vm4901_vm11, %v896_v19, 0.0  ;;  %v899_v15 = vsel %vm4902_vm9, %v897_v63, 0.0  ;;  %v785_v13 = vadd.f32 %v783_v36, %v771_v2  ;;  %v911_v58 = vsel %vm462_vm13, %v2991_v55, %v4903_v46 }
 0x224   :  { %1440 = vrot.lane.b32.xlu1 %v3230_v31, %s2216_s13  ;;  %v937_v53 = vsel %vm381_vm0, %v4904_v8, %v3018_v4  ;;  %v938_v20 = vsel %vm381_vm0, %v3018_v4, %v4904_v8  ;;  %v890_v61 = vadd.f32 %v888_v10, %v3132_v32  ;;  %v956_v36 = vstv %s3612_s30  ;;  %s4017_s30 = sld [smem:[#allocation3 + $0x39]] }
 0x225   :  { %v891_v17 = vadd.f32 %v889_v12, %v877_v0  ;;  %v902_v56 = vmul.f32 %v901_v3, %v898_v26  ;;  %v903_v14 = vmul.f32 %v901_v3, %v899_v15  ;;  %vm4905_vm10 = vcmp.lt.s32.totalorder %v2863_v25, 13  ;;  %v4910_v12 = vld [vmem:[#allocation29_spill] sm:$0xff] }
 0x226   :  { %v912_v4 = vsel %vm4905_vm10, %v910_v62, 0.0  ;;  %v786_v32 = vadd.f32 %v3563_v29, %v772_v23  ;;  %vm4906_vm8 = vcmp.lt.s32.totalorder %v2866_v7, 13  ;;  %v799_v44 = vadd.f32 %v797_v38, %v785_v13 }
 0x227   :  { %1452 = vrot.lane.b32.xlu0 %v2806_v9, %s2211_s8  ;;  %v913_v30 = vsel %vm4906_vm8, %v911_v58, 0.0  ;;  %v939_v1 = vsel %vm295_vm12, %v938_v20, 0.0  ;;  %v940_v27 = vsel %vm296_vm7, %v937_v53, 0.0  ;;  %v904_v37 = vadd.f32 %v902_v56, %v890_v61  ;;  %v4912_v61 = vld [vmem:[#allocation53_spill] sm:$0xff] }
 0x228   :  { %1454 = vrot.lane.b32.xlu1 %v2747_v16, %s2211_s8  ;;  %v1045_v51 = vstv %s3641_s4  ;;  %v916_v18 = vmul.f32 %v915_v22, %v912_v4  ;;  %v970_v38 = vstv %s3649_s5  ;;  %v905_v57 = vadd.f32 %v903_v14, %v891_v17  ;;  %s4047_s4 = sld [smem:[#allocation3 + $0x3a]]  ;;  %s4064_s5 = sld [smem:[#allocation3 + $0x3b]] }
 0x229   :  { %v1079_v5 = vstv %s3651_s6  ;;  %v917_v40 = vmul.f32 %v915_v22, %v913_v30  ;;  %v800_v11 = vadd.f32 %v798_v47, %v786_v32  ;;  %v943_v50 = vmul.f32 %v942_v54, %v939_v1  ;;  %s4079_s6 = sld [smem:[#allocation3 + $0x3c]] }
 0x22a   :  { %v3700_v2 = vmul.f32 %v942_v54, %v940_v27  ;;  %v813_v41 = vadd.f32 %v811_v59, %v799_v44  ;;  %v952_v43 = vsel %vm396_vm14, %v4907_v52, %v3111_v34  ;;  %v918_v3 = vadd.f32 %v916_v18, %v904_v37 }
 0x22b   :  { %vm4908_vm11 = vcmp.lt.s32.totalorder %v2467_v28, 112  ;;  %v1059_v22 = vstv %s3675_s7  ;;  %v919_v59 = vadd.f32 %v917_v40, %v905_v57  ;;  %vm4911_vm10 = vcmp.lt.s32.totalorder %v4910_v12, 240  ;;  %v4914_v40 = vld [vmem:[#allocation61_spill] sm:$0xff]  ;;  %s4081_s7 = sld [smem:[#allocation3 + $0x42]] }
 0x22c   :  { %vm4909_vm9 = vmmov %vm4908_vm11  ;;  %v814_v15 = vadd.f32 %v3645_v39, %v800_v11  ;;  %v951_v46 = vsel %vm396_vm14, %v3111_v34, %v4907_v52  ;;  %v953_v39 = vsel %vm301_vm6, %v952_v43, 0.0  ;;  %v945_v30 = vadd.f32 %v943_v50, %v813_v41  ;;  %v4915_v50 = vld [vmem:[#allocation62_spill] sm:$0xff] }
 0x22d   :  { %v1037_v35 = vpop.permute.xlu0 %1036  ;;  %v954_v44 = vsel %vm302_vm5, %v951_v46, 0.0  ;;  %v1093_v18 = vstv %s3713_s15  ;;  %v1080_v11 = vmul.f32 %v1079_v5, %v4914_v40  ;;  %v1081_v41 = vmul.f32 %v1079_v5, %v4915_v50  ;;  %s4147_s15 = sld [smem:[#allocation3 + $0x3e]] }
 0x22e   :  { %v1039_v6 = vpop.permute.xlu1 %1038  ;;  %vm4916_vm8 = vcmp.lt.s32.totalorder %v2866_v7, 15 }
 0x22f   :  { %v1040_v55 = vsel %vm381_vm0, %v1037_v35, %v1039_v6  ;;  %v1041_v42 = vsel %vm381_vm0, %v1039_v6, %v1037_v35  ;;  %v4913_v6 = vld [vmem:[#allocation55_spill] sm:$0xff] }
 0x230   :  { %v1042_v49 = vsel %vm295_vm12, %v1041_v42, 0.0  ;;  %v1043_v60 = vsel %vm296_vm7, %v1040_v55, 0.0  ;;  %v965_v34 = vsel %vm411_vm4, %v4913_v6, %v4912_v61  ;;  %v966_v17 = vsel %vm411_vm4, %v4912_v61, %v4913_v6 }
 0x231   :  { %v1051_v45 = vpop.permute.xlu0 %1050  ;;  %v1046_v19 = vmul.f32 %v1045_v51, %v1042_v49  ;;  %v1047_v63 = vmul.f32 %v1045_v51, %v1043_v60  ;;  %v1073_v55 = vstv %s3696_s14  ;;  %v967_v37 = vsel %vm305_vm3, %v966_v17, 0.0  ;;  %s4115_s14 = sld [smem:[#allocation3 + $0x3d]] }
 0x232   :  { %v1589_v29 = vpop.permute.xlu1 %1588  ;;  %v990_v61 = vstv %s3767_s17  ;;  %s2133_s17 = sld [smem:[#allocation3 + $0x4e]] }
 0x233   :  { %v1048_v35 = vadd.f32 %v1046_v19, %v918_v3  ;;  %v1049_v58 = vadd.f32 %v1047_v63, %v919_v59  ;;  %v971_v3 = vmul.f32 %v970_v38, %v967_v37  ;;  %v4926_v37 = vld [vmem:[#allocation59_spill] sm:$0xff] }
 0x235   :  { %v1591_v24 = vpop.permute.xlu0 %1590 }
 0x236   :  { %v3708_v0 = vsel %vm4908_vm11, %v1589_v29, %v1591_v24  ;;  %v1593_v47 = vsel %vm4909_vm9, %v1591_v24, %v1589_v29  ;;  %v1053_v10 = vpop.permute.xlu1 %1052  ;;  %v968_v29 = vsel %vm306_vm2, %v965_v34, 0.0  ;;  %v958_v24 = vmul.f32 %v956_v36, %v954_v44 }
 0x237   :  { %v3717_v54 = vsel %vm4911_vm10, %v1593_v47, 0.0  ;;  %v1054_v23 = vsel %vm396_vm14, %v1051_v45, %v1053_v10  ;;  %v1055_v26 = vsel %vm396_vm14, %v1053_v10, %v1051_v45  ;;  %1596 = vrot.lane.b32.xlu0 %v3708_v0, %s2211_s8  ;;  %v957_v45 = vmul.f32 %v956_v36, %v953_v39  ;;  %vm4924_vm10 = vmmov %vm4916_vm8 }
 0x238   :  { %v1056_v62 = vsel %vm301_vm6, %v1055_v26, 0.0  ;;  %v1057_v13 = vsel %vm302_vm5, %v1054_v23, 0.0  ;;  %1598 = vrot.lane.b32.xlu1 %v3717_v54, %s2211_s8  ;;  %v946_v36 = vadd.f32 %v3700_v2, %v814_v15  ;;  %v972_v46 = vmul.f32 %v970_v38, %v968_v29 }
 0x239   :  { %v1060_v8 = vmul.f32 %v1059_v22, %v1056_v62  ;;  %v1061_v53 = vmul.f32 %v1059_v22, %v1057_v13  ;;  %v1065_v20 = vpop.permute.xlu0 %1064  ;;  %v959_v13 = vadd.f32 %v957_v45, %v945_v30  ;;  %v976_v15 = vstv %s3755_s16  ;;  %s2125_s16 = sld [smem:[#allocation3 + $0x46]] }
 0x23a   :  { %v1067_v42 = vpop.permute.xlu1 %1066  ;;  %v960_v2 = vadd.f32 %v958_v24, %v946_v36  ;;  %vm4921_vm11 = vcmp.lt.s32.totalorder %v2467_v28, 126  ;;  %v1004_v45 = vstv %s3784_s18  ;;  %s2134_s18 = sld [smem:[#allocation3 + $0x4f]] }
 0x23b   :  { %v1062_v56 = vadd.f32 %v1060_v8, %v1048_v35  ;;  %v1063_v14 = vadd.f32 %v1061_v53, %v1049_v58  ;;  %v1068_v4 = vsel %vm411_vm4, %v1065_v20, %v1067_v42  ;;  %v1069_v32 = vsel %vm411_vm4, %v1067_v42, %v1065_v20  ;;  %1466 = vrot.lane.b32.xlu0 %v2806_v9, %s2212_s9  ;;  %v4917_v35 = vld [vmem:[#allocation54_spill] sm:$0xff]  ;;  %v4918_v58 = vld [vmem:[#allocation57_spill] sm:$0xff]  ;;  %vm4922_vm9 = vmmov %vm4921_vm11 }
 0x23c   :  { %v1070_v1 = vsel %vm305_vm3, %v1069_v32, 0.0  ;;  %v1071_v27 = vsel %vm306_vm2, %v1068_v4, 0.0  ;;  %1468 = vrot.lane.b32.xlu1 %v2747_v16, %s2212_s9  ;;  %v985_v8 = vsel %vm432_vm1, %v4918_v58, %v4917_v35  ;;  %v986_v38 = vsel %vm432_vm1, %v4917_v35, %v4918_v58  ;;  %v4920_v42 = vld [vmem:[#allocation58_spill] sm:$0xff]  ;;  %v4923_v32 = vld [vmem:[#allocation28_spill] sm:$0xff] }
 0x23d   :  { %v1074_v51 = vmul.f32 %v1073_v55, %v1070_v1  ;;  %v1075_v49 = vmul.f32 %v1073_v55, %v1071_v27  ;;  %v1085_v60 = vpop.permute.xlu0 %1084  ;;  %v973_v39 = vadd.f32 %v971_v3, %v959_v13  ;;  %v974_v34 = vadd.f32 %v972_v46, %v960_v2  ;;  %v4919_v55 = vld [vmem:[#allocation56_spill] sm:$0xff]  ;;  %v4925_v1 = vld [vmem:[#allocation34_spill] sm:$0xff] }
 0x23e   :  { %v1087_v57 = vpop.permute.xlu1 %1086  ;;  %v987_v17 = vsel %vm4759_vm15, %v985_v8, 0.0  ;;  %v977_v30 = vmul.f32 %v976_v15, %v4923_v32  ;;  %v988_v44 = vsel %vm4924_vm10, %v986_v38, 0.0  ;;  %v978_v27 = vmul.f32 %v976_v15, %v4925_v1 }
 0x23f   :  { %v1076_v52 = vadd.f32 %v1074_v51, %v1062_v56  ;;  %v1077_v43 = vadd.f32 %v1075_v49, %v1063_v14  ;;  %v1088_v19 = vsel %vm432_vm1, %v1085_v60, %v1087_v57  ;;  %v1089_v63 = vsel %vm432_vm1, %v1087_v57, %v1085_v60  ;;  %1610 = vrot.lane.b32.xlu0 %v3708_v0, %s2212_s9  ;;  %v4927_v51 = vld [vmem:[#allocation60_spill] sm:$0xff] }
 0x240   :  { %v1090_v5 = vsel %vm4759_vm15, %v1088_v19, 0.0  ;;  %v1091_v47 = vsel %vm4916_vm8, %v1089_v63, 0.0  ;;  %1612 = vrot.lane.b32.xlu1 %v3717_v54, %s2212_s9  ;;  %v999_v56 = vsel %vm4921_vm11, %v4920_v42, %v4919_v55  ;;  %v1000_v14 = vsel %vm4922_vm9, %v4919_v55, %v4920_v42 }
 0x241   :  { %v1082_v22 = vadd.f32 %v1080_v11, %v1076_v52  ;;  %v1083_v10 = vadd.f32 %v1081_v41, %v1077_v43  ;;  %v1094_v59 = vmul.f32 %v1093_v18, %v1090_v5  ;;  %v1095_v23 = vmul.f32 %v1093_v18, %v1091_v47  ;;  %v3792_v26 = vpop.permute.xlu0 %1686 }
 0x242   :  { %v3799_v62 = vpop.permute.xlu1 %1688  ;;  %v1013_v49 = vsel %vm462_vm13, %v4927_v51, %v4926_v37  ;;  %v1014_v60 = vsel %vm462_vm13, %v4926_v37, %v4927_v51  ;;  %v979_v29 = vadd.f32 %v977_v30, %v973_v39  ;;  %v991_v18 = vmul.f32 %v990_v61, %v987_v17 }
 0x243   :  { %v1096_v53 = vadd.f32 %v1094_v59, %v1082_v22  ;;  %v1097_v20 = vadd.f32 %v1095_v23, %v1083_v10  ;;  %1480 = vrot.lane.b32.xlu0 %v2806_v9, %s2213_s10  ;;  %vm4928_vm8 = vcmp.lt.s32.totalorder %v2863_v25, 14  ;;  %vm4929_vm11 = vcmp.lt.s32.totalorder %v2866_v7, 14 }
 0x244   :  { %1482 = vrot.lane.b32.xlu1 %v2747_v16, %s2213_s10  ;;  %v1001_v57 = vsel %vm4928_vm8, %v999_v56, 0.0  ;;  %v1002_v40 = vsel %vm4929_vm11, %v1000_v14, 0.0  ;;  %v980_v50 = vadd.f32 %v978_v27, %v974_v34  ;;  %v992_v41 = vmul.f32 %v990_v61, %v988_v44 }
 0x245   :  { %v3817_v6 = vpop.permute.xlu0 %1784  ;;  %v1018_v52 = vstv %s3797_s19  ;;  %v1107_v43 = vstv %s3801_s0  ;;  %vm4930_vm9 = vcmp.lt.s32.totalorder %v2863_v25, 13  ;;  %vm4931_vm10 = vcmp.lt.s32.totalorder %v2866_v7, 13  ;;  %s2135_s19 = sld [smem:[#allocation3 + $0x50]]  ;;  %s2128_s0 = sld [smem:[#allocation3 + $0x49]] }
 0x246   :  { %v3829_v4 = vpop.permute.xlu1 %1786  ;;  %v1015_v63 = vsel %vm4930_vm9, %v1013_v49, 0.0  ;;  %v1016_v24 = vsel %vm4931_vm10, %v1014_v60, 0.0  ;;  %vm4932_vm15 = vcmp.lt.s32.totalorder %v2467_v28, 126  ;;  %v1005_v47 = vmul.f32 %v1004_v45, %v1001_v57 }
 0x247   :  { %1624 = vrot.lane.b32.xlu0 %v3708_v0, %s2213_s10  ;;  %vm4933_vm8 = vmmov %vm4932_vm15  ;;  %v1006_v22 = vmul.f32 %v1004_v45, %v1002_v40  ;;  %vm4934_vm11 = vcmp.lt.s32.totalorder %v2863_v25, 14  ;;  %vm4935_vm9 = vcmp.lt.s32.totalorder %v2866_v7, 14  ;;  %v993_v23 = vadd.f32 %v991_v18, %v979_v29 }
 0x248   :  { %1626 = vrot.lane.b32.xlu1 %v3717_v54, %s2213_s10  ;;  %v994_v35 = vadd.f32 %v992_v41, %v980_v50  ;;  %v1019_v58 = vmul.f32 %v1018_v52, %v1015_v63  ;;  %v1020_v8 = vmul.f32 %v1018_v52, %v1016_v24  ;;  %v1121_v2 = vstv %s3831_s20  ;;  %s4264_s20 = sld [smem:[#allocation3 + $0x47]] }
 0x249   :  { %v1099_v11 = vpop.permute.xlu0 %1098  ;;  %v1007_v17 = vadd.f32 %v1005_v47, %v993_v23  ;;  %v1175_v29 = vstv %s3873_s21  ;;  %v1189_v40 = vstv %s3875_s22  ;;  %v1203_v47 = vstv %s3889_s23  ;;  %s4270_s21 = sld [smem:[#allocation3 + $0x48]]  ;;  %s4282_s22 = sld [smem:[#allocation3 + $0x5e]] }
 0x24a   :  { %v1101_v19 = vpop.permute.xlu1 %1100  ;;  %v1008_v55 = vadd.f32 %v1006_v22, %v994_v35  ;;  %s4296_s23 = sld [smem:[#allocation3 + $0x4a]] }
 0x24b   :  { %v1102_v3 = vsel %vm4932_vm15, %v1099_v11, %v1101_v19  ;;  %v1103_v5 = vsel %vm4933_vm8, %v1101_v19, %v1099_v11  ;;  %1546 = vrot.lane.b32.xlu0 %v2806_v9, %s2214_s11  ;;  %vm4936_vm15 = vcmp.lt.s32.totalorder %v2863_v25, 13  ;;  %v1021_v32 = vadd.f32 %v1019_v58, %v1007_v17 }
 0x24c   :  { %v1104_v10 = vsel %vm4934_vm11, %v1102_v3, 0.0  ;;  %v1105_v59 = vsel %vm4935_vm9, %v1103_v5, 0.0  ;;  %1548 = vrot.lane.b32.xlu1 %v2747_v16, %s2214_s11  ;;  %v1022_v30 = vadd.f32 %v1020_v8, %v1008_v55  ;;  %vm4937_vm8 = vcmp.lt.s32.totalorder %v2467_v28, 96 }
 0x24d   :  { %v1108_v36 = vmul.f32 %v1107_v43, %v1104_v10  ;;  %v1109_v46 = vmul.f32 %v1107_v43, %v1105_v59  ;;  %v1113_v13 = vpop.permute.xlu0 %1112  ;;  %v1209_v10 = vstv %s3891_s24  ;;  %vm4940_vm11 = vcmp.lt.s32.totalorder %v2863_v25, 15  ;;  %s4308_s24 = sld [smem:[#allocation3 + $0x51]] }
 0x24e   :  { %v1115_v15 = vpop.permute.xlu1 %1114  ;;  %vm4941_vm9 = vcmp.lt.s32.totalorder %v2866_v7, 15 }
 0x24f   :  { %v1110_v38 = vadd.f32 %v1108_v36, %v1096_v53  ;;  %v1111_v39 = vadd.f32 %v1109_v46, %v1097_v20  ;;  %v1116_v61 = vsel %vm462_vm13, %v1113_v13, %v1115_v15  ;;  %v1117_v34 = vsel %vm462_vm13, %v1115_v15, %v1113_v13  ;;  %1644 = vrot.lane.b32.xlu0 %v3708_v0, %s2214_s11 }
 0x250   :  { %v1118_v42 = vsel %vm4936_vm15, %v1116_v61, 0.0  ;;  %v1119_v56 = vsel %vm4931_vm10, %v1117_v34, 0.0  ;;  %1646 = vrot.lane.b32.xlu1 %v3717_v54, %s2214_s11  ;;  %v1691_v15 = vsel %vm4937_vm8, %v3799_v62, %v3792_v26  ;;  %v1223_v34 = vstv %s3911_s25  ;;  %vm4942_vm15 = vmmov %vm4937_vm8  ;;  %s4310_s25 = sld [smem:[#allocation3 + $0x4b]] }
 0x251   :  { %v1122_v53 = vmul.f32 %v1121_v2, %v1118_v42  ;;  %v1123_v20 = vmul.f32 %v1121_v2, %v1119_v56  ;;  %v1167_v14 = vpop.permute.xlu0 %1166  ;;  %vm4943_vm10 = vcmp.lt.s32.totalorder %v4910_v12, 224  ;;  %vm4944_vm8 = vcmp.lt.s32.totalorder %v2467_v28, 80 }
 0x252   :  { %v1169_v44 = vpop.permute.xlu1 %1168 }
 0x253   :  { %v1124_v1 = vadd.f32 %v1122_v53, %v1110_v38  ;;  %v1125_v27 = vadd.f32 %v1123_v20, %v1111_v39  ;;  %v1170_v45 = vsel %vm381_vm0, %v1167_v14, %v1169_v44  ;;  %v1171_v37 = vsel %vm381_vm0, %v1169_v44, %v1167_v14  ;;  %1560 = vrot.lane.b32.xlu0 %v2806_v9, %s2215_s12  ;;  %v4938_v38 = vld [vmem:[#allocation63_spill] sm:$0xff] }
 0x254   :  { %1562 = vrot.lane.b32.xlu1 %v2747_v16, %s2215_s12  ;;  %v1172_v18 = vsel %vm295_vm12, %v1171_v37, 0.0  ;;  %v1173_v57 = vsel %vm296_vm7, %v1170_v45, 0.0  ;;  %v1210_v39 = vmul.f32 %v1209_v10, %v4938_v38  ;;  %v3970_v45 = vsel %vm4943_vm10, %v1691_v15, 0.0 }
 0x255   :  { %v3901_v51 = vadd.f32 %v1124_v1, %v1021_v32  ;;  %v3903_v49 = vadd.f32 %v1125_v27, %v1022_v30  ;;  %v1181_v60 = vpop.permute.xlu0 %1180  ;;  %v1176_v19 = vmul.f32 %v1175_v29, %v1172_v18  ;;  %v1177_v63 = vmul.f32 %v1175_v29, %v1173_v57 }
 0x256   :  { %v1183_v11 = vpop.permute.xlu1 %1182  ;;  %v3966_v27 = vsel %vm4942_vm15, %v3792_v26, %v3799_v62  ;;  %v1789_v37 = vsel %vm4944_vm8, %v3829_v4, %v3817_v6  ;;  %vm4947_vm15 = vcmp.lt.s32.totalorder %v2863_v25, 14  ;;  %vm4948_vm10 = vcmp.lt.s32.totalorder %v2866_v7, 14 }
 0x257   :  { %v1184_v50 = vsel %vm396_vm14, %v1181_v60, %v1183_v11  ;;  %v1185_v41 = vsel %vm396_vm14, %v1183_v11, %v1181_v60  ;;  %1658 = vrot.lane.b32.xlu0 %v3708_v0, %s2215_s12  ;;  %v1237_v60 = vstv %s3927_s26  ;;  %s4317_s26 = sld [smem:[#allocation3 + $0x52]] }
 0x258   :  { %v1186_v52 = vsel %vm301_vm6, %v1185_v41, 0.0  ;;  %v1187_v43 = vsel %vm302_vm5, %v1184_v50, 0.0  ;;  %1660 = vrot.lane.b32.xlu1 %v3717_v54, %s2215_s12 }
 0x259   :  { %v1190_v24 = vmul.f32 %v1189_v40, %v1186_v52  ;;  %v1191_v3 = vmul.f32 %v1189_v40, %v1187_v43  ;;  %v1195_v5 = vpop.permute.xlu0 %1194  ;;  %v3995_v43 = vsel %vm4944_vm8, %v3817_v6, %v3829_v4  ;;  %vm4953_vm8 = vcmp.lt.s32.totalorder %v2866_v7, 15 }
 0x25a   :  { %v1197_v22 = vpop.permute.xlu1 %1196 }
 0x25b   :  { %v1192_v59 = vadd.f32 %v1190_v24, %v1176_v19  ;;  %v1193_v23 = vadd.f32 %v1191_v3, %v1177_v63  ;;  %v1198_v36 = vsel %vm411_vm4, %v1195_v5, %v1197_v22  ;;  %v1199_v46 = vsel %vm411_vm4, %v1197_v22, %v1195_v5  ;;  %1574 = vrot.lane.b32.xlu0 %v2806_v9, %s2216_s13  ;;  %v4939_v9 = vld [vmem:[#allocation64_spill] sm:$0xff] }
 0x25c   :  { %v1200_v13 = vsel %vm305_vm3, %v1199_v46, 0.0  ;;  %v1201_v35 = vsel %vm306_vm2, %v1198_v36, 0.0  ;;  %1576 = vrot.lane.b32.xlu1 %v2747_v16, %s2216_s13  ;;  %v1211_v61 = vmul.f32 %v1209_v10, %v4939_v9  ;;  %v1251_v63 = vstv %s3948_s27  ;;  %s4324_s27 = sld [smem:[#allocation3 + $0x4c]] }
 0x25d   :  { %v1204_v58 = vmul.f32 %v1203_v47, %v1200_v13  ;;  %v1205_v8 = vmul.f32 %v1203_v47, %v1201_v35  ;;  %v1215_v2 = vpop.permute.xlu0 %1214 }
 0x25e   :  { %v1217_v17 = vpop.permute.xlu1 %1216 }
 0x25f   :  { %v1206_v55 = vadd.f32 %v1204_v58, %v1192_v59  ;;  %v1207_v42 = vadd.f32 %v1205_v8, %v1193_v23  ;;  %v1218_v16 = vsel %vm432_vm1, %v1215_v2, %v1217_v17  ;;  %v1219_v56 = vsel %vm432_vm1, %v1217_v17, %v1215_v2  ;;  %1672 = vrot.lane.b32.xlu0 %v3708_v0, %s2216_s13 }
 0x260   :  { %v1220_v53 = vsel %vm4940_vm11, %v1218_v16, 0.0  ;;  %v1221_v20 = vsel %vm4941_vm9, %v1219_v56, 0.0  ;;  %1674 = vrot.lane.b32.xlu1 %v3717_v54, %s2216_s13  ;;  %vm4945_vm11 = vcmp.lt.s32.totalorder %v2467_v28, 126  ;;  %v1371_v23 = vstv %s3977_s28  ;;  %s4332_s28 = sld [smem:[#allocation3 + $0x53]] }
 0x261   :  { %v1212_v14 = vadd.f32 %v1210_v39, %v1206_v55  ;;  %v1213_v32 = vadd.f32 %v1211_v61, %v1207_v42  ;;  %v1224_v30 = vmul.f32 %v1223_v34, %v1220_v53  ;;  %v1225_v44 = vmul.f32 %v1223_v34, %v1221_v20  ;;  %v1229_v1 = vpop.permute.xlu0 %1228  ;;  %vm4946_vm9 = vmmov %vm4945_vm11 }
 0x262   :  { %v1231_v29 = vpop.permute.xlu1 %1230  ;;  %v1273_v42 = vstv %s4014_s29  ;;  %v1287_v20 = vstv %s4017_s30  ;;  %s4334_s29 = sld [smem:[#allocation3 + $0x54]]  ;;  %s4336_s30 = sld [smem:[#allocation3 + $0x5b]] }
 0x263   :  { %v1226_v18 = vadd.f32 %v1224_v30, %v1212_v14  ;;  %v1227_v57 = vadd.f32 %v1225_v44, %v1213_v32  ;;  %v1232_v26 = vsel %vm4945_vm11, %v1229_v1, %v1231_v29  ;;  %v1233_v62 = vsel %vm4946_vm9, %v1231_v29, %v1229_v1  ;;  %1694 = vrot.lane.b32.xlu0 %v3966_v27, %s2211_s8 }
 0x264   :  { %v1234_v40 = vsel %vm4947_vm15, %v1232_v26, 0.0  ;;  %v1235_v11 = vsel %vm4948_vm10, %v1233_v62, 0.0  ;;  %1696 = vrot.lane.b32.xlu1 %v3970_v45, %s2211_s8  ;;  %vm4949_vm11 = vcmp.lt.s32.totalorder %v4910_v12, 208  ;;  %vm4950_vm9 = vcmp.lt.s32.totalorder %v2863_v25, 13 }
 0x265   :  { %v1238_v50 = vmul.f32 %v1237_v60, %v1234_v40  ;;  %v1239_v41 = vmul.f32 %v1237_v60, %v1235_v11  ;;  %v1243_v52 = vpop.permute.xlu0 %1242  ;;  %v3999_v19 = vsel %vm4949_vm11, %v1789_v37, 0.0  ;;  %vm4951_vm15 = vcmp.lt.s32.totalorder %v2866_v7, 13 }
 0x266   :  { %v1245_v24 = vpop.permute.xlu1 %1244  ;;  %vm4952_vm10 = vcmp.lt.s32.totalorder %v2863_v25, 15 }
 0x267   :  { %v1240_v3 = vadd.f32 %v1238_v50, %v1226_v18  ;;  %v1241_v5 = vadd.f32 %v1239_v41, %v1227_v57  ;;  %v1246_v47 = vsel %vm462_vm13, %v1243_v52, %v1245_v24  ;;  %v1247_v22 = vsel %vm462_vm13, %v1245_v24, %v1243_v52  ;;  %1792 = vrot.lane.b32.xlu0 %v3995_v43, %s2211_s8  ;;  %vm4954_vm11 = vmmov %vm4952_vm10 }
 0x268   :  { %v1248_v6 = vsel %vm4950_vm9, %v1246_v47, 0.0  ;;  %v1249_v12 = vsel %vm4951_vm15, %v1247_v22, 0.0  ;;  %1794 = vrot.lane.b32.xlu1 %v3999_v19, %s2211_s8  ;;  %s4031_s8 = sld [smem:[#allocation3 + $0x40]]  ;;  %v1301_v47 = vstv %s4047_s4  ;;  %vm4955_vm9 = vmmov %vm4953_vm8  ;;  %vm4956_vm15 = vcmp.lt.s32.totalorder %v2467_v28, 126  ;;  %s4349_s4 = sld [smem:[#allocation3 + $0x5c]] }
 0x269   :  { %v1252_v4 = vmul.f32 %v1251_v63, %v1248_v6  ;;  %v1253_v10 = vmul.f32 %v1251_v63, %v1249_v12  ;;  %v1363_v59 = vpop.permute.xlu0 %1362 }
 0x26a   :  { %v1365_v36 = vpop.permute.xlu1 %1364 }
 0x26b   :  { %v1254_v46 = vadd.f32 %v1252_v4, %v1240_v3  ;;  %v1255_v13 = vadd.f32 %v1253_v10, %v1241_v5  ;;  %v1366_v35 = vsel %vm381_vm0, %v1363_v59, %v1365_v36  ;;  %v1367_v58 = vsel %vm381_vm0, %v1365_v36, %v1363_v59  ;;  %1708 = vrot.lane.b32.xlu0 %v3966_v27, %s2212_s9 }
 0x26c   :  { %v1368_v8 = vsel %vm295_vm12, %v1367_v58, 0.0  ;;  %v1369_v2 = vsel %vm296_vm7, %v1366_v35, 0.0  ;;  %1710 = vrot.lane.b32.xlu1 %v3970_v45, %s2212_s9 }
 0x26d   :  { %v1372_v15 = vmul.f32 %v1371_v23, %v1368_v8  ;;  %v1373_v38 = vmul.f32 %v1371_v23, %v1369_v2  ;;  %v1265_v39 = vpop.permute.xlu0 %1264  ;;  %v1307_v8 = vstv %s4064_s5  ;;  %s4478_s5 = sld [smem:[#allocation3 + $0x56]] }
 0x26e   :  { %v1267_v9 = vpop.permute.xlu1 %1266  ;;  %v1385_v26 = vstv %s4031_s8  ;;  %s4338_s8 = sld [smem:[#allocation3 + $0x55]] }
 0x26f   :  { %v1374_v61 = vadd.f32 %v1372_v15, %v1254_v46  ;;  %v1375_v34 = vadd.f32 %v1373_v38, %v1255_v13  ;;  %v1268_v17 = vsel %vm381_vm0, %v1265_v39, %v1267_v9  ;;  %v1269_v55 = vsel %vm381_vm0, %v1267_v9, %v1265_v39  ;;  %1806 = vrot.lane.b32.xlu0 %v3995_v43, %s2212_s9 }
 0x270   :  { %v1270_v16 = vsel %vm295_vm12, %v1269_v55, 0.0  ;;  %v1271_v56 = vsel %vm296_vm7, %v1268_v17, 0.0  ;;  %1808 = vrot.lane.b32.xlu1 %v3999_v19, %s2212_s9  ;;  %s4062_s9 = sld [smem:[#allocation3 + $0x41]] }
 0x271   :  { %v1279_v53 = vpop.permute.xlu0 %1278  ;;  %v1274_v32 = vmul.f32 %v1273_v42, %v1270_v16  ;;  %v1275_v30 = vmul.f32 %v1273_v42, %v1271_v56  ;;  %v1308_v42 = vmul.f32 %v1307_v8, %v3240_v21  ;;  %v1321_v16 = vstv %s4079_s6  ;;  %s4496_s6 = sld [smem:[#allocation3 + $0x57]] }
 0x272   :  { %v1281_v14 = vpop.permute.xlu1 %1280 }
 0x273   :  { %v1282_v44 = vsel %vm396_vm14, %v1279_v53, %v1281_v14  ;;  %v1283_v1 = vsel %vm396_vm14, %v1281_v14, %v1279_v53  ;;  %1722 = vrot.lane.b32.xlu0 %v3966_v27, %s2213_s10  ;;  %v1309_v53 = vmul.f32 %v1307_v8, %v3248_v48 }
 0x274   :  { %v1284_v37 = vsel %vm301_vm6, %v1283_v1, 0.0  ;;  %v1285_v60 = vsel %vm302_vm5, %v1282_v44, 0.0  ;;  %1724 = vrot.lane.b32.xlu1 %v3970_v45, %s2213_s10 }
 0x275   :  { %v1288_v29 = vmul.f32 %v1287_v20, %v1284_v37  ;;  %v1289_v18 = vmul.f32 %v1287_v20, %v1285_v60  ;;  %v1377_v57 = vpop.permute.xlu0 %1376  ;;  %v1405_v20 = vstv %s4081_s7  ;;  %s4522_s7 = sld [smem:[#allocation3 + $0x58]] }
 0x276   :  { %v1379_v62 = vpop.permute.xlu1 %1378  ;;  %v1399_v35 = vstv %s4062_s9  ;;  %s4351_s9 = sld [smem:[#allocation3 + $0x5d]] }
 0x277   :  { %v1290_v40 = vadd.f32 %v1288_v29, %v1274_v32  ;;  %v1291_v11 = vadd.f32 %v1289_v18, %v1275_v30  ;;  %v1380_v50 = vsel %vm396_vm14, %v1377_v57, %v1379_v62  ;;  %v1381_v41 = vsel %vm396_vm14, %v1379_v62, %v1377_v57  ;;  %1820 = vrot.lane.b32.xlu0 %v3995_v43, %s2213_s10 }
 0x278   :  { %v1382_v52 = vsel %vm301_vm6, %v1381_v41, 0.0  ;;  %v1383_v63 = vsel %vm302_vm5, %v1380_v50, 0.0  ;;  %1822 = vrot.lane.b32.xlu1 %v3999_v19, %s2213_s10  ;;  %s4097_s10 = sld [smem:[#allocation3 + $0x43]]  ;;  %v1406_v57 = vmul.f32 %v1405_v20, %v3226_v33 }
 0x279   :  { %v1386_v24 = vmul.f32 %v1385_v26, %v1382_v52  ;;  %v1387_v3 = vmul.f32 %v1385_v26, %v1383_v63  ;;  %v1293_v5 = vpop.permute.xlu0 %1292  ;;  %v1407_v26 = vmul.f32 %v1405_v20, %v3230_v31 }
 0x27a   :  { %v1295_v22 = vpop.permute.xlu1 %1294 }
 0x27b   :  { %v1388_v6 = vadd.f32 %v1386_v24, %v1374_v61  ;;  %v1389_v12 = vadd.f32 %v1387_v3, %v1375_v34  ;;  %v1296_v4 = vsel %vm411_vm4, %v1293_v5, %v1295_v22  ;;  %v1297_v10 = vsel %vm411_vm4, %v1295_v22, %v1293_v5  ;;  %1742 = vrot.lane.b32.xlu0 %v3966_v27, %s2214_s11 }
 0x27c   :  { %v1298_v59 = vsel %vm305_vm3, %v1297_v10, 0.0  ;;  %v1299_v23 = vsel %vm306_vm2, %v1296_v4, 0.0  ;;  %1744 = vrot.lane.b32.xlu1 %v3970_v45, %s2214_s11  ;;  %v1335_v22 = vstv %s4115_s14  ;;  %s4541_s14 = sld [smem:[#allocation3 + $0x59]] }
 0x27d   :  { %v1302_v36 = vmul.f32 %v1301_v47, %v1298_v59  ;;  %v1303_v46 = vmul.f32 %v1301_v47, %v1299_v23  ;;  %v1391_v13 = vpop.permute.xlu0 %1390 }
 0x27e   :  { %v1393_v58 = vpop.permute.xlu1 %1392  ;;  %v1419_v62 = vstv %s4097_s10  ;;  %s4524_s10 = sld [smem:[#allocation3 + $0x5f]] }
 0x27f   :  { %v1304_v2 = vadd.f32 %v1302_v36, %v1290_v40  ;;  %v1305_v15 = vadd.f32 %v1303_v46, %v1291_v11  ;;  %v1394_v38 = vsel %vm411_vm4, %v1391_v13, %v1393_v58  ;;  %v1395_v39 = vsel %vm411_vm4, %v1393_v58, %v1391_v13  ;;  %1840 = vrot.lane.b32.xlu0 %v3995_v43, %s2214_s11 }
 0x280   :  { %v1396_v9 = vsel %vm305_vm3, %v1395_v39, 0.0  ;;  %v1397_v61 = vsel %vm306_vm2, %v1394_v38, 0.0  ;;  %1842 = vrot.lane.b32.xlu1 %v3999_v19, %s2214_s11  ;;  %s4132_s11 = sld [smem:[#allocation3 + $0x44]] }
 0x281   :  { %v1400_v34 = vmul.f32 %v1399_v35, %v1396_v9  ;;  %v1401_v17 = vmul.f32 %v1399_v35, %v1397_v61  ;;  %v1313_v55 = vpop.permute.xlu0 %1312  ;;  %v1310_v1 = vadd.f32 %v1308_v42, %v1304_v2  ;;  %v1311_v37 = vadd.f32 %v1309_v53, %v1305_v15 }
 0x282   :  { %v1315_v56 = vpop.permute.xlu1 %1314  ;;  %v1349_v42 = vstv %s4147_s15  ;;  %s4546_s15 = sld [smem:[#allocation3 + $0x5a]] }
 0x283   :  { %v1402_v14 = vadd.f32 %v1400_v34, %v1388_v6  ;;  %v1403_v32 = vadd.f32 %v1401_v17, %v1389_v12  ;;  %v1316_v30 = vsel %vm432_vm1, %v1313_v55, %v1315_v56  ;;  %v1317_v44 = vsel %vm432_vm1, %v1315_v56, %v1313_v55  ;;  %1756 = vrot.lane.b32.xlu0 %v3966_v27, %s2215_s12 }
 0x284   :  { %v1318_v21 = vsel %vm4952_vm10, %v1316_v30, 0.0  ;;  %v1319_v48 = vsel %vm4953_vm8, %v1317_v44, 0.0  ;;  %1758 = vrot.lane.b32.xlu1 %v3970_v45, %s2215_s12  ;;  %vm4957_vm10 = vmmov %vm4956_vm15  ;;  %vm4958_vm8 = vcmp.lt.s32.totalorder %v2863_v25, 14 }
 0x285   :  { %v1322_v60 = vmul.f32 %v1321_v16, %v1318_v21  ;;  %v1323_v29 = vmul.f32 %v1321_v16, %v1319_v48  ;;  %v1411_v18 = vpop.permute.xlu0 %1410  ;;  %v1408_v63 = vadd.f32 %v1406_v57, %v1402_v14  ;;  %v1409_v24 = vadd.f32 %v1407_v26, %v1403_v32 }
 0x286   :  { %v1413_v40 = vpop.permute.xlu1 %1412  ;;  %v1433_v58 = vstv %s4132_s11  ;;  %s4544_s11 = sld [smem:[#allocation3 + $0x60]] }
 0x287   :  { %v1324_v11 = vadd.f32 %v1322_v60, %v1310_v1  ;;  %v1325_v50 = vadd.f32 %v1323_v29, %v1311_v37  ;;  %v1414_v41 = vsel %vm432_vm1, %v1411_v18, %v1413_v40  ;;  %v1415_v52 = vsel %vm432_vm1, %v1413_v40, %v1411_v18  ;;  %1854 = vrot.lane.b32.xlu0 %v3995_v43, %s2215_s12 }
 0x288   :  { %v1416_v33 = vsel %vm4954_vm11, %v1414_v41, 0.0  ;;  %v1417_v31 = vsel %vm4955_vm9, %v1415_v52, 0.0  ;;  %1856 = vrot.lane.b32.xlu1 %v3999_v19, %s2215_s12  ;;  %vm4959_vm11 = vcmp.lt.s32.totalorder %v2866_v7, 14  ;;  %s4162_s12 = sld [smem:[#allocation3 + $0x45]]  ;;  %vm4960_vm9 = vmmov %vm4957_vm10  ;;  %v1461_v52 = vstv %s2125_s16 }
 0x289   :  { %v1420_v3 = vmul.f32 %v1419_v62, %v1416_v33  ;;  %v1421_v5 = vmul.f32 %v1419_v62, %v1417_v31  ;;  %v1327_v47 = vpop.permute.xlu0 %1326 }
 0x28a   :  { %v1329_v6 = vpop.permute.xlu1 %1328 }
 0x28b   :  { %v1422_v12 = vadd.f32 %v1420_v3, %v1408_v63  ;;  %v1423_v4 = vadd.f32 %v1421_v5, %v1409_v24  ;;  %v1330_v10 = vsel %vm4956_vm15, %v1327_v47, %v1329_v6  ;;  %v1331_v59 = vsel %vm4957_vm10, %v1329_v6, %v1327_v47  ;;  %1770 = vrot.lane.b32.xlu0 %v3966_v27, %s2216_s13  ;;  %vm4961_vm15 = vmmov %vm4960_vm9 }
 0x28c   :  { %v1332_v23 = vsel %vm4958_vm8, %v1330_v10, 0.0  ;;  %v1333_v36 = vsel %vm4959_vm11, %v1331_v59, 0.0  ;;  %1772 = vrot.lane.b32.xlu1 %v3970_v45, %s2216_s13  ;;  %vm4962_vm10 = vmmov %vm4958_vm8 }
 0x28d   :  { %v1336_v46 = vmul.f32 %v1335_v22, %v1332_v23  ;;  %v1337_v13 = vmul.f32 %v1335_v22, %v1333_v36  ;;  %v1425_v35 = vpop.permute.xlu0 %1424  ;;  %vm4963_vm8 = vmmov %vm4959_vm11  ;;  %vm4964_vm11 = vcmp.lt.s32.totalorder %v2863_v25, 13 }
 0x28e   :  { %v1427_v8 = vpop.permute.xlu1 %1426  ;;  %v1447_v1 = vstv %s4162_s12  ;;  %s4559_s12 = sld [smem:[#allocation3 + $0x61]] }
 0x28f   :  { %v1338_v2 = vadd.f32 %v1336_v46, %v1324_v11  ;;  %v1339_v15 = vadd.f32 %v1337_v13, %v1325_v50  ;;  %v1428_v38 = vsel %vm4960_vm9, %v1425_v35, %v1427_v8  ;;  %v1429_v39 = vsel %vm4961_vm15, %v1427_v8, %v1425_v35  ;;  %1868 = vrot.lane.b32.xlu0 %v3995_v43, %s2216_s13  ;;  %vm4966_vm15 = vmmov %vm4964_vm11 }
 0x290   :  { %v1430_v9 = vsel %vm4962_vm10, %v1428_v38, 0.0  ;;  %v1431_v61 = vsel %vm4963_vm8, %v1429_v39, 0.0  ;;  %1870 = vrot.lane.b32.xlu1 %v3999_v19, %s2216_s13  ;;  %vm4965_vm9 = vcmp.lt.s32.totalorder %v2866_v7, 13  ;;  %s2132_s13 = sld [smem:[#allocation3 + $0x4d]]  ;;  %vm4974_vm8 = vcmask 1041409  }
 0x291   :  { %v1434_v34 = vmul.f32 %v1433_v58, %v1430_v9  ;;  %v1435_v17 = vmul.f32 %v1433_v58, %v1431_v61  ;;  %v1341_v55 = vpop.permute.xlu0 %1340  ;;  %vm4967_vm10 = vmmov %vm4965_vm9  ;;  %v1619_v9 = vstv %s2133_s17 }
 0x292   :  { %v1343_v16 = vpop.permute.xlu1 %1342 }
 0x293   :  { %v1436_v56 = vadd.f32 %v1434_v34, %v1422_v12  ;;  %v1437_v53 = vadd.f32 %v1435_v17, %v1423_v4  ;;  %v1344_v20 = vsel %vm462_vm13, %v1341_v55, %v1343_v16  ;;  %v1345_v14 = vsel %vm462_vm13, %v1343_v16, %v1341_v55 }
 0x294   :  { %v1346_v32 = vsel %vm4964_vm11, %v1344_v20, 0.0  ;;  %v1347_v30 = vsel %vm4965_vm9, %v1345_v14, 0.0  ;;  %v1633_v20 = vstv %s2134_s18  ;;  %vm4975_vm11 = vmmov %vm4974_vm8  ;;  %vm4978_vm9 = vcmask 1042434  }
 0x295   :  { %v1350_v44 = vmul.f32 %v1349_v42, %v1346_v32  ;;  %v1351_v21 = vmul.f32 %v1349_v42, %v1347_v30  ;;  %v1439_v48 = vpop.permute.xlu0 %1438 }
 0x296   :  { %v1441_v37 = vpop.permute.xlu1 %1440 }
 0x297   :  { %v1352_v60 = vadd.f32 %v1350_v44, %v1338_v2  ;;  %v1353_v29 = vadd.f32 %v1351_v21, %v1339_v15  ;;  %v1442_v18 = vsel %vm462_vm13, %v1439_v48, %v1441_v37  ;;  %v1443_v57 = vsel %vm462_vm13, %v1441_v37, %v1439_v48 }
 0x298   :  { %v1444_v26 = vsel %vm4966_vm15, %v1442_v18, 0.0  ;;  %v1445_v62 = vsel %vm4967_vm10, %v1443_v57, 0.0  ;;  %v1605_v2 = vstv %s2132_s13  ;;  %v1639_v37 = vstv %s2135_s19  ;;  %vm4979_vm15 = vmmov %vm4978_vm9 }
 0x299   :  { %v1448_v40 = vmul.f32 %v1447_v1, %v1444_v26  ;;  %v1449_v11 = vmul.f32 %v1447_v1, %v1445_v62  ;;  %v1453_v50 = vpop.permute.xlu0 %1452  ;;  %vm4982_vm10 = vcmask 1043459  }
 0x29a   :  { %v1455_v41 = vpop.permute.xlu1 %1454 }
 0x29b   :  { %v1450_v33 = vadd.f32 %v1448_v40, %v1436_v56  ;;  %v1451_v31 = vadd.f32 %v1449_v11, %v1437_v53  ;;  %v1456_v63 = vsel %vm381_vm0, %v1453_v50, %v1455_v41  ;;  %v1457_v24 = vsel %vm381_vm0, %v1455_v41, %v1453_v50 }
 0x29c   :  { %v1458_v3 = vsel %vm295_vm12, %v1457_v24, 0.0  ;;  %v1459_v5 = vsel %vm296_vm7, %v1456_v63, 0.0  ;;  %v1640_v50 = vmul.f32 %v1639_v37, %v3708_v0  ;;  %v1641_v41 = vmul.f32 %v1639_v37, %v3717_v54  ;;  %v4972_v54 = vld [vmem:[#allocation42_spill] sm:$0xff] }
 0x29d   :  { %v1462_v47 = vmul.f32 %v1461_v52, %v1458_v3  ;;  %v1463_v22 = vmul.f32 %v1461_v52, %v1459_v5  ;;  %v1495_v52 = vstv %s2128_s0  ;;  %v4968_v3 = vld [vmem:[#allocation40_spill] sm:$0xff] }
 0x29e   :  { %v1496_v5 = vmul.f32 %v1495_v52, %v4968_v3 }
 0x29f   :  { %v4202_v6 = vadd.f32 %v1462_v47, %v1352_v60  ;;  %v4204_v12 = vadd.f32 %v1463_v22, %v1353_v29  ;;  %v4969_v47 = vld [vmem:[#allocation31_spill] sm:$0xff] }
 0x2a0   :  { %v1497_v22 = vmul.f32 %v1495_v52, %v4969_v47 }
 0x2a9   :  { %v1597_v4 = vpop.permute.xlu0 %1596 }
 0x2aa   :  { %v1599_v10 = vpop.permute.xlu1 %1598 }
 0x2ab   :  { %v1600_v36 = vsel %vm381_vm0, %v1597_v4, %v1599_v10  ;;  %v1601_v46 = vsel %vm381_vm0, %v1599_v10, %v1597_v4  ;;  %v4970_v4 = vld [vmem:[#allocation41_spill] sm:$0xff] }
 0x2ac   :  { %v1602_v15 = vsel %vm295_vm12, %v1601_v46, 0.0  ;;  %v1603_v38 = vsel %vm296_vm7, %v1600_v36, 0.0  ;;  %v1498_v10 = vmul.f32 %v1495_v52, %v4970_v4  ;;  %v4971_v36 = vld [vmem:[#allocation32_spill] sm:$0xff] }
 0x2ad   :  { %v4206_v59 = vpop.permute.xlu0 %1466  ;;  %v1606_v55 = vmul.f32 %v1605_v2, %v1602_v15  ;;  %v1607_v42 = vmul.f32 %v1605_v2, %v1603_v38  ;;  %v1499_v46 = vmul.f32 %v1495_v52, %v4971_v36  ;;  %v4976_v38 = vld [vmem:[#allocation43_spill] sm:$0xff] }
 0x2ae   :  { %v4208_v23 = vpop.permute.xlu1 %1468  ;;  %v1528_v2 = vsel %vm4974_vm8, %v1498_v10, %v1496_v5  ;;  %vm4983_vm8 = vmmov %vm4982_vm10 }
 0x2af   :  { %v1608_v32 = vadd.f32 %v1606_v55, %v1450_v33  ;;  %v1609_v30 = vadd.f32 %v1607_v42, %v1451_v31  ;;  %v1535_v15 = vsel %vm4975_vm11, %v1499_v46, %v1497_v22  ;;  %vm4986_vm11 = vcmask 1044484   ;;  %v4989_v22 = vld [vmem:[#allocation38_spill] sm:$0xff] }
 0x2b0   :  { %v1509_v4 = vmul.f32 %v1495_v52, %v4989_v22 }
 0x2b1   :  { %v1611_v13 = vpop.permute.xlu0 %1610 }
 0x2b2   :  { %v1613_v35 = vpop.permute.xlu1 %1612 }
 0x2b3   :  { %v1614_v58 = vsel %vm396_vm14, %v1611_v13, %v1613_v35  ;;  %v1615_v8 = vsel %vm396_vm14, %v1613_v35, %v1611_v13  ;;  %v1500_v13 = vmul.f32 %v1495_v52, %v4972_v54  ;;  %v4973_v35 = vld [vmem:[#allocation33_spill] sm:$0xff] }
 0x2b4   :  { %v1616_v61 = vsel %vm301_vm6, %v1615_v8, 0.0  ;;  %v1617_v34 = vsel %vm302_vm5, %v1614_v58, 0.0  ;;  %v1501_v58 = vmul.f32 %v1495_v52, %v4973_v35 }
 0x2b5   :  { %v4222_v39 = vpop.permute.xlu0 %1480  ;;  %v1620_v16 = vmul.f32 %v1619_v9, %v1616_v61  ;;  %v1621_v56 = vmul.f32 %v1619_v9, %v1617_v34  ;;  %v1502_v9 = vmul.f32 %v1495_v52, %v4976_v38  ;;  %v4977_v61 = vld [vmem:[#allocation35_spill] sm:$0xff]  ;;  %v1529_v42 = vsel %vm4978_vm9, %v1500_v13, %v1528_v2  ;;  %vm4987_vm9 = vmmov %vm4986_vm11 }
 0x2b6   :  { %v4228_v17 = vpop.permute.xlu1 %1482  ;;  %v1503_v34 = vmul.f32 %v1495_v52, %v4977_v61  ;;  %v4992_v2 = vld [vmem:[#allocation47_spill] sm:$0xff] }
 0x2b7   :  { %v1622_v60 = vadd.f32 %v1620_v16, %v1608_v32  ;;  %v1623_v29 = vadd.f32 %v1621_v56, %v1609_v30  ;;  %v1536_v16 = vsel %vm4979_vm15, %v1501_v58, %v1535_v15  ;;  %v1530_v30 = vsel %vm4982_vm10, %v1502_v9, %v1529_v42  ;;  %v4993_v38 = vld [vmem:[#allocation39_spill] sm:$0xff] }
 0x2b8   :  { %vm4990_vm15 = vcmask 1045509   ;;  %v1510_v15 = vmul.f32 %v1495_v52, %v4992_v2  ;;  %v1511_v9 = vmul.f32 %v1495_v52, %v4993_v38 }
 0x2b9   :  { %v1625_v53 = vpop.permute.xlu0 %1624  ;;  %vm4991_vm10 = vmmov %vm4990_vm15 }
 0x2ba   :  { %v1627_v14 = vpop.permute.xlu1 %1626 }
 0x2bb   :  { %v1628_v44 = vsel %vm411_vm4, %v1625_v53, %v1627_v14  ;;  %v1629_v21 = vsel %vm411_vm4, %v1627_v14, %v1625_v53  ;;  %v4980_v53 = vld [vmem:[#allocation44_spill] sm:$0xff] }
 0x2bc   :  { %v1630_v48 = vsel %vm305_vm3, %v1629_v21, 0.0  ;;  %v1631_v1 = vsel %vm306_vm2, %v1628_v44, 0.0  ;;  %v4981_v14 = vld [vmem:[#allocation36_spill] sm:$0xff]  ;;  %v1537_v44 = vsel %vm4983_vm8, %v1503_v34, %v1536_v16  ;;  %v1835_v34 = vstv %s4282_s22 }
 0x2bd   :  { %v1634_v18 = vmul.f32 %v1633_v20, %v1630_v48  ;;  %v1635_v57 = vmul.f32 %v1633_v20, %v1631_v1  ;;  %v4238_v26 = vpop.permute.xlu0 %1546  ;;  %v1504_v20 = vmul.f32 %v1495_v52, %v4980_v53  ;;  %v1505_v32 = vmul.f32 %v1495_v52, %v4981_v14 }
 0x2be   :  { %v4240_v62 = vpop.permute.xlu1 %1548  ;;  %v1470_v48 = vsel %vm396_vm14, %v4206_v59, %v4208_v23  ;;  %v1471_v1 = vsel %vm396_vm14, %v4208_v23, %v4206_v59  ;;  %vm4994_vm8 = vcmask 1046534  }
 0x2bf   :  { %v1636_v40 = vadd.f32 %v1634_v18, %v1622_v60  ;;  %v1637_v11 = vadd.f32 %v1635_v57, %v1623_v29  ;;  %v4984_v60 = vld [vmem:[#allocation45_spill] sm:$0xff]  ;;  %v1531_v59 = vsel %vm4986_vm11, %v1504_v20, %v1530_v30  ;;  %v1538_v23 = vsel %vm4987_vm9, %v1505_v32, %v1537_v44  ;;  %vm4995_vm11 = vmmov %vm4994_vm8 }
 0x2c0   :  { %v1506_v29 = vmul.f32 %v1495_v52, %v4984_v60  ;;  %v4985_v18 = vld [vmem:[#allocation37_spill] sm:$0xff]  ;;  %v1473_v3 = vsel %vm302_vm5, %v1470_v48, 0.0  ;;  %v1555_v32 = vstv %s4296_s23  ;;  %v1653_v44 = vstv %s4308_s24 }
 0x2c1   :  { %v4244_v33 = vpop.permute.xlu0 %1644  ;;  %v4246_v31 = vadd.f32 %v1640_v50, %v1636_v40  ;;  %v4248_v63 = vadd.f32 %v1641_v41, %v1637_v11  ;;  %v1507_v57 = vmul.f32 %v1495_v52, %v4985_v18  ;;  %v1484_v40 = vsel %vm411_vm4, %v4222_v39, %v4228_v17 }
 0x2c2   :  { %v4250_v24 = vpop.permute.xlu1 %1646  ;;  %v1485_v11 = vsel %vm411_vm4, %v4228_v17, %v4222_v39  ;;  %v1475_v50 = vstv %s4264_s20  ;;  %v1472_v41 = vsel %vm301_vm6, %v1471_v1, 0.0  ;;  %v1489_v39 = vstv %s4270_s21  ;;  %v4988_v17 = vld [vmem:[#allocation46_spill] sm:$0xff] }
 0x2c3   :  { %v1508_v47 = vmul.f32 %v1495_v52, %v4988_v17  ;;  %v1486_v36 = vsel %vm305_vm3, %v1485_v11, 0.0  ;;  %v1487_v46 = vsel %vm306_vm2, %v1484_v40, 0.0  ;;  %v1532_v54 = vsel %vm4990_vm15, %v1506_v29, %v1531_v59 }
 0x2c4   :  { %v1539_v13 = vsel %vm4991_vm10, %v1507_v57, %v1538_v23  ;;  %v1476_v35 = vmul.f32 %v1475_v50, %v1472_v41  ;;  %v1477_v58 = vmul.f32 %v1475_v50, %v1473_v3  ;;  %v1490_v42 = vmul.f32 %v1489_v39, %v1486_v36 }
 0x2c5   :  { %v4256_v0 = vpop.permute.xlu0 %1560  ;;  %v1491_v16 = vmul.f32 %v1489_v39, %v1487_v46  ;;  %v1533_v53 = vsel %vm4994_vm8, %v1508_v47, %v1532_v54  ;;  %v1540_v20 = vsel %vm4995_vm11, %v1509_v4, %v1539_v13  ;;  %v1569_v48 = vstv %s4310_s25 }
 0x2c6   :  { %v4260_v8 = vpop.permute.xlu1 %1562  ;;  %v1478_v52 = vadd.f32 %v1476_v35, %v4202_v6  ;;  %v1479_v30 = vadd.f32 %v1477_v58, %v4204_v12  ;;  %vm4996_vm9 = vcmask 1047559   ;;  %v1667_v29 = vstv %s4317_s26 }
 0x2c7   :  { %v1534_v1 = vsel %vm4996_vm9, %v1510_v15, %v1533_v53  ;;  %vm4997_vm15 = vmmov %vm4996_vm9  ;;  %v4362_v57 = vmul.f32 %v1835_v34, %v3995_v43  ;;  %v1648_v6 = vsel %vm432_vm1, %v4244_v33, %v4250_v24  ;;  %v1649_v12 = vsel %vm432_vm1, %v4250_v24, %v4244_v33 }
 0x2c8   :  { %v1541_v60 = vsel %vm4997_vm15, %v1511_v9, %v1540_v20  ;;  %v1492_v40 = vadd.f32 %v1490_v42, %v1478_v52  ;;  %v1493_v11 = vadd.f32 %v1491_v16, %v1479_v30  ;;  %v1583_v23 = vstv %s4324_s27 }
 0x2c9   :  { %v4268_v55 = vpop.permute.xlu0 %1658  ;;  %v1681_v50 = vstv %s4332_s28  ;;  %v1703_v41 = vstv %s4334_s29  ;;  %v4376_v43 = vmul.f32 %v1835_v34, %v3999_v19  ;;  %vm4998_vm10 = vcmp.lt.s32.totalorder %v2467_v28, 126 }
 0x2ca   :  { %v4274_v56 = vpop.permute.xlu1 %1660  ;;  %vm4999_vm8 = vmmov %vm4998_vm10  ;;  %v1801_v33 = vstv %s4336_s30  ;;  %v1717_v24 = vstv %s4338_s8  ;;  %v1550_v17 = vsel %vm432_vm1, %v4238_v26, %v4240_v62  ;;  %v1551_v19 = vsel %vm432_vm1, %v4240_v62, %v4238_v26 }
 0x2cb   :  { %v1662_v3 = vsel %vm4998_vm10, %v4268_v55, %v4274_v56  ;;  %v1663_v39 = vsel %vm4999_vm8, %v4274_v56, %v4268_v55  ;;  %vm5000_vm11 = vcmp.lt.s32.totalorder %v2863_v25, 15  ;;  %vm5001_vm9 = vcmp.lt.s32.totalorder %v2866_v7, 15 }
 0x2cc   :  { %v1650_v47 = vsel %vm5000_vm11, %v1648_v6, 0.0  ;;  %v1651_v22 = vsel %vm5001_vm9, %v1649_v12, 0.0  ;;  %v1544_v55 = vadd.f32 %v1534_v1, %v1492_v40  ;;  %v1545_v56 = vadd.f32 %v1541_v60, %v1493_v11  ;;  %vm5004_vm8 = vmmov %vm5000_vm11 }
 0x2cd   :  { %v4280_v21 = vpop.permute.xlu0 %1574  ;;  %v1815_v46 = vstv %s4349_s4  ;;  %v1829_v54 = vstv %s4351_s9  ;;  %vm5002_vm15 = vcmp.lt.s32.totalorder %v2863_v25, 14  ;;  %vm5003_vm10 = vcmp.lt.s32.totalorder %v2866_v7, 14  ;;  %vm5005_vm11 = vmmov %vm5001_vm9 }
 0x2ce   :  { %v4292_v37 = vpop.permute.xlu1 %1576  ;;  %v1664_v13 = vsel %vm5002_vm15, %v1662_v3, 0.0  ;;  %v1665_v26 = vsel %vm5003_vm10, %v1663_v39, 0.0  ;;  %v1552_v58 = vsel %vm5004_vm8, %v1550_v17, 0.0  ;;  %v1553_v2 = vsel %vm5005_vm11, %v1551_v19, 0.0 }
 0x2cf   :  { %v1654_v15 = vmul.f32 %v1653_v44, %v1650_v47  ;;  %v1655_v38 = vmul.f32 %v1653_v44, %v1651_v22  ;;  %vm5006_vm9 = vcmp.lt.s32.totalorder %v2467_v28, 126  ;;  %v1668_v16 = vmul.f32 %v1667_v29, %v1664_v13 }
 0x2d0   :  { %v1564_v9 = vsel %vm5006_vm9, %v4256_v0, %v4260_v8  ;;  %vm5007_vm15 = vmmov %vm5006_vm9  ;;  %v1669_v53 = vmul.f32 %v1667_v29, %v1665_v26  ;;  %vm5008_vm10 = vcmp.lt.s32.totalorder %v2863_v25, 13  ;;  %vm5009_vm8 = vcmp.lt.s32.totalorder %v2866_v7, 13 }
 0x2d1   :  { %v4319_v5 = vpop.permute.xlu0 %1672  ;;  %v1565_v34 = vsel %vm5007_vm15, %v4260_v8, %v4256_v0  ;;  %v1556_v44 = vmul.f32 %v1555_v32, %v1552_v58  ;;  %v1557_v1 = vmul.f32 %v1555_v32, %v1553_v2  ;;  %v1656_v60 = vadd.f32 %v1654_v15, %v4246_v31  ;;  %vm5012_vm15 = vmmov %vm5008_vm10 }
 0x2d2   :  { %v1675_v10 = vpop.permute.xlu1 %1674  ;;  %vm5010_vm11 = vcmp.lt.s32.totalorder %v2863_v25, 14  ;;  %vm5011_vm9 = vcmp.lt.s32.totalorder %v2866_v7, 14  ;;  %v1578_v19 = vsel %vm462_vm13, %v4280_v21, %v4292_v37 }
 0x2d3   :  { %v1676_v62 = vsel %vm462_vm13, %v4319_v5, %v1675_v10  ;;  %v1677_v35 = vsel %vm462_vm13, %v1675_v10, %v4319_v5  ;;  %v1566_v11 = vsel %vm5010_vm11, %v1564_v9, 0.0  ;;  %v1567_v32 = vsel %vm5011_vm9, %v1565_v34, 0.0 }
 0x2d4   :  { %v1678_v20 = vsel %vm5008_vm10, %v1676_v62, 0.0  ;;  %v1679_v52 = vsel %vm5009_vm8, %v1677_v35, 0.0  ;;  %v1670_v31 = vadd.f32 %v1668_v16, %v1656_v60  ;;  %v1558_v13 = vadd.f32 %v1556_v44, %v1544_v55  ;;  %vm5013_vm10 = vmmov %vm5009_vm8 }
 0x2d5   :  { %v4342_v61 = vpop.permute.xlu0 %1694  ;;  %v1682_v6 = vmul.f32 %v1681_v50, %v1678_v20  ;;  %v1683_v12 = vmul.f32 %v1681_v50, %v1679_v52  ;;  %v1579_v50 = vsel %vm462_vm13, %v4292_v37, %v4280_v21  ;;  %v1559_v26 = vadd.f32 %v1557_v1, %v1545_v56  ;;  %vm5024_vm8 = vmmov %vm5010_vm11 }
 0x2d6   :  { %v4347_v14 = vpop.permute.xlu1 %1696  ;;  %v1570_v62 = vmul.f32 %v1569_v48, %v1566_v11  ;;  %v1571_v35 = vmul.f32 %v1569_v48, %v1567_v32  ;;  %v1580_v34 = vsel %vm5012_vm15, %v1578_v19, 0.0 }
 0x2d7   :  { %v1684_v58 = vadd.f32 %v1682_v6, %v1670_v31  ;;  %v1698_v21 = vsel %vm381_vm0, %v4342_v61, %v4347_v14  ;;  %v1699_v37 = vsel %vm381_vm0, %v4347_v14, %v4342_v61  ;;  %v1584_v44 = vmul.f32 %v1583_v23, %v1580_v34 }
 0x2d8   :  { %v1701_v1 = vsel %vm296_vm7, %v1698_v21, 0.0 }
 0x2d9   :  { %v1793_v18 = vpop.permute.xlu0 %1792  ;;  %v1705_v6 = vmul.f32 %v1703_v41, %v1701_v1 }
 0x2da   :  { %v1795_v59 = vpop.permute.xlu1 %1794 }
 0x2db   :  { %v1796_v5 = vsel %vm381_vm0, %v1793_v18, %v1795_v59  ;;  %v1797_v10 = vsel %vm381_vm0, %v1795_v59, %v1793_v18  ;;  %v1657_v18 = vadd.f32 %v1655_v38, %v4248_v63  ;;  %vm5023_vm0 = vmmov %vm5011_vm9 }
 0x2dc   :  { %v1798_v29 = vsel %vm295_vm12, %v1797_v10, 0.0  ;;  %v1799_v40 = vsel %vm296_vm7, %v1796_v5, 0.0  ;;  %v1581_v5 = vsel %vm5013_vm10, %v1579_v50, 0.0  ;;  %vm5026_vm9 = vmmov %vm5012_vm15 }
 0x2dd   :  { %v4400_v4 = vpop.permute.xlu0 %1708  ;;  %v1671_v3 = vadd.f32 %v1669_v53, %v1657_v18  ;;  %v1802_v47 = vmul.f32 %v1801_v33, %v1798_v29  ;;  %v1803_v22 = vmul.f32 %v1801_v33, %v1799_v40  ;;  %v1572_v29 = vadd.f32 %v1570_v62, %v1558_v13  ;;  %vm5027_vm15 = vmmov %vm5013_vm10 }
 0x2de   :  { %v4402_v36 = vpop.permute.xlu1 %1710  ;;  %v1573_v40 = vadd.f32 %v1571_v35, %v1559_v26  ;;  %vm5028_vm10 = vmmov %vm5026_vm9 }
 0x2df   :  { %v1685_v2 = vadd.f32 %v1683_v12, %v1671_v3  ;;  %v1804_v33 = vadd.f32 %v1802_v47, %v1684_v58  ;;  %v1712_v10 = vsel %vm396_vm14, %v4400_v4, %v4402_v36  ;;  %v1713_v61 = vsel %vm396_vm14, %v4402_v36, %v4400_v4 }
 0x2e0   :  { %v1585_v4 = vmul.f32 %v1583_v23, %v1581_v5  ;;  %v1700_v36 = vsel %vm295_vm12, %v1699_v37, 0.0  ;;  %v1714_v23 = vsel %vm301_vm6, %v1713_v61, 0.0  ;;  %v1715_v11 = vsel %vm302_vm5, %v1712_v10, 0.0 }
 0x2e1   :  { %v1807_v42 = vpop.permute.xlu0 %1806  ;;  %v1805_v55 = vadd.f32 %v1803_v22, %v1685_v2  ;;  %v1704_v32 = vmul.f32 %v1703_v41, %v1700_v36  ;;  %v1731_v3 = vstv %s4478_s5  ;;  %v1586_v41 = vadd.f32 %v1584_v44, %v1572_v29 }
 0x2e2   :  { %v1809_v30 = vpop.permute.xlu1 %1808  ;;  %v1587_v19 = vadd.f32 %v1585_v4, %v1573_v40  ;;  %v1718_v50 = vmul.f32 %v1717_v24, %v1714_v23  ;;  %v1719_v47 = vmul.f32 %v1717_v24, %v1715_v11  ;;  %v1751_v37 = vstv %s4522_s7 }
 0x2e3   :  { %v1810_v0 = vsel %vm396_vm14, %v1807_v42, %v1809_v30  ;;  %v1811_v8 = vsel %vm396_vm14, %v1809_v30, %v1807_v42  ;;  %vm5022_vm14 = vmmov %vm5010_vm11 }
 0x2e4   :  { %v1812_v63 = vsel %vm301_vm6, %v1811_v8, 0.0  ;;  %v1813_v39 = vsel %vm302_vm5, %v1810_v0, 0.0  ;;  %v1707_v22 = vadd.f32 %v1705_v6, %v1587_v19  ;;  %vm5025_vm11 = vmmov %vm5023_vm0 }
 0x2e5   :  { %v1723_v59 = vpop.permute.xlu0 %1722  ;;  %v1816_v15 = vmul.f32 %v1815_v46, %v1812_v63  ;;  %v1817_v38 = vmul.f32 %v1815_v46, %v1813_v39 }
 0x2e6   :  { %v1725_v17 = vpop.permute.xlu1 %1724  ;;  %v1721_v2 = vadd.f32 %v1719_v47, %v1707_v22 }
 0x2e7   :  { %v1818_v16 = vadd.f32 %v1816_v15, %v1804_v33  ;;  %v1819_v53 = vadd.f32 %v1817_v38, %v1805_v55  ;;  %v1726_v8 = vsel %vm411_vm4, %v1723_v59, %v1725_v17 }
 0x2e8   :  { %v1729_v39 = vsel %vm306_vm2, %v1726_v8, 0.0 }
 0x2e9   :  { %v1821_v9 = vpop.permute.xlu0 %1820  ;;  %v1733_v26 = vmul.f32 %v1731_v3, %v1729_v39 }
 0x2ea   :  { %v1823_v48 = vpop.permute.xlu1 %1822 }
 0x2eb   :  { %v1824_v56 = vsel %vm411_vm4, %v1821_v9, %v1823_v48  ;;  %v1825_v46 = vsel %vm411_vm4, %v1823_v48, %v1821_v9  ;;  %v1735_v21 = vadd.f32 %v1733_v26, %v1721_v2  ;;  %v1849_v48 = vstv %s4524_s10 }
 0x2ec   :  { %v1826_v14 = vsel %vm305_vm3, %v1825_v46, 0.0  ;;  %v1827_v42 = vsel %vm306_vm2, %v1824_v56, 0.0  ;;  %vm5014_vm2 = vcmp.lt.s32.totalorder %v2863_v25, 15 }
 0x2ed   :  { %v1830_v20 = vmul.f32 %v1829_v54, %v1826_v14  ;;  %v1831_v52 = vmul.f32 %v1829_v54, %v1827_v42  ;;  %v1743_v30 = vpop.permute.xlu0 %1742  ;;  %v1727_v54 = vsel %vm411_vm4, %v1725_v17, %v1723_v59  ;;  %vm5016_vm4 = vcmp.lt.s32.totalorder %v2467_v28, 126  ;;  %vm5018_vm5 = vmmov %vm5014_vm2 }
 0x2ee   :  { %v1745_v0 = vpop.permute.xlu1 %1744  ;;  %v1728_v63 = vsel %vm305_vm3, %v1727_v54, 0.0  ;;  %vm5015_vm3 = vcmp.lt.s32.totalorder %v2866_v7, 15  ;;  %v1889_v28 = vstv %s4663_s1 }
 0x2ef   :  { %v1832_v60 = vadd.f32 %v1830_v20, %v1818_v16  ;;  %v1833_v18 = vadd.f32 %v1831_v52, %v1819_v53  ;;  %v1732_v13 = vmul.f32 %v1731_v3, %v1728_v63  ;;  %v1746_v24 = vsel %vm432_vm1, %v1743_v30, %v1745_v0  ;;  %vm5019_vm6 = vmmov %vm5015_vm3 }
 0x2f0   :  { %v1747_v15 = vsel %vm432_vm1, %v1745_v0, %v1743_v30  ;;  %v1748_v55 = vsel %vm5014_vm2, %v1746_v24, 0.0  ;;  %v1765_v20 = vstv %s4541_s14  ;;  %v1863_v52 = vstv %s4544_s11  ;;  %vm5029_vm2 = vmmov %vm5027_vm15 }
 0x2f1   :  { %v1841_v12 = vpop.permute.xlu0 %1840  ;;  %v4527_v59 = vadd.f32 %v4362_v57, %v1832_v60  ;;  %v4530_v31 = vadd.f32 %v4376_v43, %v1833_v18  ;;  %v1737_v57 = vstv %s4496_s6  ;;  %v1706_v43 = vadd.f32 %v1704_v32, %v1586_v41 }
 0x2f2   :  { %v1843_v17 = vpop.permute.xlu1 %1842  ;;  %v1738_v38 = vmul.f32 %v1737_v57, %v3966_v27  ;;  %v1749_v27 = vsel %vm5015_vm3, %v1747_v15, 0.0  ;;  %v1739_v53 = vmul.f32 %v1737_v57, %v3970_v45  ;;  %v1779_v30 = vstv %s4546_s15 }
 0x2f3   :  { %v1720_v58 = vadd.f32 %v1718_v50, %v1706_v43  ;;  %v1844_v9 = vsel %vm432_vm1, %v1841_v12, %v1843_v17  ;;  %v1845_v34 = vsel %vm432_vm1, %v1843_v17, %v1841_v12  ;;  %vm5017_vm1 = vmmov %vm5016_vm4  ;;  %v1752_v44 = vmul.f32 %v1751_v37, %v1748_v55 }
 0x2f4   :  { %v1846_v61 = vsel %vm5018_vm5, %v1844_v9, 0.0  ;;  %v1847_v14 = vsel %vm5019_vm6, %v1845_v34, 0.0  ;;  %vm5020_vm7 = vmmov %vm5017_vm1  ;;  %v1753_v4 = vmul.f32 %v1751_v37, %v1749_v27  ;;  %v1741_v40 = vadd.f32 %v1739_v53, %v1735_v21 }
 0x2f5   :  { %v1757_v62 = vpop.permute.xlu0 %1756  ;;  %v1734_v5 = vadd.f32 %v1732_v13, %v1720_v58  ;;  %vm5021_vm12 = vmmov %vm5017_vm1  ;;  %v1850_v8 = vmul.f32 %v1849_v48, %v1846_v61  ;;  %v1851_v54 = vmul.f32 %v1849_v48, %v1847_v14  ;;  %v1877_v41 = vstv %s4559_s12 }
 0x2f6   :  { %v1759_v35 = vpop.permute.xlu1 %1758  ;;  %v1755_v50 = vadd.f32 %v1753_v4, %v1741_v40 }
 0x2f7   :  { %v1760_v56 = vsel %vm5016_vm4, %v1757_v62, %v1759_v35  ;;  %v1761_v46 = vsel %vm5017_vm1, %v1759_v35, %v1757_v62  ;;  %v1740_v29 = vadd.f32 %v1738_v38, %v1734_v5  ;;  %v1852_v47 = vadd.f32 %v1850_v8, %v4527_v59 }
 0x2f8   :  { %v1762_v36 = vsel %vm5022_vm14, %v1760_v56, 0.0  ;;  %v1763_v1 = vsel %vm5023_vm0, %v1761_v46, 0.0  ;;  %v1853_v57 = vadd.f32 %v1851_v54, %v4530_v31 }
 0x2f9   :  { %v1855_v33 = vpop.permute.xlu0 %1854  ;;  %v1766_v32 = vmul.f32 %v1765_v20, %v1762_v36  ;;  %v1767_v6 = vmul.f32 %v1765_v20, %v1763_v1  ;;  %v1754_v19 = vadd.f32 %v1752_v44, %v1740_v29  ;;  %v5030_v20 = vlaneseq }
 0x2fa   :  { %v1857_v10 = vpop.permute.xlu1 %1856 }
 0x2fb   :  { %v1858_v42 = vsel %vm5020_vm7, %v1855_v33, %v1857_v10  ;;  %v1859_v16 = vsel %vm5021_vm12, %v1857_v10, %v1855_v33  ;;  %v1768_v35 = vadd.f32 %v1766_v32, %v1754_v19  ;;  %v1769_v58 = vadd.f32 %v1767_v6, %v1755_v50 }
 0x2fc   :  { %v1860_v60 = vsel %vm5024_vm8, %v1858_v42, 0.0  ;;  %v1861_v45 = vsel %vm5025_vm11, %v1859_v16, 0.0  ;;  %v2220_v42 = vmov 1966171168  }
 0x2fd   :  { %v1771_v0 = vpop.permute.xlu0 %1770  ;;  %v1864_v63 = vmul.f32 %v1863_v52, %v1860_v60  ;;  %v1865_v39 = vmul.f32 %v1863_v52, %v1861_v45  ;;  %v1909_v16 = vunpack.c.l.s4 %v2220_v42  ;;  %v1912_v52 = vshrl.u32 %v5030_v20, 7 }
 0x2fe   :  { %v1773_v18 = vpop.permute.xlu1 %1772 }
 0x2ff   :  { %v1774_v23 = vsel %vm462_vm13, %v1771_v0, %v1773_v18  ;;  %v1775_v11 = vsel %vm462_vm13, %v1773_v18, %v1771_v0  ;;  %v1866_v59 = vadd.f32 %v1864_v63, %v1852_v47  ;;  %v1867_v15 = vadd.f32 %v1865_v39, %v1853_v57 }
 0x300   :  { %v1776_v12 = vsel %vm5026_vm9, %v1774_v23, 0.0  ;;  %v1777_v3 = vsel %vm5027_vm15, %v1775_v11, 0.0  ;;  %v1910_v53 = vunpack.c.0.s8 %v1909_v16  ;;  %v1958_v0 = vsub.s32 0, %v1912_v52 }
 0x301   :  { %v1869_v17 = vpop.permute.xlu0 %1868  ;;  %v1780_v22 = vmul.f32 %v1779_v30, %v1776_v12  ;;  %v1781_v13 = vmul.f32 %v1779_v30, %v1777_v3  ;;  %v1962_v8 = vsub.s32 1, %v1912_v52 }
 0x302   :  { %v1871_v43 = vpop.permute.xlu1 %1870  ;;  %v1913_v30 = vsub.s32 %v1910_v53, %v1912_v52 }
 0x303   :  { %v1872_v26 = vsel %vm462_vm13, %v1869_v17, %v1871_v43  ;;  %v1873_v62 = vsel %vm462_vm13, %v1871_v43, %v1869_v17  ;;  %v1782_v9 = vadd.f32 %v1780_v22, %v1768_v35  ;;  %v1783_v34 = vadd.f32 %v1781_v13, %v1769_v58 }
 0x304   :  { %v1874_v2 = vsel %vm5028_vm10, %v1872_v26, 0.0  ;;  %v1875_v24 = vsel %vm5029_vm2, %v1873_v62, 0.0 }
 0x305   :  { %v1878_v31 = vmul.f32 %v1877_v41, %v1874_v2  ;;  %v1879_v38 = vmul.f32 %v1877_v41, %v1875_v24 }
 0x307   :  { %v1880_v5 = vadd.f32 %v1878_v31, %v1866_v59  ;;  %v1881_v21 = vadd.f32 %v1879_v38, %v1867_v15 }
 0x309   :  { %v1884_v37 = vadd.f32 %v1880_v5, %v1782_v9  ;;  %v1885_v48 = vadd.f32 %v1881_v21, %v1783_v34  ;;  %v2185_v34 = vld [vmem:[%s4664_s2] sm:$0xff]  ;;  %v2186_v21 = vld [vmem:[%s4664_s2 + $0x8] sm:$0xff] }
 0x30b   :  { %v1886_v25 = vadd.f32 %v1884_v37, %v3901_v51  ;;  %v1887_v33 = vadd.f32 %v1885_v48, %v3903_v49  ;;  %v2187_v48 = vld [vmem:[%s4664_s2 + $0x10] sm:$0xff] }
 0x30d   :  { %v1890_v7 = vadd.f32 %v1889_v28, %v1886_v25  ;;  %v1891_v55 = vadd.f32 %v1889_v28, %v1887_v33  ;;  %v2188_v25 = vld [vmem:[%s4664_s2 + $0x18] sm:$0xff] }
 0x30f   :  { %v2153_v27 = vmul.f32 -1.442695, %v1890_v7  ;;  %v2154_v56 = vmul.f32 -1.442695, %v1891_v55  ;;  %v2189_v7 = vld [vmem:[%s4664_s2 + $0x20] sm:$0xff] }
 0x311   :  { %2177 = vpow2.f32 %v2153_v27  ;;  %v2190_v27 = vld [vmem:[%s4664_s2 + $0x28] sm:$0xff] }
 0x312   :  { %2179 = vpow2.f32 %v2154_v56 }
 0x31b   :  { %v2178_v46 = vpop.eup %2177 }
 0x31c   :  { %v2180_v10 = vpop.eup %2179  ;;  %v1898_v61 = vadd.f32 1.0, %v2178_v46  ;;  %v2191_v46 = vld [vmem:[%s4664_s2 + $0x30] sm:$0xff] }
 0x31d   :  { %v1899_v14 = vadd.f32 1.0, %v2180_v10 }
 0x31e   :  { %2181 = vrcp.f32 %v1898_v61  ;;  %v2192_v61 = vld [vmem:[%s4664_s2 + $0x38] sm:$0xff] }
 0x31f   :  { %2183 = vrcp.f32 %v1899_v14 }
 0x328   :  { %v2182_v51 = vpop.eup %2181 }
 0x329   :  { %v2184_v49 = vpop.eup %2183 }
 0x32a   :  { %v1906_v44 = vcombine.low %v2182_v51, %v2184_v49  ;;  %v1907_v4 = vcombine.high %v2182_v51, %v2184_v49 }
 0x32c   :  { %v1914_v36 = vrot.slane %v1906_v44, %v1913_v30  ;;  %v1921_v1 = vrot.slane %v1907_v4, %v1913_v30 }
 0x32e   :  { %v1922_v54 = vcombine.high %v1914_v36, %v1914_v36  ;;  %v1923_v60 = vcombine.high %v1921_v1, %v1921_v1  ;;  %v1930_v45 = vrot.slane %v1914_v36, %v1913_v30  ;;  %v1937_v18 = vrot.slane %v1921_v1, %v1913_v30 }
 0x330   :  { %v1944_v29 = vrot.slane %v1922_v54, %v1913_v30  ;;  %v1951_v40 = vrot.slane %v1923_v60, %v1913_v30  ;;  %v1952_v23 = vcombine.high %v1930_v45, %v1930_v45  ;;  %v1953_v11 = vcombine.high %v1937_v18, %v1937_v18 }
 0x331   :  { %v1959_v32 = vrot.slane %v1930_v45, %v1958_v0  ;;  %v1963_v6 = vrot.slane %v1930_v45, %v1962_v8  ;;  %v1991_v12 = vrot.slane %v1937_v18, %v1958_v0  ;;  %v1995_v3 = vrot.slane %v1937_v18, %v1962_v8 }
 0x332   :  { %v1954_v63 = vcombine.high %v1944_v29, %v1944_v29  ;;  %v1955_v39 = vcombine.high %v1951_v40, %v1951_v40  ;;  %v1967_v17 = vrot.slane %v1944_v29, %v1958_v0  ;;  %v1971_v41 = vrot.slane %v1944_v29, %v1962_v8 }
 0x333   :  { %v1975_v19 = vrot.slane %v1952_v23, %v1958_v0  ;;  %v1979_v50 = vrot.slane %v1952_v23, %v1962_v8  ;;  %v1999_v47 = vrot.slane %v1951_v40, %v1958_v0  ;;  %v2003_v57 = vrot.slane %v1951_v40, %v1962_v8 }
 0x334   :  { %v1983_v43 = vrot.slane %v1954_v63, %v1958_v0  ;;  %v1987_v22 = vrot.slane %v1954_v63, %v1962_v8  ;;  %v2007_v13 = vrot.slane %v1953_v11, %v1958_v0  ;;  %v2011_v26 = vrot.slane %v1953_v11, %v1962_v8 }
 0x335   :  { %v2015_v62 = vrot.slane %v1955_v39, %v1958_v0  ;;  %v2019_v35 = vrot.slane %v1955_v39, %v1962_v8  ;;  %v2020_v58 = vcombine.low %v1959_v32, %v1963_v6  ;;  %v2021_v2 = vcombine.low %v1967_v17, %v1971_v41 }
 0x336   :  { %v2022_v24 = vcombine.low %v1975_v19, %v1979_v50  ;;  %v2023_v59 = vcombine.low %v1983_v43, %v1987_v22  ;;  %v2024_v15 = vcombine.low %v1991_v12, %v1995_v3  ;;  %v2025_v31 = vcombine.low %v1999_v47, %v2003_v57 }
 0x337   :  { %v2026_v38 = vcombine.low %v2007_v13, %v2011_v26  ;;  %v2027_v9 = vcombine.low %v2015_v62, %v2019_v35  ;;  %v2036_v5 = vmul.f32 %v2185_v34, %v2020_v58  ;;  %v2037_v37 = vmul.f32 %v2186_v21, %v2021_v2 }
 0x338   :  { %v2038_v28 = vmul.f32 %v2187_v48, %v2022_v24  ;;  %v2039_v33 = vmul.f32 %v2188_v25, %v2023_v59  ;;  %v2040_v55 = vmul.f32 %v2189_v7, %v2024_v15  ;;  %v2041_v56 = vmul.f32 %v2190_v27, %v2025_v31 }
 0x339   :  { %v2042_v10 = vmul.f32 %v2191_v46, %v2026_v38  ;;  %v2043_v14 = vmul.f32 %v2192_v61, %v2027_v9  ;;  %2044 = vst [vmem:[%s4665_s3] sm:$0xff] %v2036_v5  ;;  %2045 = vst [vmem:[%s4665_s3 + $0x8] sm:$0xff] %v2037_v37 }
 0x33a   :  { %2046 = vst [vmem:[%s4665_s3 + $0x10] sm:$0xff] %v2038_v28  ;;  %2047 = vst [vmem:[%s4665_s3 + $0x18] sm:$0xff] %v2039_v33 }
 0x33b   :  { %2048 = vst [vmem:[%s4665_s3 + $0x20] sm:$0xff] %v2040_v55  ;;  %2049 = vst [vmem:[%s4665_s3 + $0x28] sm:$0xff] %v2041_v56 }
 0x33c   :  { %2050 = vst [vmem:[%s4665_s3 + $0x30] sm:$0xff] %v2042_v10  ;;  %2051 = vst [vmem:[%s4665_s3 + $0x38] sm:$0xff] %v2043_v14 }

</bundles_post_ra>
